<compile_context>
chip_gen: v6e
topology: v6e:2x2x1
jax: 0.10.0
libtpu: 0.0.40
codegen_flags: <defaults>
</compile_context>

<pallas_src>
import math

import jax
import jax.numpy as jnp
from jax import lax
from jax.experimental import pallas as pl
from jax.experimental.pallas import tpu as pltpu


# ---------------------------------------------------------------------------
# Fused forward kernel (one grid step = one sample)
# ---------------------------------------------------------------------------
def _fused_forward_kernel(
    xpad_ref,    # (H+2, W+2, 3)   zero-padded NHWC input (padded in wrapper)
    w1t_ref,     # (9, 3, 32)      conv1 weight, one (Cin,Cout) matrix per tap
    b1_ref,      # (1, 32)
    w2t_ref,     # (9, 32, 64)     conv2 weight per tap
    b2_ref,      # (1, 64)
    sel1_ref,    # (2, 32, 112)    conv1 pool one-hot row selectors (even/odd w)
    sel2_ref,    # (2, 16, 56)     conv2 pool one-hot row selectors
    nd1_ref,     # (64, 32)        NdLinear mode-1 weight (already transposed)
    nd1b_ref,    # (1, 32)
    w23_ref,     # (16, 16)        kron(nd_w2, nd_w3): modes 2+3 fused
    b23_ref,     # (16, 32)        fused modes-2/3 bias, pre-broadcast on lanes
    fcw_ref,     # (512, 128)      fc weight, rows = p*32 + a, cols padded
    fcb_ref,     # (1, 128)
    out_ref,     # (1, 128)
    xp2_ref,     # (10, 10, 32)    VMEM scratch: padded conv2 input
):
    f32 = jnp.float32
    Hp, Wp, Cin = xpad_ref.shape
    H1, W1 = Hp - 2, Wp - 2                 # 16, 16
    C1 = w1t_ref.shape[2]                   # 32
    C2 = w2t_ref.shape[2]                   # 64
    H2, W2 = H1 // 2, W1 // 2               # 8, 8  (conv2 spatial)
    H3, W3 = H2 // 2, W2 // 2               # 4, 4  (NdLinear spatial)
    A = nd1_ref.shape[1]                    # 32 (h1, stays lane-dense)
    P = w23_ref.shape[0]                    # 16 (h2*h3)

    rows_half = H2 * W1                     # 128 conv1 output rows per h-half
    m1_rows1 = rows_half - W1               # 112
    rows_2 = H2 * W2                        # 64  conv2 output rows
    m1_rows2 = rows_2 - W2                  # 56

    # Zero the (minimal-size) conv2 padded-input scratch every step; the
    # interior gets overwritten below, the halo stays zero.  (~20 stores.)
    xp2_ref[...] = jnp.zeros(xp2_ref.shape, f32)

    b1 = b1_ref[...]
    sel1a = sel1_ref[0]
    sel1b = sel1_ref[1]

    # ---- conv1 3x3 / pad 1 (9 accumulated matmuls), ReLU, 2x2 max-pool -----
    # Processed in two h-halves of 128 rows each to keep vreg pressure low.
    for half in range(2):
        acc = jnp.zeros((rows_half, C1), f32)
        for t in range(9):
            kh, kw = divmod(t, 3)
            patch = xpad_ref[pl.ds(half * H2 + kh, H2), pl.ds(kw, W1), :]
            acc = acc + jnp.dot(patch.reshape(rows_half, Cin), w1t_ref[t],
                                preferred_element_type=f32)
        a1 = jnp.maximum(acc + b1, 0.0)                      # (128, 32)
        # H-direction pairs via aligned slices, W-direction pairs + row gather
        # via two one-hot selection matmuls on the otherwise idle MXU.
        m1 = jnp.maximum(a1[0:m1_rows1, :], a1[W1:rows_half, :])   # (112, 32)
        pooled = jnp.maximum(
            jnp.dot(sel1a, m1, preferred_element_type=f32),
            jnp.dot(sel1b, m1, preferred_element_type=f32))        # (32, 32)
        # write straight into conv2's padded-input scratch interior
        xp2_ref[pl.ds(1 + half * H3, H3), pl.ds(1, W2), :] = \
            pooled.reshape(H3, W2, C1)

    # ---- conv2 3x3 / pad 1 (9 accumulated matmuls), ReLU, 2x2 max-pool -----
    acc2 = jnp.zeros((rows_2, C2), f32)
    for t in range(9):
        kh, kw = divmod(t, 3)
        patch = xp2_ref[pl.ds(kh, H2), pl.ds(kw, W2), :]           # (8, 8, 32)
        acc2 = acc2 + jnp.dot(patch.reshape(rows_2, C1), w2t_ref[t],
                              preferred_element_type=f32)
    a2 = jnp.maximum(acc2 + b2_ref[...], 0.0)                      # (64, 64)
    m1c = jnp.maximum(a2[0:m1_rows2, :], a2[W2:rows_2, :])         # (56, 64)
    x2d = jnp.maximum(
        jnp.dot(sel2_ref[0], m1c, preferred_element_type=f32),
        jnp.dot(sel2_ref[1], m1c, preferred_element_type=f32))     # (16, 64)

    # ---- NdLinear: mode-1 matmul, fused modes 2+3 via kron(W2,W3), ReLU ----
    t1 = jnp.dot(x2d, nd1_ref[...], preferred_element_type=f32) + nd1b_ref[...]
    t3 = jnp.maximum(
        jnp.dot(w23_ref[...], t1, preferred_element_type=f32) + b23_ref[...],
        0.0)                                                       # (16, 32)

    # ---- fc: accumulate over p with 16 tiny matmuls (no flatten/relayout) --
    acc_fc = fcb_ref[...]                                          # (1, 128)
    for p in range(P):
        acc_fc = acc_fc + jnp.dot(t3[p:p + 1, :],
                                  fcw_ref[pl.ds(p * A, A), :],
                                  preferred_element_type=f32)
    out_ref[...] = acc_fc


# ---------------------------------------------------------------------------
# One-time parameter re-layout (outside jit)
# ---------------------------------------------------------------------------
def _pool_selectors(n_hh, n_ww, src_row_stride, src_rows):
    # One-hot matrices gathering the (even, odd) W-pair rows of the H-pooled
    # conv output for every pooled (hh, ww) position.
    tgt = (jnp.arange(n_hh)[:, None] * src_row_stride
           + 2 * jnp.arange(n_ww)[None, :]).reshape(-1)
    cols = jnp.arange(src_rows)[None, :]
    sel_a = (tgt[:, None] == cols).astype(jnp.float32)
    sel_b = (tgt[:, None] + 1 == cols).astype(jnp.float32)
    return jnp.stack([sel_a, sel_b], axis=0)


def prepare_params(params, img_hw=(16, 16)):
    f32 = jnp.float32
    H, W = img_hw
    Hh, Wh = H // 2, W // 2

    c1o, c1i = params["conv1_w"].shape[0], params["conv1_w"].shape[1]
    c2o, c2i = params["conv2_w"].shape[0], params["conv2_w"].shape[1]
    h1 = params["nd_w1"].shape[0]
    h2 = params["nd_w2"].shape[0]
    h3 = params["nd_w3"].shape[0]
    num_classes = params["fc_w"].shape[0]
    P = h2 * h3

    # conv weights: one (Cin, Cout) matrix per 3x3 tap, t = kh*3 + kw
    w1t = jnp.transpose(params["conv1_w"], (2, 3, 1, 0)).reshape(9, c1i, c1o)
    w2t = jnp.transpose(params["conv2_w"], (2, 3, 1, 0)).reshape(9, c2i, c2o)

    # NdLinear modes 2+3 fused: t3 = kron(W2, W3) @ t1_block + b23
    w23 = jnp.kron(params["nd_w2"], params["nd_w3"])                  # (16, 16)
    b23 = (params["nd_b2"][:, None] * jnp.sum(params["nd_w3"], axis=1)[None, :]
           + params["nd_b3"][None, :]).reshape(P, 1)
    b23 = jnp.broadcast_to(b23, (P, h1))                              # (16, 32)

    # fc weight: PyTorch flatten f = a*P + p  ->  kernel rows p*h1 + a;
    # pad the class dim to 128 lanes so the output store is unmasked.
    ncp = 128
    assert num_classes <= ncp
    fc_wp = (params["fc_w"].reshape(num_classes, h1, P)
             .transpose(2, 1, 0).reshape(h1 * P, num_classes))
    fc_wp = jnp.pad(fc_wp, ((0, 0), (0, ncp - num_classes)))
    fc_bp = jnp.pad(params["fc_b"].reshape(1, -1),
                    ((0, 0), (0, ncp - num_classes)))

    # max-pool selection matrices
    sel1 = _pool_selectors(Hh // 2, W // 2, 2 * W, Hh * W - W)        # (2,32,112)
    sel2 = _pool_selectors(Hh // 2, Wh // 2, 2 * Wh, Hh * Wh - Wh)    # (2,16,56)

    cast = lambda a: a.astype(f32)
    return dict(
        w1t=cast(w1t), b1=cast(params["conv1_b"].reshape(1, -1)),
        w2t=cast(w2t), b2=cast(params["conv2_b"].reshape(1, -1)),
        sel1=cast(sel1), sel2=cast(sel2),
        nd1t=cast(params["nd_w1"].T), nd1b=cast(params["nd_b1"].reshape(1, -1)),
        w23=cast(w23), b23=cast(b23),
        fc_wp=cast(fc_wp), fc_bp=cast(fc_bp),
        num_classes=num_classes,
    )


# ---------------------------------------------------------------------------
# Forward pass: one pallas_call, grid over batch ("parallel")
# ---------------------------------------------------------------------------
def ndlinear_mnist_net_forward(x_nchw, prep):
    B, Cin, H1, W1 = x_nchw.shape
    assert H1 % 4 == 0 and W1 % 4 == 0

    x = jnp.transpose(x_nchw, (0, 2, 3, 1)).astype(jnp.float32)       # NHWC
    xpad = jnp.pad(x, ((0, 0), (1, 1), (1, 1), (0, 0)))               # (B,18,18,3)

    w1t, b1 = prep["w1t"], prep["b1"]
    w2t, b2 = prep["w2t"], prep["b2"]
    sel1, sel2 = prep["sel1"], prep["sel2"]
    nd1t, nd1b = prep["nd1t"], prep["nd1b"]
    w23, b23 = prep["w23"], prep["b23"]
    fc_wp, fc_bp = prep["fc_wp"], prep["fc_bp"]
    num_classes = prep["num_classes"]

    C1 = w1t.shape[2]
    C2 = w2t.shape[2]
    A = nd1t.shape[1]
    NC = fc_wp.shape[1]
    Hh, Wh = H1 // 2, W1 // 2

    args = (xpad, w1t, b1, w2t, b2, sel1, sel2, nd1t, nd1b, w23, b23,
            fc_wp, fc_bp)

    def _const_spec(a):
        nd = a.ndim
        return pl.BlockSpec(a.shape, lambda b, _nd=nd: (0,) * _nd)

    in_specs = [pl.BlockSpec((None,) + xpad.shape[1:],
                             lambda b: (b, 0, 0, 0))]
    in_specs += [_const_spec(a) for a in args[1:]]
    out_specs = pl.BlockSpec((None, 1, NC), lambda b: (b, 0, 0))

    scratch = [pltpu.VMEM((Hh + 2, Wh + 2, C1), jnp.float32)]         # conv2 in

    flops = 2 * B * (H1 * W1 * 9 * Cin * C1
                     + Hh * Wh * 9 * C1 * C2
                     + (Hh // 2) * (Wh // 2) * C2 * A
                     + w23.shape[0] * w23.shape[1] * A
                     + fc_wp.shape[0] * NC)
    bytes_accessed = int(sum(int(a.size) for a in args) * 4 + B * NC * 4)

    out = pl.pallas_call(
        _fused_forward_kernel,
        out_shape=jax.ShapeDtypeStruct((B, 1, NC), jnp.float32),
        grid=(B,),
        in_specs=in_specs,
        out_specs=out_specs,
        scratch_shapes=scratch,
        compiler_params=pltpu.CompilerParams(
            dimension_semantics=("parallel",),
            vmem_limit_bytes=32 * 1024 * 1024),
        cost_estimate=pl.CostEstimate(flops=int(flops), transcendentals=0,
                                      bytes_accessed=bytes_accessed),
    )(*args)

    return out[:, 0, :num_classes]


# ---------------------------------------------------------------------------
# Deterministic synthetic parameters (PyTorch weight layouts / shapes)
# ---------------------------------------------------------------------------
def init_params(key, input_shape=(64, 4, 4), hidden_size=(32, 4, 4),
                num_classes=100):
    d1, d2, d3 = input_shape
    h1, h2, h3 = hidden_size
    ks = jax.random.split(key, 12)
    n = lambda k, s, sc: jax.random.normal(k, s, jnp.float32) * sc
    return dict(
        conv1_w=n(ks[0], (32, 3, 3, 3), 0.10),    # OIHW
        conv1_b=n(ks[1], (32,), 0.10),
        conv2_w=n(ks[2], (64, 32, 3, 3), 0.05),   # OIHW
        conv2_b=n(ks[3], (64,), 0.05),
        nd_w1=n(ks[4], (h1, d1), 0.05),           # nn.Linear weight (out, in)
        nd_b1=n(ks[5], (h1,), 0.05),
        nd_w2=n(ks[6], (h2, d2), 0.20),
        nd_b2=n(ks[7], (h2,), 0.20),
        nd_w3=n(ks[8], (h3, d3), 0.20),
        nd_b3=n(ks[9], (h3,), 0.20),
        fc_w=n(ks[10], (num_classes, h1 * h2 * h3), 0.02),
        fc_b=n(ks[11], (num_classes,), 0.02),
    )


# ---------------------------------------------------------------------------
# Pure-JAX reference (numerical sanity check)
# ---------------------------------------------------------------------------
def ref_forward(x_nchw, params):
    hp = lax.Precision.HIGHEST

    def conv_block(y, w, b):
        y = lax.conv_general_dilated(
            y, w, (1, 1), ((1, 1), (1, 1)),
            dimension_numbers=("NCHW", "OIHW", "NCHW"), precision=hp)
        y = jnp.maximum(y + b[None, :, None, None], 0.0)
        return lax.reduce_window(y, -jnp.inf, lax.max,
                                 (1, 1, 2, 2), (1, 1, 2, 2), "VALID")

    y = conv_block(x_nchw, params["conv1_w"], params["conv1_b"])
    y = conv_block(y, params["conv2_w"], params["conv2_b"])

    t = jnp.einsum("bchw,ac->bahw", y, params["nd_w1"], precision=hp)
    t = t + params["nd_b1"][None, :, None, None]
    t = jnp.einsum("bahw,gh->bagw", t, params["nd_w2"], precision=hp)
    t = t + params["nd_b2"][None, None, :, None]
    t = jnp.einsum("bagw,kw->bagk", t, params["nd_w3"], precision=hp)
    t = t + params["nd_b3"][None, None, None, :]

    t = jnp.maximum(t.reshape(t.shape[0], -1), 0.0)
    return jnp.dot(t, params["fc_w"].T, precision=hp) + params["fc_b"][None, :]


if __name__ == "__main__":
    key = jax.random.PRNGKey(0)
    pkey, xkey = jax.random.split(key)

    # input 3x16x16 -> after two conv+pool stages: (64, 4, 4)
    params = init_params(pkey, input_shape=(64, 4, 4), hidden_size=(32, 4, 4))
    assert math.prod((32, 4, 4)) == params["fc_w"].shape[1]
    prep = prepare_params(params, img_hw=(16, 16))   # one-time weight relayout

    x = jax.random.normal(xkey, (2, 3, 16, 16), jnp.float32)   # NCHW like PyTorch

    fwd = jax.jit(lambda inp: ndlinear_mnist_net_forward(inp, prep))
    out = jax.block_until_ready(fwd(x))
    assert out.shape == (2, 100) and out.dtype == jnp.float32

    ref = ref_forward(x, params)
    max_err = float(jnp.max(jnp.abs(out - ref)))
    if not bool(jnp.allclose(out, ref, atol=5e-3, rtol=5e-3)):
        raise AssertionError(f"Pallas output mismatch, max abs err = {max_err}")

    print("KERNEL_OK")
</pallas_src>

<mosaic_0001>
module attributes {stable_mosaic.version = 11 : i64} {
  func.func @_fused_forward_kernel(%arg0: i32, %arg1: memref<1x18x18x3xf32, #tpu.memory_space<vmem>>, %arg2: memref<9x3x32xf32, #tpu.memory_space<vmem>>, %arg3: memref<1x32xf32, #tpu.memory_space<vmem>>, %arg4: memref<9x32x64xf32, #tpu.memory_space<vmem>>, %arg5: memref<1x64xf32, #tpu.memory_space<vmem>>, %arg6: memref<2x32x112xf32, #tpu.memory_space<vmem>>, %arg7: memref<2x16x56xf32, #tpu.memory_space<vmem>>, %arg8: memref<64x32xf32, #tpu.memory_space<vmem>>, %arg9: memref<1x32xf32, #tpu.memory_space<vmem>>, %arg10: memref<16x16xf32, #tpu.memory_space<vmem>>, %arg11: memref<16x32xf32, #tpu.memory_space<vmem>>, %arg12: memref<512x128xf32, #tpu.memory_space<vmem>>, %arg13: memref<1x128xf32, #tpu.memory_space<vmem>>, %arg14: memref<1x1x128xf32, #tpu.memory_space<vmem>>, %arg15: memref<10x10x32xf32, #tpu.memory_space<vmem>>) attributes {dimension_semantics = [#tpu.dimension_semantics<parallel>], iteration_bounds = array<i64: 2>, scalar_prefetch = 0 : i64, scratch_operands = 1 : i64, tpu.core_type = #tpu.core_type<tc>, window_params = [{transform_indices = @transform_0, window_bounds = array<i64: 1, 18, 18, 3>}, {pipeline_mode = #tpu.pipeline_mode<synchronous>, transform_indices = @transform_1, window_bounds = array<i64: 9, 3, 32>}, {pipeline_mode = #tpu.pipeline_mode<synchronous>, transform_indices = @transform_2, window_bounds = array<i64: 1, 32>}, {pipeline_mode = #tpu.pipeline_mode<synchronous>, transform_indices = @transform_3, window_bounds = array<i64: 9, 32, 64>}, {pipeline_mode = #tpu.pipeline_mode<synchronous>, transform_indices = @transform_4, window_bounds = array<i64: 1, 64>}, {pipeline_mode = #tpu.pipeline_mode<synchronous>, transform_indices = @transform_5, window_bounds = array<i64: 2, 32, 112>}, {pipeline_mode = #tpu.pipeline_mode<synchronous>, transform_indices = @transform_6, window_bounds = array<i64: 2, 16, 56>}, {pipeline_mode = #tpu.pipeline_mode<synchronous>, transform_indices = @transform_7, window_bounds = array<i64: 64, 32>}, {pipeline_mode = #tpu.pipeline_mode<synchronous>, transform_indices = @transform_8, window_bounds = array<i64: 1, 32>}, {pipeline_mode = #tpu.pipeline_mode<synchronous>, transform_indices = @transform_9, window_bounds = array<i64: 16, 16>}, {pipeline_mode = #tpu.pipeline_mode<synchronous>, transform_indices = @transform_10, window_bounds = array<i64: 16, 32>}, {pipeline_mode = #tpu.pipeline_mode<synchronous>, transform_indices = @transform_11, window_bounds = array<i64: 512, 128>}, {pipeline_mode = #tpu.pipeline_mode<synchronous>, transform_indices = @transform_12, window_bounds = array<i64: 1, 128>}, {transform_indices = @transform_13, window_bounds = array<i64: 1, 1, 128>}]} {
    %cst = arith.constant 0.000000e+00 : f32
    %0 = vector.broadcast %cst : f32 to vector<10x10x32xf32>
    %c0 = arith.constant 0 : index
    %c0_0 = arith.constant 0 : index
    %c0_1 = arith.constant 0 : index
    %1 = vector.load %arg15[%c0, %c0_0, %c0_1] : memref<10x10x32xf32, #tpu.memory_space<vmem>>, vector<10x10x32xf32>
    tpu.vector_store %arg15[%c0, %c0_0, %c0_1], %0 {strides = array<i32>} : memref<10x10x32xf32, #tpu.memory_space<vmem>>, vector<10x10x32xf32>,
    %c0_2 = arith.constant 0 : index
    %c0_3 = arith.constant 0 : index
    %2 = vector.load %arg3[%c0_2, %c0_3] : memref<1x32xf32, #tpu.memory_space<vmem>>, vector<1x32xf32>
    %c0_4 = arith.constant 0 : index
    %c0_5 = arith.constant 0 : index
    %c0_6 = arith.constant 0 : index
    %3 = vector.load %arg6[%c0_4, %c0_5, %c0_6] : memref<2x32x112xf32, #tpu.memory_space<vmem>>, vector<1x32x112xf32>
    %4 = vector.shape_cast %3 : vector<1x32x112xf32> to vector<32x112xf32>
    %c1 = arith.constant 1 : index
    %c0_7 = arith.constant 0 : index
    %c0_8 = arith.constant 0 : index
    %5 = vector.load %arg6[%c1, %c0_7, %c0_8] : memref<2x32x112xf32, #tpu.memory_space<vmem>>, vector<1x32x112xf32>
    %6 = vector.shape_cast %5 : vector<1x32x112xf32> to vector<32x112xf32>
    %cst_9 = arith.constant 0.000000e+00 : f32
    %7 = vector.broadcast %cst_9 : f32 to vector<128x32xf32>
    %c0_10 = arith.constant 0 : index
    %c0_11 = arith.constant 0 : index
    %c0_12 = arith.constant 0 : index
    %c0_13 = arith.constant 0 : index
    %8 = vector.load %arg1[%c0_10, %c0_11, %c0_12, %c0_13] : memref<1x18x18x3xf32, #tpu.memory_space<vmem>>, vector<1x8x16x3xf32>
    %9 = vector.shape_cast %8 : vector<1x8x16x3xf32> to vector<8x16x3xf32>
    %10 = vector.shape_cast %9 : vector<8x16x3xf32> to vector<128x3xf32>
    %c0_14 = arith.constant 0 : index
    %c0_15 = arith.constant 0 : index
    %c0_16 = arith.constant 0 : index
    %11 = vector.load %arg2[%c0_14, %c0_15, %c0_16] : memref<9x3x32xf32, #tpu.memory_space<vmem>>, vector<1x3x32xf32>
    %12 = vector.shape_cast %11 : vector<1x3x32xf32> to vector<3x32xf32>
    %cst_17 = arith.constant dense<0.000000e+00> : vector<128x32xf32>
    %13 = tpu.matmul %10, %12, %cst_17 {dimension_numbers = #tpu.dot_dimension_numbers<[1], [0], [0], [1], [0, 0, 1, 1], [], []>} : vector<128x3xf32>, vector<3x32xf32>, vector<128x32xf32> -> vector<128x32xf32>
    %14 = arith.addf %7, %13 : vector<128x32xf32>
    %c0_18 = arith.constant 0 : index
    %c0_19 = arith.constant 0 : index
    %c1_20 = arith.constant 1 : index
    %c0_21 = arith.constant 0 : index
    %15 = vector.load %arg1[%c0_18, %c0_19, %c1_20, %c0_21] : memref<1x18x18x3xf32, #tpu.memory_space<vmem>>, vector<1x8x16x3xf32>
    %16 = vector.shape_cast %15 : vector<1x8x16x3xf32> to vector<8x16x3xf32>
    %17 = vector.shape_cast %16 : vector<8x16x3xf32> to vector<128x3xf32>
    %c1_22 = arith.constant 1 : index
    %c0_23 = arith.constant 0 : index
    %c0_24 = arith.constant 0 : index
    %18 = vector.load %arg2[%c1_22, %c0_23, %c0_24] : memref<9x3x32xf32, #tpu.memory_space<vmem>>, vector<1x3x32xf32>
    %19 = vector.shape_cast %18 : vector<1x3x32xf32> to vector<3x32xf32>
    %cst_25 = arith.constant dense<0.000000e+00> : vector<128x32xf32>
    %20 = tpu.matmul %17, %19, %cst_25 {dimension_numbers = #tpu.dot_dimension_numbers<[1], [0], [0], [1], [0, 0, 1, 1], [], []>} : vector<128x3xf32>, vector<3x32xf32>, vector<128x32xf32> -> vector<128x32xf32>
    %21 = arith.addf %14, %20 : vector<128x32xf32>
    %c0_26 = arith.constant 0 : index
    %c0_27 = arith.constant 0 : index
    %c2 = arith.constant 2 : index
    %c0_28 = arith.constant 0 : index
    %22 = vector.load %arg1[%c0_26, %c0_27, %c2, %c0_28] : memref<1x18x18x3xf32, #tpu.memory_space<vmem>>, vector<1x8x16x3xf32>
    %23 = vector.shape_cast %22 : vector<1x8x16x3xf32> to vector<8x16x3xf32>
    %24 = vector.shape_cast %23 : vector<8x16x3xf32> to vector<128x3xf32>
    %c2_29 = arith.constant 2 : index
    %c0_30 = arith.constant 0 : index
    %c0_31 = arith.constant 0 : index
    %25 = vector.load %arg2[%c2_29, %c0_30, %c0_31] : memref<9x3x32xf32, #tpu.memory_space<vmem>>, vector<1x3x32xf32>
    %26 = vector.shape_cast %25 : vector<1x3x32xf32> to vector<3x32xf32>
    %cst_32 = arith.constant dense<0.000000e+00> : vector<128x32xf32>
    %27 = tpu.matmul %24, %26, %cst_32 {dimension_numbers = #tpu.dot_dimension_numbers<[1], [0], [0], [1], [0, 0, 1, 1], [], []>} : vector<128x3xf32>, vector<3x32xf32>, vector<128x32xf32> -> vector<128x32xf32>
    %28 = arith.addf %21, %27 : vector<128x32xf32>
    %c0_33 = arith.constant 0 : index
    %c1_34 = arith.constant 1 : index
    %c0_35 = arith.constant 0 : index
    %c0_36 = arith.constant 0 : index
    %29 = vector.load %arg1[%c0_33, %c1_34, %c0_35, %c0_36] : memref<1x18x18x3xf32, #tpu.memory_space<vmem>>, vector<1x8x16x3xf32>
    %30 = vector.shape_cast %29 : vector<1x8x16x3xf32> to vector<8x16x3xf32>
    %31 = vector.shape_cast %30 : vector<8x16x3xf32> to vector<128x3xf32>
    %c3 = arith.constant 3 : index
    %c0_37 = arith.constant 0 : index
    %c0_38 = arith.constant 0 : index
    %32 = vector.load %arg2[%c3, %c0_37, %c0_38] : memref<9x3x32xf32, #tpu.memory_space<vmem>>, vector<1x3x32xf32>
    %33 = vector.shape_cast %32 : vector<1x3x32xf32> to vector<3x32xf32>
    %cst_39 = arith.constant dense<0.000000e+00> : vector<128x32xf32>
    %34 = tpu.matmul %31, %33, %cst_39 {dimension_numbers = #tpu.dot_dimension_numbers<[1], [0], [0], [1], [0, 0, 1, 1], [], []>} : vector<128x3xf32>, vector<3x32xf32>, vector<128x32xf32> -> vector<128x32xf32>
    %35 = arith.addf %28, %34 : vector<128x32xf32>
    %c0_40 = arith.constant 0 : index
    %c1_41 = arith.constant 1 : index
    %c1_42 = arith.constant 1 : index
    %c0_43 = arith.constant 0 : index
    %36 = vector.load %arg1[%c0_40, %c1_41, %c1_42, %c0_43] : memref<1x18x18x3xf32, #tpu.memory_space<vmem>>, vector<1x8x16x3xf32>
    %37 = vector.shape_cast %36 : vector<1x8x16x3xf32> to vector<8x16x3xf32>
    %38 = vector.shape_cast %37 : vector<8x16x3xf32> to vector<128x3xf32>
    %c4 = arith.constant 4 : index
    %c0_44 = arith.constant 0 : index
    %c0_45 = arith.constant 0 : index
    %39 = vector.load %arg2[%c4, %c0_44, %c0_45] : memref<9x3x32xf32, #tpu.memory_space<vmem>>, vector<1x3x32xf32>
    %40 = vector.shape_cast %39 : vector<1x3x32xf32> to vector<3x32xf32>
    %cst_46 = arith.constant dense<0.000000e+00> : vector<128x32xf32>
    %41 = tpu.matmul %38, %40, %cst_46 {dimension_numbers = #tpu.dot_dimension_numbers<[1], [0], [0], [1], [0, 0, 1, 1], [], []>} : vector<128x3xf32>, vector<3x32xf32>, vector<128x32xf32> -> vector<128x32xf32>
    %42 = arith.addf %35, %41 : vector<128x32xf32>
    %c0_47 = arith.constant 0 : index
    %c1_48 = arith.constant 1 : index
    %c2_49 = arith.constant 2 : index
    %c0_50 = arith.constant 0 : index
    %43 = vector.load %arg1[%c0_47, %c1_48, %c2_49, %c0_50] : memref<1x18x18x3xf32, #tpu.memory_space<vmem>>, vector<1x8x16x3xf32>
    %44 = vector.shape_cast %43 : vector<1x8x16x3xf32> to vector<8x16x3xf32>
    %45 = vector.shape_cast %44 : vector<8x16x3xf32> to vector<128x3xf32>
    %c5 = arith.constant 5 : index
    %c0_51 = arith.constant 0 : index
    %c0_52 = arith.constant 0 : index
    %46 = vector.load %arg2[%c5, %c0_51, %c0_52] : memref<9x3x32xf32, #tpu.memory_space<vmem>>, vector<1x3x32xf32>
    %47 = vector.shape_cast %46 : vector<1x3x32xf32> to vector<3x32xf32>
    %cst_53 = arith.constant dense<0.000000e+00> : vector<128x32xf32>
    %48 = tpu.matmul %45, %47, %cst_53 {dimension_numbers = #tpu.dot_dimension_numbers<[1], [0], [0], [1], [0, 0, 1, 1], [], []>} : vector<128x3xf32>, vector<3x32xf32>, vector<128x32xf32> -> vector<128x32xf32>
    %49 = arith.addf %42, %48 : vector<128x32xf32>
    %c0_54 = arith.constant 0 : index
    %c2_55 = arith.constant 2 : index
    %c0_56 = arith.constant 0 : index
    %c0_57 = arith.constant 0 : index
    %50 = vector.load %arg1[%c0_54, %c2_55, %c0_56, %c0_57] : memref<1x18x18x3xf32, #tpu.memory_space<vmem>>, vector<1x8x16x3xf32>
    %51 = vector.shape_cast %50 : vector<1x8x16x3xf32> to vector<8x16x3xf32>
    %52 = vector.shape_cast %51 : vector<8x16x3xf32> to vector<128x3xf32>
    %c6 = arith.constant 6 : index
    %c0_58 = arith.constant 0 : index
    %c0_59 = arith.constant 0 : index
    %53 = vector.load %arg2[%c6, %c0_58, %c0_59] : memref<9x3x32xf32, #tpu.memory_space<vmem>>, vector<1x3x32xf32>
    %54 = vector.shape_cast %53 : vector<1x3x32xf32> to vector<3x32xf32>
    %cst_60 = arith.constant dense<0.000000e+00> : vector<128x32xf32>
    %55 = tpu.matmul %52, %54, %cst_60 {dimension_numbers = #tpu.dot_dimension_numbers<[1], [0], [0], [1], [0, 0, 1, 1], [], []>} : vector<128x3xf32>, vector<3x32xf32>, vector<128x32xf32> -> vector<128x32xf32>
    %56 = arith.addf %49, %55 : vector<128x32xf32>
    %c0_61 = arith.constant 0 : index
    %c2_62 = arith.constant 2 : index
    %c1_63 = arith.constant 1 : index
    %c0_64 = arith.constant 0 : index
    %57 = vector.load %arg1[%c0_61, %c2_62, %c1_63, %c0_64] : memref<1x18x18x3xf32, #tpu.memory_space<vmem>>, vector<1x8x16x3xf32>
    %58 = vector.shape_cast %57 : vector<1x8x16x3xf32> to vector<8x16x3xf32>
    %59 = vector.shape_cast %58 : vector<8x16x3xf32> to vector<128x3xf32>
    %c7 = arith.constant 7 : index
    %c0_65 = arith.constant 0 : index
    %c0_66 = arith.constant 0 : index
    %60 = vector.load %arg2[%c7, %c0_65, %c0_66] : memref<9x3x32xf32, #tpu.memory_space<vmem>>, vector<1x3x32xf32>
    %61 = vector.shape_cast %60 : vector<1x3x32xf32> to vector<3x32xf32>
    %cst_67 = arith.constant dense<0.000000e+00> : vector<128x32xf32>
    %62 = tpu.matmul %59, %61, %cst_67 {dimension_numbers = #tpu.dot_dimension_numbers<[1], [0], [0], [1], [0, 0, 1, 1], [], []>} : vector<128x3xf32>, vector<3x32xf32>, vector<128x32xf32> -> vector<128x32xf32>
    %63 = arith.addf %56, %62 : vector<128x32xf32>
    %c0_68 = arith.constant 0 : index
    %c2_69 = arith.constant 2 : index
    %c2_70 = arith.constant 2 : index
    %c0_71 = arith.constant 0 : index
    %64 = vector.load %arg1[%c0_68, %c2_69, %c2_70, %c0_71] : memref<1x18x18x3xf32, #tpu.memory_space<vmem>>, vector<1x8x16x3xf32>
    %65 = vector.shape_cast %64 : vector<1x8x16x3xf32> to vector<8x16x3xf32>
    %66 = vector.shape_cast %65 : vector<8x16x3xf32> to vector<128x3xf32>
    %c8 = arith.constant 8 : index
    %c0_72 = arith.constant 0 : index
    %c0_73 = arith.constant 0 : index
    %67 = vector.load %arg2[%c8, %c0_72, %c0_73] : memref<9x3x32xf32, #tpu.memory_space<vmem>>, vector<1x3x32xf32>
    %68 = vector.shape_cast %67 : vector<1x3x32xf32> to vector<3x32xf32>
    %cst_74 = arith.constant dense<0.000000e+00> : vector<128x32xf32>
    %69 = tpu.matmul %66, %68, %cst_74 {dimension_numbers = #tpu.dot_dimension_numbers<[1], [0], [0], [1], [0, 0, 1, 1], [], []>} : vector<128x3xf32>, vector<3x32xf32>, vector<128x32xf32> -> vector<128x32xf32>
    %70 = arith.addf %63, %69 : vector<128x32xf32>
    %71 = vector.broadcast %2 : vector<1x32xf32> to vector<128x32xf32>
    %72 = arith.addf %70, %71 : vector<128x32xf32>
    %cst_75 = arith.constant 0.000000e+00 : f32
    %73 = vector.broadcast %cst_75 : f32 to vector<128x32xf32>
    %74 = arith.maximumf %72, %73 : vector<128x32xf32>
    %75 = vector.extract_strided_slice %74 {offsets = [0, 0], sizes = [112, 32], strides = [1, 1]} : vector<128x32xf32> to vector<112x32xf32>
    %76 = vector.extract_strided_slice %74 {offsets = [16, 0], sizes = [112, 32], strides = [1, 1]} : vector<128x32xf32> to vector<112x32xf32>
    %77 = arith.maximumf %75, %76 : vector<112x32xf32>
    %cst_76 = arith.constant dense<0.000000e+00> : vector<32x32xf32>
    %78 = tpu.matmul %4, %77, %cst_76 {dimension_numbers = #tpu.dot_dimension_numbers<[1], [0], [0], [1], [0, 0, 1, 1], [], []>} : vector<32x112xf32>, vector<112x32xf32>, vector<32x32xf32> -> vector<32x32xf32>
    %cst_77 = arith.constant dense<0.000000e+00> : vector<32x32xf32>
    %79 = tpu.matmul %6, %77, %cst_77 {dimension_numbers = #tpu.dot_dimension_numbers<[1], [0], [0], [1], [0, 0, 1, 1], [], []>} : vector<32x112xf32>, vector<112x32xf32>, vector<32x32xf32> -> vector<32x32xf32>
    %80 = arith.maximumf %78, %79 : vector<32x32xf32>
    %81 = vector.shape_cast %80 : vector<32x32xf32> to vector<4x8x32xf32>
    %c1_78 = arith.constant 1 : index
    %c1_79 = arith.constant 1 : index
    %c0_80 = arith.constant 0 : index
    %82 = vector.load %arg15[%c1_78, %c1_79, %c0_80] : memref<10x10x32xf32, #tpu.memory_space<vmem>>, vector<4x8x32xf32>
    tpu.vector_store %arg15[%c1_78, %c1_79, %c0_80], %81 {strides = array<i32>} : memref<10x10x32xf32, #tpu.memory_space<vmem>>, vector<4x8x32xf32>,
    %cst_81 = arith.constant 0.000000e+00 : f32
    %83 = vector.broadcast %cst_81 : f32 to vector<128x32xf32>
    %c0_82 = arith.constant 0 : index
    %c8_83 = arith.constant 8 : index
    %c0_84 = arith.constant 0 : index
    %c0_85 = arith.constant 0 : index
    %84 = vector.load %arg1[%c0_82, %c8_83, %c0_84, %c0_85] : memref<1x18x18x3xf32, #tpu.memory_space<vmem>>, vector<1x8x16x3xf32>
    %85 = vector.shape_cast %84 : vector<1x8x16x3xf32> to vector<8x16x3xf32>
    %86 = vector.shape_cast %85 : vector<8x16x3xf32> to vector<128x3xf32>
    %c0_86 = arith.constant 0 : index
    %c0_87 = arith.constant 0 : index
    %c0_88 = arith.constant 0 : index
    %87 = vector.load %arg2[%c0_86, %c0_87, %c0_88] : memref<9x3x32xf32, #tpu.memory_space<vmem>>, vector<1x3x32xf32>
    %88 = vector.shape_cast %87 : vector<1x3x32xf32> to vector<3x32xf32>
    %cst_89 = arith.constant dense<0.000000e+00> : vector<128x32xf32>
    %89 = tpu.matmul %86, %88, %cst_89 {dimension_numbers = #tpu.dot_dimension_numbers<[1], [0], [0], [1], [0, 0, 1, 1], [], []>} : vector<128x3xf32>, vector<3x32xf32>, vector<128x32xf32> -> vector<128x32xf32>
    %90 = arith.addf %83, %89 : vector<128x32xf32>
    %c0_90 = arith.constant 0 : index
    %c8_91 = arith.constant 8 : index
    %c1_92 = arith.constant 1 : index
    %c0_93 = arith.constant 0 : index
    %91 = vector.load %arg1[%c0_90, %c8_91, %c1_92, %c0_93] : memref<1x18x18x3xf32, #tpu.memory_space<vmem>>, vector<1x8x16x3xf32>
    %92 = vector.shape_cast %91 : vector<1x8x16x3xf32> to vector<8x16x3xf32>
    %93 = vector.shape_cast %92 : vector<8x16x3xf32> to vector<128x3xf32>
    %c1_94 = arith.constant 1 : index
    %c0_95 = arith.constant 0 : index
    %c0_96 = arith.constant 0 : index
    %94 = vector.load %arg2[%c1_94, %c0_95, %c0_96] : memref<9x3x32xf32, #tpu.memory_space<vmem>>, vector<1x3x32xf32>
    %95 = vector.shape_cast %94 : vector<1x3x32xf32> to vector<3x32xf32>
    %cst_97 = arith.constant dense<0.000000e+00> : vector<128x32xf32>
    %96 = tpu.matmul %93, %95, %cst_97 {dimension_numbers = #tpu.dot_dimension_numbers<[1], [0], [0], [1], [0, 0, 1, 1], [], []>} : vector<128x3xf32>, vector<3x32xf32>, vector<128x32xf32> -> vector<128x32xf32>
    %97 = arith.addf %90, %96 : vector<128x32xf32>
    %c0_98 = arith.constant 0 : index
    %c8_99 = arith.constant 8 : index
    %c2_100 = arith.constant 2 : index
    %c0_101 = arith.constant 0 : index
    %98 = vector.load %arg1[%c0_98, %c8_99, %c2_100, %c0_101] : memref<1x18x18x3xf32, #tpu.memory_space<vmem>>, vector<1x8x16x3xf32>
    %99 = vector.shape_cast %98 : vector<1x8x16x3xf32> to vector<8x16x3xf32>
    %100 = vector.shape_cast %99 : vector<8x16x3xf32> to vector<128x3xf32>
    %c2_102 = arith.constant 2 : index
    %c0_103 = arith.constant 0 : index
    %c0_104 = arith.constant 0 : index
    %101 = vector.load %arg2[%c2_102, %c0_103, %c0_104] : memref<9x3x32xf32, #tpu.memory_space<vmem>>, vector<1x3x32xf32>
    %102 = vector.shape_cast %101 : vector<1x3x32xf32> to vector<3x32xf32>
    %cst_105 = arith.constant dense<0.000000e+00> : vector<128x32xf32>
    %103 = tpu.matmul %100, %102, %cst_105 {dimension_numbers = #tpu.dot_dimension_numbers<[1], [0], [0], [1], [0, 0, 1, 1], [], []>} : vector<128x3xf32>, vector<3x32xf32>, vector<128x32xf32> -> vector<128x32xf32>
    %104 = arith.addf %97, %103 : vector<128x32xf32>
    %c0_106 = arith.constant 0 : index
    %c9 = arith.constant 9 : index
    %c0_107 = arith.constant 0 : index
    %c0_108 = arith.constant 0 : index
    %105 = vector.load %arg1[%c0_106, %c9, %c0_107, %c0_108] : memref<1x18x18x3xf32, #tpu.memory_space<vmem>>, vector<1x8x16x3xf32>
    %106 = vector.shape_cast %105 : vector<1x8x16x3xf32> to vector<8x16x3xf32>
    %107 = vector.shape_cast %106 : vector<8x16x3xf32> to vector<128x3xf32>
    %c3_109 = arith.constant 3 : index
    %c0_110 = arith.constant 0 : index
    %c0_111 = arith.constant 0 : index
    %108 = vector.load %arg2[%c3_109, %c0_110, %c0_111] : memref<9x3x32xf32, #tpu.memory_space<vmem>>, vector<1x3x32xf32>
    %109 = vector.shape_cast %108 : vector<1x3x32xf32> to vector<3x32xf32>
    %cst_112 = arith.constant dense<0.000000e+00> : vector<128x32xf32>
    %110 = tpu.matmul %107, %109, %cst_112 {dimension_numbers = #tpu.dot_dimension_numbers<[1], [0], [0], [1], [0, 0, 1, 1], [], []>} : vector<128x3xf32>, vector<3x32xf32>, vector<128x32xf32> -> vector<128x32xf32>
    %111 = arith.addf %104, %110 : vector<128x32xf32>
    %c0_113 = arith.constant 0 : index
    %c9_114 = arith.constant 9 : index
    %c1_115 = arith.constant 1 : index
    %c0_116 = arith.constant 0 : index
    %112 = vector.load %arg1[%c0_113, %c9_114, %c1_115, %c0_116] : memref<1x18x18x3xf32, #tpu.memory_space<vmem>>, vector<1x8x16x3xf32>
    %113 = vector.shape_cast %112 : vector<1x8x16x3xf32> to vector<8x16x3xf32>
    %114 = vector.shape_cast %113 : vector<8x16x3xf32> to vector<128x3xf32>
    %c4_117 = arith.constant 4 : index
    %c0_118 = arith.constant 0 : index
    %c0_119 = arith.constant 0 : index
    %115 = vector.load %arg2[%c4_117, %c0_118, %c0_119] : memref<9x3x32xf32, #tpu.memory_space<vmem>>, vector<1x3x32xf32>
    %116 = vector.shape_cast %115 : vector<1x3x32xf32> to vector<3x32xf32>
    %cst_120 = arith.constant dense<0.000000e+00> : vector<128x32xf32>
    %117 = tpu.matmul %114, %116, %cst_120 {dimension_numbers = #tpu.dot_dimension_numbers<[1], [0], [0], [1], [0, 0, 1, 1], [], []>} : vector<128x3xf32>, vector<3x32xf32>, vector<128x32xf32> -> vector<128x32xf32>
    %118 = arith.addf %111, %117 : vector<128x32xf32>
    %c0_121 = arith.constant 0 : index
    %c9_122 = arith.constant 9 : index
    %c2_123 = arith.constant 2 : index
    %c0_124 = arith.constant 0 : index
    %119 = vector.load %arg1[%c0_121, %c9_122, %c2_123, %c0_124] : memref<1x18x18x3xf32, #tpu.memory_space<vmem>>, vector<1x8x16x3xf32>
    %120 = vector.shape_cast %119 : vector<1x8x16x3xf32> to vector<8x16x3xf32>
    %121 = vector.shape_cast %120 : vector<8x16x3xf32> to vector<128x3xf32>
    %c5_125 = arith.constant 5 : index
    %c0_126 = arith.constant 0 : index
    %c0_127 = arith.constant 0 : index
    %122 = vector.load %arg2[%c5_125, %c0_126, %c0_127] : memref<9x3x32xf32, #tpu.memory_space<vmem>>, vector<1x3x32xf32>
    %123 = vector.shape_cast %122 : vector<1x3x32xf32> to vector<3x32xf32>
    %cst_128 = arith.constant dense<0.000000e+00> : vector<128x32xf32>
    %124 = tpu.matmul %121, %123, %cst_128 {dimension_numbers = #tpu.dot_dimension_numbers<[1], [0], [0], [1], [0, 0, 1, 1], [], []>} : vector<128x3xf32>, vector<3x32xf32>, vector<128x32xf32> -> vector<128x32xf32>
    %125 = arith.addf %118, %124 : vector<128x32xf32>
    %c0_129 = arith.constant 0 : index
    %c10 = arith.constant 10 : index
    %c0_130 = arith.constant 0 : index
    %c0_131 = arith.constant 0 : index
    %126 = vector.load %arg1[%c0_129, %c10, %c0_130, %c0_131] : memref<1x18x18x3xf32, #tpu.memory_space<vmem>>, vector<1x8x16x3xf32>
    %127 = vector.shape_cast %126 : vector<1x8x16x3xf32> to vector<8x16x3xf32>
    %128 = vector.shape_cast %127 : vector<8x16x3xf32> to vector<128x3xf32>
    %c6_132 = arith.constant 6 : index
    %c0_133 = arith.constant 0 : index
    %c0_134 = arith.constant 0 : index
    %129 = vector.load %arg2[%c6_132, %c0_133, %c0_134] : memref<9x3x32xf32, #tpu.memory_space<vmem>>, vector<1x3x32xf32>
    %130 = vector.shape_cast %129 : vector<1x3x32xf32> to vector<3x32xf32>
    %cst_135 = arith.constant dense<0.000000e+00> : vector<128x32xf32>
    %131 = tpu.matmul %128, %130, %cst_135 {dimension_numbers = #tpu.dot_dimension_numbers<[1], [0], [0], [1], [0, 0, 1, 1], [], []>} : vector<128x3xf32>, vector<3x32xf32>, vector<128x32xf32> -> vector<128x32xf32>
    %132 = arith.addf %125, %131 : vector<128x32xf32>
    %c0_136 = arith.constant 0 : index
    %c10_137 = arith.constant 10 : index
    %c1_138 = arith.constant 1 : index
    %c0_139 = arith.constant 0 : index
    %133 = vector.load %arg1[%c0_136, %c10_137, %c1_138, %c0_139] : memref<1x18x18x3xf32, #tpu.memory_space<vmem>>, vector<1x8x16x3xf32>
    %134 = vector.shape_cast %133 : vector<1x8x16x3xf32> to vector<8x16x3xf32>
    %135 = vector.shape_cast %134 : vector<8x16x3xf32> to vector<128x3xf32>
    %c7_140 = arith.constant 7 : index
    %c0_141 = arith.constant 0 : index
    %c0_142 = arith.constant 0 : index
    %136 = vector.load %arg2[%c7_140, %c0_141, %c0_142] : memref<9x3x32xf32, #tpu.memory_space<vmem>>, vector<1x3x32xf32>
    %137 = vector.shape_cast %136 : vector<1x3x32xf32> to vector<3x32xf32>
    %cst_143 = arith.constant dense<0.000000e+00> : vector<128x32xf32>
    %138 = tpu.matmul %135, %137, %cst_143 {dimension_numbers = #tpu.dot_dimension_numbers<[1], [0], [0], [1], [0, 0, 1, 1], [], []>} : vector<128x3xf32>, vector<3x32xf32>, vector<128x32xf32> -> vector<128x32xf32>
    %139 = arith.addf %132, %138 : vector<128x32xf32>
    %c0_144 = arith.constant 0 : index
    %c10_145 = arith.constant 10 : index
    %c2_146 = arith.constant 2 : index
    %c0_147 = arith.constant 0 : index
    %140 = vector.load %arg1[%c0_144, %c10_145, %c2_146, %c0_147] : memref<1x18x18x3xf32, #tpu.memory_space<vmem>>, vector<1x8x16x3xf32>
    %141 = vector.shape_cast %140 : vector<1x8x16x3xf32> to vector<8x16x3xf32>
    %142 = vector.shape_cast %141 : vector<8x16x3xf32> to vector<128x3xf32>
    %c8_148 = arith.constant 8 : index
    %c0_149 = arith.constant 0 : index
    %c0_150 = arith.constant 0 : index
    %143 = vector.load %arg2[%c8_148, %c0_149, %c0_150] : memref<9x3x32xf32, #tpu.memory_space<vmem>>, vector<1x3x32xf32>
    %144 = vector.shape_cast %143 : vector<1x3x32xf32> to vector<3x32xf32>
    %cst_151 = arith.constant dense<0.000000e+00> : vector<128x32xf32>
    %145 = tpu.matmul %142, %144, %cst_151 {dimension_numbers = #tpu.dot_dimension_numbers<[1], [0], [0], [1], [0, 0, 1, 1], [], []>} : vector<128x3xf32>, vector<3x32xf32>, vector<128x32xf32> -> vector<128x32xf32>
    %146 = arith.addf %139, %145 : vector<128x32xf32>
    %147 = vector.broadcast %2 : vector<1x32xf32> to vector<128x32xf32>
    %148 = arith.addf %146, %147 : vector<128x32xf32>
    %cst_152 = arith.constant 0.000000e+00 : f32
    %149 = vector.broadcast %cst_152 : f32 to vector<128x32xf32>
    %150 = arith.maximumf %148, %149 : vector<128x32xf32>
    %151 = vector.extract_strided_slice %150 {offsets = [0, 0], sizes = [112, 32], strides = [1, 1]} : vector<128x32xf32> to vector<112x32xf32>
    %152 = vector.extract_strided_slice %150 {offsets = [16, 0], sizes = [112, 32], strides = [1, 1]} : vector<128x32xf32> to vector<112x32xf32>
    %153 = arith.maximumf %151, %152 : vector<112x32xf32>
    %cst_153 = arith.constant dense<0.000000e+00> : vector<32x32xf32>
    %154 = tpu.matmul %4, %153, %cst_153 {dimension_numbers = #tpu.dot_dimension_numbers<[1], [0], [0], [1], [0, 0, 1, 1], [], []>} : vector<32x112xf32>, vector<112x32xf32>, vector<32x32xf32> -> vector<32x32xf32>
    %cst_154 = arith.constant dense<0.000000e+00> : vector<32x32xf32>
    %155 = tpu.matmul %6, %153, %cst_154 {dimension_numbers = #tpu.dot_dimension_numbers<[1], [0], [0], [1], [0, 0, 1, 1], [], []>} : vector<32x112xf32>, vector<112x32xf32>, vector<32x32xf32> -> vector<32x32xf32>
    %156 = arith.maximumf %154, %155 : vector<32x32xf32>
    %157 = vector.shape_cast %156 : vector<32x32xf32> to vector<4x8x32xf32>
    %c5_155 = arith.constant 5 : index
    %c1_156 = arith.constant 1 : index
    %c0_157 = arith.constant 0 : index
    %158 = vector.load %arg15[%c5_155, %c1_156, %c0_157] : memref<10x10x32xf32, #tpu.memory_space<vmem>>, vector<4x8x32xf32>
    tpu.vector_store %arg15[%c5_155, %c1_156, %c0_157], %157 {strides = array<i32>} : memref<10x10x32xf32, #tpu.memory_space<vmem>>, vector<4x8x32xf32>,
    %cst_158 = arith.constant 0.000000e+00 : f32
    %159 = vector.broadcast %cst_158 : f32 to vector<64x64xf32>
    %c0_159 = arith.constant 0 : index
    %c0_160 = arith.constant 0 : index
    %c0_161 = arith.constant 0 : index
    %160 = vector.load %arg15[%c0_159, %c0_160, %c0_161] : memref<10x10x32xf32, #tpu.memory_space<vmem>>, vector<8x8x32xf32>
    %161 = vector.shape_cast %160 : vector<8x8x32xf32> to vector<64x32xf32>
    %c0_162 = arith.constant 0 : index
    %c0_163 = arith.constant 0 : index
    %c0_164 = arith.constant 0 : index
    %162 = vector.load %arg4[%c0_162, %c0_163, %c0_164] : memref<9x32x64xf32, #tpu.memory_space<vmem>>, vector<1x32x64xf32>
    %163 = vector.shape_cast %162 : vector<1x32x64xf32> to vector<32x64xf32>
    %cst_165 = arith.constant dense<0.000000e+00> : vector<64x64xf32>
    %164 = tpu.matmul %161, %163, %cst_165 {dimension_numbers = #tpu.dot_dimension_numbers<[1], [0], [0], [1], [0, 0, 1, 1], [], []>} : vector<64x32xf32>, vector<32x64xf32>, vector<64x64xf32> -> vector<64x64xf32>
    %165 = arith.addf %159, %164 : vector<64x64xf32>
    %c0_166 = arith.constant 0 : index
    %c1_167 = arith.constant 1 : index
    %c0_168 = arith.constant 0 : index
    %166 = vector.load %arg15[%c0_166, %c1_167, %c0_168] : memref<10x10x32xf32, #tpu.memory_space<vmem>>, vector<8x8x32xf32>
    %167 = vector.shape_cast %166 : vector<8x8x32xf32> to vector<64x32xf32>
    %c1_169 = arith.constant 1 : index
    %c0_170 = arith.constant 0 : index
    %c0_171 = arith.constant 0 : index
    %168 = vector.load %arg4[%c1_169, %c0_170, %c0_171] : memref<9x32x64xf32, #tpu.memory_space<vmem>>, vector<1x32x64xf32>
    %169 = vector.shape_cast %168 : vector<1x32x64xf32> to vector<32x64xf32>
    %cst_172 = arith.constant dense<0.000000e+00> : vector<64x64xf32>
    %170 = tpu.matmul %167, %169, %cst_172 {dimension_numbers = #tpu.dot_dimension_numbers<[1], [0], [0], [1], [0, 0, 1, 1], [], []>} : vector<64x32xf32>, vector<32x64xf32>, vector<64x64xf32> -> vector<64x64xf32>
    %171 = arith.addf %165, %170 : vector<64x64xf32>
    %c0_173 = arith.constant 0 : index
    %c2_174 = arith.constant 2 : index
    %c0_175 = arith.constant 0 : index
    %172 = vector.load %arg15[%c0_173, %c2_174, %c0_175] : memref<10x10x32xf32, #tpu.memory_space<vmem>>, vector<8x8x32xf32>
    %173 = vector.shape_cast %172 : vector<8x8x32xf32> to vector<64x32xf32>
    %c2_176 = arith.constant 2 : index
    %c0_177 = arith.constant 0 : index
    %c0_178 = arith.constant 0 : index
    %174 = vector.load %arg4[%c2_176, %c0_177, %c0_178] : memref<9x32x64xf32, #tpu.memory_space<vmem>>, vector<1x32x64xf32>
    %175 = vector.shape_cast %174 : vector<1x32x64xf32> to vector<32x64xf32>
    %cst_179 = arith.constant dense<0.000000e+00> : vector<64x64xf32>
    %176 = tpu.matmul %173, %175, %cst_179 {dimension_numbers = #tpu.dot_dimension_numbers<[1], [0], [0], [1], [0, 0, 1, 1], [], []>} : vector<64x32xf32>, vector<32x64xf32>, vector<64x64xf32> -> vector<64x64xf32>
    %177 = arith.addf %171, %176 : vector<64x64xf32>
    %c1_180 = arith.constant 1 : index
    %c0_181 = arith.constant 0 : index
    %c0_182 = arith.constant 0 : index
    %178 = vector.load %arg15[%c1_180, %c0_181, %c0_182] : memref<10x10x32xf32, #tpu.memory_space<vmem>>, vector<8x8x32xf32>
    %179 = vector.shape_cast %178 : vector<8x8x32xf32> to vector<64x32xf32>
    %c3_183 = arith.constant 3 : index
    %c0_184 = arith.constant 0 : index
    %c0_185 = arith.constant 0 : index
    %180 = vector.load %arg4[%c3_183, %c0_184, %c0_185] : memref<9x32x64xf32, #tpu.memory_space<vmem>>, vector<1x32x64xf32>
    %181 = vector.shape_cast %180 : vector<1x32x64xf32> to vector<32x64xf32>
    %cst_186 = arith.constant dense<0.000000e+00> : vector<64x64xf32>
    %182 = tpu.matmul %179, %181, %cst_186 {dimension_numbers = #tpu.dot_dimension_numbers<[1], [0], [0], [1], [0, 0, 1, 1], [], []>} : vector<64x32xf32>, vector<32x64xf32>, vector<64x64xf32> -> vector<64x64xf32>
    %183 = arith.addf %177, %182 : vector<64x64xf32>
    %c1_187 = arith.constant 1 : index
    %c1_188 = arith.constant 1 : index
    %c0_189 = arith.constant 0 : index
    %184 = vector.load %arg15[%c1_187, %c1_188, %c0_189] : memref<10x10x32xf32, #tpu.memory_space<vmem>>, vector<8x8x32xf32>
    %185 = vector.shape_cast %184 : vector<8x8x32xf32> to vector<64x32xf32>
    %c4_190 = arith.constant 4 : index
    %c0_191 = arith.constant 0 : index
    %c0_192 = arith.constant 0 : index
    %186 = vector.load %arg4[%c4_190, %c0_191, %c0_192] : memref<9x32x64xf32, #tpu.memory_space<vmem>>, vector<1x32x64xf32>
    %187 = vector.shape_cast %186 : vector<1x32x64xf32> to vector<32x64xf32>
    %cst_193 = arith.constant dense<0.000000e+00> : vector<64x64xf32>
    %188 = tpu.matmul %185, %187, %cst_193 {dimension_numbers = #tpu.dot_dimension_numbers<[1], [0], [0], [1], [0, 0, 1, 1], [], []>} : vector<64x32xf32>, vector<32x64xf32>, vector<64x64xf32> -> vector<64x64xf32>
    %189 = arith.addf %183, %188 : vector<64x64xf32>
    %c1_194 = arith.constant 1 : index
    %c2_195 = arith.constant 2 : index
    %c0_196 = arith.constant 0 : index
    %190 = vector.load %arg15[%c1_194, %c2_195, %c0_196] : memref<10x10x32xf32, #tpu.memory_space<vmem>>, vector<8x8x32xf32>
    %191 = vector.shape_cast %190 : vector<8x8x32xf32> to vector<64x32xf32>
    %c5_197 = arith.constant 5 : index
    %c0_198 = arith.constant 0 : index
    %c0_199 = arith.constant 0 : index
    %192 = vector.load %arg4[%c5_197, %c0_198, %c0_199] : memref<9x32x64xf32, #tpu.memory_space<vmem>>, vector<1x32x64xf32>
    %193 = vector.shape_cast %192 : vector<1x32x64xf32> to vector<32x64xf32>
    %cst_200 = arith.constant dense<0.000000e+00> : vector<64x64xf32>
    %194 = tpu.matmul %191, %193, %cst_200 {dimension_numbers = #tpu.dot_dimension_numbers<[1], [0], [0], [1], [0, 0, 1, 1], [], []>} : vector<64x32xf32>, vector<32x64xf32>, vector<64x64xf32> -> vector<64x64xf32>
    %195 = arith.addf %189, %194 : vector<64x64xf32>
    %c2_201 = arith.constant 2 : index
    %c0_202 = arith.constant 0 : index
    %c0_203 = arith.constant 0 : index
    %196 = vector.load %arg15[%c2_201, %c0_202, %c0_203] : memref<10x10x32xf32, #tpu.memory_space<vmem>>, vector<8x8x32xf32>
    %197 = vector.shape_cast %196 : vector<8x8x32xf32> to vector<64x32xf32>
    %c6_204 = arith.constant 6 : index
    %c0_205 = arith.constant 0 : index
    %c0_206 = arith.constant 0 : index
    %198 = vector.load %arg4[%c6_204, %c0_205, %c0_206] : memref<9x32x64xf32, #tpu.memory_space<vmem>>, vector<1x32x64xf32>
    %199 = vector.shape_cast %198 : vector<1x32x64xf32> to vector<32x64xf32>
    %cst_207 = arith.constant dense<0.000000e+00> : vector<64x64xf32>
    %200 = tpu.matmul %197, %199, %cst_207 {dimension_numbers = #tpu.dot_dimension_numbers<[1], [0], [0], [1], [0, 0, 1, 1], [], []>} : vector<64x32xf32>, vector<32x64xf32>, vector<64x64xf32> -> vector<64x64xf32>
    %201 = arith.addf %195, %200 : vector<64x64xf32>
    %c2_208 = arith.constant 2 : index
    %c1_209 = arith.constant 1 : index
    %c0_210 = arith.constant 0 : index
    %202 = vector.load %arg15[%c2_208, %c1_209, %c0_210] : memref<10x10x32xf32, #tpu.memory_space<vmem>>, vector<8x8x32xf32>
    %203 = vector.shape_cast %202 : vector<8x8x32xf32> to vector<64x32xf32>
    %c7_211 = arith.constant 7 : index
    %c0_212 = arith.constant 0 : index
    %c0_213 = arith.constant 0 : index
    %204 = vector.load %arg4[%c7_211, %c0_212, %c0_213] : memref<9x32x64xf32, #tpu.memory_space<vmem>>, vector<1x32x64xf32>
    %205 = vector.shape_cast %204 : vector<1x32x64xf32> to vector<32x64xf32>
    %cst_214 = arith.constant dense<0.000000e+00> : vector<64x64xf32>
    %206 = tpu.matmul %203, %205, %cst_214 {dimension_numbers = #tpu.dot_dimension_numbers<[1], [0], [0], [1], [0, 0, 1, 1], [], []>} : vector<64x32xf32>, vector<32x64xf32>, vector<64x64xf32> -> vector<64x64xf32>
    %207 = arith.addf %201, %206 : vector<64x64xf32>
    %c2_215 = arith.constant 2 : index
    %c2_216 = arith.constant 2 : index
    %c0_217 = arith.constant 0 : index
    %208 = vector.load %arg15[%c2_215, %c2_216, %c0_217] : memref<10x10x32xf32, #tpu.memory_space<vmem>>, vector<8x8x32xf32>
    %209 = vector.shape_cast %208 : vector<8x8x32xf32> to vector<64x32xf32>
    %c8_218 = arith.constant 8 : index
    %c0_219 = arith.constant 0 : index
    %c0_220 = arith.constant 0 : index
    %210 = vector.load %arg4[%c8_218, %c0_219, %c0_220] : memref<9x32x64xf32, #tpu.memory_space<vmem>>, vector<1x32x64xf32>
    %211 = vector.shape_cast %210 : vector<1x32x64xf32> to vector<32x64xf32>
    %cst_221 = arith.constant dense<0.000000e+00> : vector<64x64xf32>
    %212 = tpu.matmul %209, %211, %cst_221 {dimension_numbers = #tpu.dot_dimension_numbers<[1], [0], [0], [1], [0, 0, 1, 1], [], []>} : vector<64x32xf32>, vector<32x64xf32>, vector<64x64xf32> -> vector<64x64xf32>
    %213 = arith.addf %207, %212 : vector<64x64xf32>
    %c0_222 = arith.constant 0 : index
    %c0_223 = arith.constant 0 : index
    %214 = vector.load %arg5[%c0_222, %c0_223] : memref<1x64xf32, #tpu.memory_space<vmem>>, vector<1x64xf32>
    %215 = vector.broadcast %214 : vector<1x64xf32> to vector<64x64xf32>
    %216 = arith.addf %213, %215 : vector<64x64xf32>
    %cst_224 = arith.constant 0.000000e+00 : f32
    %217 = vector.broadcast %cst_224 : f32 to vector<64x64xf32>
    %218 = arith.maximumf %216, %217 : vector<64x64xf32>
    %219 = vector.extract_strided_slice %218 {offsets = [0, 0], sizes = [56, 64], strides = [1, 1]} : vector<64x64xf32> to vector<56x64xf32>
    %220 = vector.extract_strided_slice %218 {offsets = [8, 0], sizes = [56, 64], strides = [1, 1]} : vector<64x64xf32> to vector<56x64xf32>
    %221 = arith.maximumf %219, %220 : vector<56x64xf32>
    %c0_225 = arith.constant 0 : index
    %c0_226 = arith.constant 0 : index
    %c0_227 = arith.constant 0 : index
    %222 = vector.load %arg7[%c0_225, %c0_226, %c0_227] : memref<2x16x56xf32, #tpu.memory_space<vmem>>, vector<1x16x56xf32>
    %223 = vector.shape_cast %222 : vector<1x16x56xf32> to vector<16x56xf32>
    %cst_228 = arith.constant dense<0.000000e+00> : vector<16x64xf32>
    %224 = tpu.matmul %223, %221, %cst_228 {dimension_numbers = #tpu.dot_dimension_numbers<[1], [0], [0], [1], [0, 0, 1, 1], [], []>} : vector<16x56xf32>, vector<56x64xf32>, vector<16x64xf32> -> vector<16x64xf32>
    %c1_229 = arith.constant 1 : index
    %c0_230 = arith.constant 0 : index
    %c0_231 = arith.constant 0 : index
    %225 = vector.load %arg7[%c1_229, %c0_230, %c0_231] : memref<2x16x56xf32, #tpu.memory_space<vmem>>, vector<1x16x56xf32>
    %226 = vector.shape_cast %225 : vector<1x16x56xf32> to vector<16x56xf32>
    %cst_232 = arith.constant dense<0.000000e+00> : vector<16x64xf32>
    %227 = tpu.matmul %226, %221, %cst_232 {dimension_numbers = #tpu.dot_dimension_numbers<[1], [0], [0], [1], [0, 0, 1, 1], [], []>} : vector<16x56xf32>, vector<56x64xf32>, vector<16x64xf32> -> vector<16x64xf32>
    %228 = arith.maximumf %224, %227 : vector<16x64xf32>
    %c0_233 = arith.constant 0 : index
    %c0_234 = arith.constant 0 : index
    %229 = vector.load %arg8[%c0_233, %c0_234] : memref<64x32xf32, #tpu.memory_space<vmem>>, vector<64x32xf32>
    %cst_235 = arith.constant dense<0.000000e+00> : vector<16x32xf32>
    %230 = tpu.matmul %228, %229, %cst_235 {dimension_numbers = #tpu.dot_dimension_numbers<[1], [0], [0], [1], [0, 0, 1, 1], [], []>} : vector<16x64xf32>, vector<64x32xf32>, vector<16x32xf32> -> vector<16x32xf32>
    %c0_236 = arith.constant 0 : index
    %c0_237 = arith.constant 0 : index
    %231 = vector.load %arg9[%c0_236, %c0_237] : memref<1x32xf32, #tpu.memory_space<vmem>>, vector<1x32xf32>
    %232 = vector.broadcast %231 : vector<1x32xf32> to vector<16x32xf32>
    %233 = arith.addf %230, %232 : vector<16x32xf32>
    %c0_238 = arith.constant 0 : index
    %c0_239 = arith.constant 0 : index
    %234 = vector.load %arg10[%c0_238, %c0_239] : memref<16x16xf32, #tpu.memory_space<vmem>>, vector<16x16xf32>
    %cst_240 = arith.constant dense<0.000000e+00> : vector<16x32xf32>
    %235 = tpu.matmul %234, %233, %cst_240 {dimension_numbers = #tpu.dot_dimension_numbers<[1], [0], [0], [1], [0, 0, 1, 1], [], []>} : vector<16x16xf32>, vector<16x32xf32>, vector<16x32xf32> -> vector<16x32xf32>
    %c0_241 = arith.constant 0 : index
    %c0_242 = arith.constant 0 : index
    %236 = vector.load %arg11[%c0_241, %c0_242] : memref<16x32xf32, #tpu.memory_space<vmem>>, vector<16x32xf32>
    %237 = arith.addf %235, %236 : vector<16x32xf32>
    %cst_243 = arith.constant 0.000000e+00 : f32
    %238 = vector.broadcast %cst_243 : f32 to vector<16x32xf32>
    %239 = arith.maximumf %237, %238 : vector<16x32xf32>
    %c0_244 = arith.constant 0 : index
    %c0_245 = arith.constant 0 : index
    %240 = vector.load %arg13[%c0_244, %c0_245] : memref<1x128xf32, #tpu.memory_space<vmem>>, vector<1x128xf32>
    %241 = vector.extract_strided_slice %239 {offsets = [0, 0], sizes = [1, 32], strides = [1, 1]} : vector<16x32xf32> to vector<1x32xf32>
    %c0_246 = arith.constant 0 : index
    %c0_247 = arith.constant 0 : index
    %242 = vector.load %arg12[%c0_246, %c0_247] : memref<512x128xf32, #tpu.memory_space<vmem>>, vector<32x128xf32>
    %cst_248 = arith.constant dense<0.000000e+00> : vector<1x128xf32>
    %243 = tpu.matmul %241, %242, %cst_248 {dimension_numbers = #tpu.dot_dimension_numbers<[1], [0], [0], [1], [0, 0, 1, 1], [], []>} : vector<1x32xf32>, vector<32x128xf32>, vector<1x128xf32> -> vector<1x128xf32>
    %244 = arith.addf %240, %243 : vector<1x128xf32>
    %245 = vector.extract_strided_slice %239 {offsets = [1, 0], sizes = [1, 32], strides = [1, 1]} : vector<16x32xf32> to vector<1x32xf32>
    %c32 = arith.constant 32 : index
    %c0_249 = arith.constant 0 : index
    %246 = vector.load %arg12[%c32, %c0_249] : memref<512x128xf32, #tpu.memory_space<vmem>>, vector<32x128xf32>
    %cst_250 = arith.constant dense<0.000000e+00> : vector<1x128xf32>
    %247 = tpu.matmul %245, %246, %cst_250 {dimension_numbers = #tpu.dot_dimension_numbers<[1], [0], [0], [1], [0, 0, 1, 1], [], []>} : vector<1x32xf32>, vector<32x128xf32>, vector<1x128xf32> -> vector<1x128xf32>
    %248 = arith.addf %244, %247 : vector<1x128xf32>
    %249 = vector.extract_strided_slice %239 {offsets = [2, 0], sizes = [1, 32], strides = [1, 1]} : vector<16x32xf32> to vector<1x32xf32>
    %c64 = arith.constant 64 : index
    %c0_251 = arith.constant 0 : index
    %250 = vector.load %arg12[%c64, %c0_251] : memref<512x128xf32, #tpu.memory_space<vmem>>, vector<32x128xf32>
    %cst_252 = arith.constant dense<0.000000e+00> : vector<1x128xf32>
    %251 = tpu.matmul %249, %250, %cst_252 {dimension_numbers = #tpu.dot_dimension_numbers<[1], [0], [0], [1], [0, 0, 1, 1], [], []>} : vector<1x32xf32>, vector<32x128xf32>, vector<1x128xf32> -> vector<1x128xf32>
    %252 = arith.addf %248, %251 : vector<1x128xf32>
    %253 = vector.extract_strided_slice %239 {offsets = [3, 0], sizes = [1, 32], strides = [1, 1]} : vector<16x32xf32> to vector<1x32xf32>
    %c96 = arith.constant 96 : index
    %c0_253 = arith.constant 0 : index
    %254 = vector.load %arg12[%c96, %c0_253] : memref<512x128xf32, #tpu.memory_space<vmem>>, vector<32x128xf32>
    %cst_254 = arith.constant dense<0.000000e+00> : vector<1x128xf32>
    %255 = tpu.matmul %253, %254, %cst_254 {dimension_numbers = #tpu.dot_dimension_numbers<[1], [0], [0], [1], [0, 0, 1, 1], [], []>} : vector<1x32xf32>, vector<32x128xf32>, vector<1x128xf32> -> vector<1x128xf32>
    %256 = arith.addf %252, %255 : vector<1x128xf32>
    %257 = vector.extract_strided_slice %239 {offsets = [4, 0], sizes = [1, 32], strides = [1, 1]} : vector<16x32xf32> to vector<1x32xf32>
    %c128 = arith.constant 128 : index
    %c0_255 = arith.constant 0 : index
    %258 = vector.load %arg12[%c128, %c0_255] : memref<512x128xf32, #tpu.memory_space<vmem>>, vector<32x128xf32>
    %cst_256 = arith.constant dense<0.000000e+00> : vector<1x128xf32>
    %259 = tpu.matmul %257, %258, %cst_256 {dimension_numbers = #tpu.dot_dimension_numbers<[1], [0], [0], [1], [0, 0, 1, 1], [], []>} : vector<1x32xf32>, vector<32x128xf32>, vector<1x128xf32> -> vector<1x128xf32>
    %260 = arith.addf %256, %259 : vector<1x128xf32>
    %261 = vector.extract_strided_slice %239 {offsets = [5, 0], sizes = [1, 32], strides = [1, 1]} : vector<16x32xf32> to vector<1x32xf32>
    %c160 = arith.constant 160 : index
    %c0_257 = arith.constant 0 : index
    %262 = vector.load %arg12[%c160, %c0_257] : memref<512x128xf32, #tpu.memory_space<vmem>>, vector<32x128xf32>
    %cst_258 = arith.constant dense<0.000000e+00> : vector<1x128xf32>
    %263 = tpu.matmul %261, %262, %cst_258 {dimension_numbers = #tpu.dot_dimension_numbers<[1], [0], [0], [1], [0, 0, 1, 1], [], []>} : vector<1x32xf32>, vector<32x128xf32>, vector<1x128xf32> -> vector<1x128xf32>
    %264 = arith.addf %260, %263 : vector<1x128xf32>
    %265 = vector.extract_strided_slice %239 {offsets = [6, 0], sizes = [1, 32], strides = [1, 1]} : vector<16x32xf32> to vector<1x32xf32>
    %c192 = arith.constant 192 : index
    %c0_259 = arith.constant 0 : index
    %266 = vector.load %arg12[%c192, %c0_259] : memref<512x128xf32, #tpu.memory_space<vmem>>, vector<32x128xf32>
    %cst_260 = arith.constant dense<0.000000e+00> : vector<1x128xf32>
    %267 = tpu.matmul %265, %266, %cst_260 {dimension_numbers = #tpu.dot_dimension_numbers<[1], [0], [0], [1], [0, 0, 1, 1], [], []>} : vector<1x32xf32>, vector<32x128xf32>, vector<1x128xf32> -> vector<1x128xf32>
    %268 = arith.addf %264, %267 : vector<1x128xf32>
    %269 = vector.extract_strided_slice %239 {offsets = [7, 0], sizes = [1, 32], strides = [1, 1]} : vector<16x32xf32> to vector<1x32xf32>
    %c224 = arith.constant 224 : index
    %c0_261 = arith.constant 0 : index
    %270 = vector.load %arg12[%c224, %c0_261] : memref<512x128xf32, #tpu.memory_space<vmem>>, vector<32x128xf32>
    %cst_262 = arith.constant dense<0.000000e+00> : vector<1x128xf32>
    %271 = tpu.matmul %269, %270, %cst_262 {dimension_numbers = #tpu.dot_dimension_numbers<[1], [0], [0], [1], [0, 0, 1, 1], [], []>} : vector<1x32xf32>, vector<32x128xf32>, vector<1x128xf32> -> vector<1x128xf32>
    %272 = arith.addf %268, %271 : vector<1x128xf32>
    %273 = vector.extract_strided_slice %239 {offsets = [8, 0], sizes = [1, 32], strides = [1, 1]} : vector<16x32xf32> to vector<1x32xf32>
    %c256 = arith.constant 256 : index
    %c0_263 = arith.constant 0 : index
    %274 = vector.load %arg12[%c256, %c0_263] : memref<512x128xf32, #tpu.memory_space<vmem>>, vector<32x128xf32>
    %cst_264 = arith.constant dense<0.000000e+00> : vector<1x128xf32>
    %275 = tpu.matmul %273, %274, %cst_264 {dimension_numbers = #tpu.dot_dimension_numbers<[1], [0], [0], [1], [0, 0, 1, 1], [], []>} : vector<1x32xf32>, vector<32x128xf32>, vector<1x128xf32> -> vector<1x128xf32>
    %276 = arith.addf %272, %275 : vector<1x128xf32>
    %277 = vector.extract_strided_slice %239 {offsets = [9, 0], sizes = [1, 32], strides = [1, 1]} : vector<16x32xf32> to vector<1x32xf32>
    %c288 = arith.constant 288 : index
    %c0_265 = arith.constant 0 : index
    %278 = vector.load %arg12[%c288, %c0_265] : memref<512x128xf32, #tpu.memory_space<vmem>>, vector<32x128xf32>
    %cst_266 = arith.constant dense<0.000000e+00> : vector<1x128xf32>
    %279 = tpu.matmul %277, %278, %cst_266 {dimension_numbers = #tpu.dot_dimension_numbers<[1], [0], [0], [1], [0, 0, 1, 1], [], []>} : vector<1x32xf32>, vector<32x128xf32>, vector<1x128xf32> -> vector<1x128xf32>
    %280 = arith.addf %276, %279 : vector<1x128xf32>
    %281 = vector.extract_strided_slice %239 {offsets = [10, 0], sizes = [1, 32], strides = [1, 1]} : vector<16x32xf32> to vector<1x32xf32>
    %c320 = arith.constant 320 : index
    %c0_267 = arith.constant 0 : index
    %282 = vector.load %arg12[%c320, %c0_267] : memref<512x128xf32, #tpu.memory_space<vmem>>, vector<32x128xf32>
    %cst_268 = arith.constant dense<0.000000e+00> : vector<1x128xf32>
    %283 = tpu.matmul %281, %282, %cst_268 {dimension_numbers = #tpu.dot_dimension_numbers<[1], [0], [0], [1], [0, 0, 1, 1], [], []>} : vector<1x32xf32>, vector<32x128xf32>, vector<1x128xf32> -> vector<1x128xf32>
    %284 = arith.addf %280, %283 : vector<1x128xf32>
    %285 = vector.extract_strided_slice %239 {offsets = [11, 0], sizes = [1, 32], strides = [1, 1]} : vector<16x32xf32> to vector<1x32xf32>
    %c352 = arith.constant 352 : index
    %c0_269 = arith.constant 0 : index
    %286 = vector.load %arg12[%c352, %c0_269] : memref<512x128xf32, #tpu.memory_space<vmem>>, vector<32x128xf32>
    %cst_270 = arith.constant dense<0.000000e+00> : vector<1x128xf32>
    %287 = tpu.matmul %285, %286, %cst_270 {dimension_numbers = #tpu.dot_dimension_numbers<[1], [0], [0], [1], [0, 0, 1, 1], [], []>} : vector<1x32xf32>, vector<32x128xf32>, vector<1x128xf32> -> vector<1x128xf32>
    %288 = arith.addf %284, %287 : vector<1x128xf32>
    %289 = vector.extract_strided_slice %239 {offsets = [12, 0], sizes = [1, 32], strides = [1, 1]} : vector<16x32xf32> to vector<1x32xf32>
    %c384 = arith.constant 384 : index
    %c0_271 = arith.constant 0 : index
    %290 = vector.load %arg12[%c384, %c0_271] : memref<512x128xf32, #tpu.memory_space<vmem>>, vector<32x128xf32>
    %cst_272 = arith.constant dense<0.000000e+00> : vector<1x128xf32>
    %291 = tpu.matmul %289, %290, %cst_272 {dimension_numbers = #tpu.dot_dimension_numbers<[1], [0], [0], [1], [0, 0, 1, 1], [], []>} : vector<1x32xf32>, vector<32x128xf32>, vector<1x128xf32> -> vector<1x128xf32>
    %292 = arith.addf %288, %291 : vector<1x128xf32>
    %293 = vector.extract_strided_slice %239 {offsets = [13, 0], sizes = [1, 32], strides = [1, 1]} : vector<16x32xf32> to vector<1x32xf32>
    %c416 = arith.constant 416 : index
    %c0_273 = arith.constant 0 : index
    %294 = vector.load %arg12[%c416, %c0_273] : memref<512x128xf32, #tpu.memory_space<vmem>>, vector<32x128xf32>
    %cst_274 = arith.constant dense<0.000000e+00> : vector<1x128xf32>
    %295 = tpu.matmul %293, %294, %cst_274 {dimension_numbers = #tpu.dot_dimension_numbers<[1], [0], [0], [1], [0, 0, 1, 1], [], []>} : vector<1x32xf32>, vector<32x128xf32>, vector<1x128xf32> -> vector<1x128xf32>
    %296 = arith.addf %292, %295 : vector<1x128xf32>
    %297 = vector.extract_strided_slice %239 {offsets = [14, 0], sizes = [1, 32], strides = [1, 1]} : vector<16x32xf32> to vector<1x32xf32>
    %c448 = arith.constant 448 : index
    %c0_275 = arith.constant 0 : index
    %298 = vector.load %arg12[%c448, %c0_275] : memref<512x128xf32, #tpu.memory_space<vmem>>, vector<32x128xf32>
    %cst_276 = arith.constant dense<0.000000e+00> : vector<1x128xf32>
    %299 = tpu.matmul %297, %298, %cst_276 {dimension_numbers = #tpu.dot_dimension_numbers<[1], [0], [0], [1], [0, 0, 1, 1], [], []>} : vector<1x32xf32>, vector<32x128xf32>, vector<1x128xf32> -> vector<1x128xf32>
    %300 = arith.addf %296, %299 : vector<1x128xf32>
    %301 = vector.extract_strided_slice %239 {offsets = [15, 0], sizes = [1, 32], strides = [1, 1]} : vector<16x32xf32> to vector<1x32xf32>
    %c480 = arith.constant 480 : index
    %c0_277 = arith.constant 0 : index
    %302 = vector.load %arg12[%c480, %c0_277] : memref<512x128xf32, #tpu.memory_space<vmem>>, vector<32x128xf32>
    %cst_278 = arith.constant dense<0.000000e+00> : vector<1x128xf32>
    %303 = tpu.matmul %301, %302, %cst_278 {dimension_numbers = #tpu.dot_dimension_numbers<[1], [0], [0], [1], [0, 0, 1, 1], [], []>} : vector<1x32xf32>, vector<32x128xf32>, vector<1x128xf32> -> vector<1x128xf32>
    %304 = arith.addf %300, %303 : vector<1x128xf32>
    %c0_279 = arith.constant 0 : index
    %c0_280 = arith.constant 0 : index
    %c0_281 = arith.constant 0 : index
    %305 = vector.load %arg14[%c0_279, %c0_280, %c0_281] : memref<1x1x128xf32, #tpu.memory_space<vmem>>, vector<1x1x128xf32>
    %306 = vector.shape_cast %305 : vector<1x1x128xf32> to vector<1x128xf32>
    %307 = vector.shape_cast %304 : vector<1x128xf32> to vector<1x1x128xf32>
    tpu.vector_store %arg14[%c0_279, %c0_280, %c0_281], %307 {strides = array<i32>} : memref<1x1x128xf32, #tpu.memory_space<vmem>>, vector<1x1x128xf32>,
    return
  }
  func.func @transform_0(%arg0: i32) -> (i32, i32, i32, i32) {
    %c0_i32 = arith.constant 0 : i32
    %c0_i32_0 = arith.constant 0 : i32
    %c0_i32_1 = arith.constant 0 : i32
    %c0_i32_2 = arith.constant 0 : i32
    return %arg0, %c0_i32, %c0_i32_0, %c0_i32_1 : i32, i32, i32, i32
  }
  func.func @transform_1(%arg0: i32) -> (i32, i32, i32) {
    %c0_i32 = arith.constant 0 : i32
    %c0_i32_0 = arith.constant 0 : i32
    %c0_i32_1 = arith.constant 0 : i32
    %c0_i32_2 = arith.constant 0 : i32
    return %c0_i32, %c0_i32_0, %c0_i32_1 : i32, i32, i32
  }
  func.func @transform_2(%arg0: i32) -> (i32, i32) {
    %c0_i32 = arith.constant 0 : i32
    %c0_i32_0 = arith.constant 0 : i32
    %c0_i32_1 = arith.constant 0 : i32
    return %c0_i32, %c0_i32_0 : i32, i32
  }
  func.func @transform_3(%arg0: i32) -> (i32, i32, i32) {
    %c0_i32 = arith.constant 0 : i32
    %c0_i32_0 = arith.constant 0 : i32
    %c0_i32_1 = arith.constant 0 : i32
    %c0_i32_2 = arith.constant 0 : i32
    return %c0_i32, %c0_i32_0, %c0_i32_1 : i32, i32, i32
  }
  func.func @transform_4(%arg0: i32) -> (i32, i32) {
    %c0_i32 = arith.constant 0 : i32
    %c0_i32_0 = arith.constant 0 : i32
    %c0_i32_1 = arith.constant 0 : i32
    return %c0_i32, %c0_i32_0 : i32, i32
  }
  func.func @transform_5(%arg0: i32) -> (i32, i32, i32) {
    %c0_i32 = arith.constant 0 : i32
    %c0_i32_0 = arith.constant 0 : i32
    %c0_i32_1 = arith.constant 0 : i32
    %c0_i32_2 = arith.constant 0 : i32
    return %c0_i32, %c0_i32_0, %c0_i32_1 : i32, i32, i32
  }
  func.func @transform_6(%arg0: i32) -> (i32, i32, i32) {
    %c0_i32 = arith.constant 0 : i32
    %c0_i32_0 = arith.constant 0 : i32
    %c0_i32_1 = arith.constant 0 : i32
    %c0_i32_2 = arith.constant 0 : i32
    return %c0_i32, %c0_i32_0, %c0_i32_1 : i32, i32, i32
  }
  func.func @transform_7(%arg0: i32) -> (i32, i32) {
    %c0_i32 = arith.constant 0 : i32
    %c0_i32_0 = arith.constant 0 : i32
    %c0_i32_1 = arith.constant 0 : i32
    return %c0_i32, %c0_i32_0 : i32, i32
  }
  func.func @transform_8(%arg0: i32) -> (i32, i32) {
    %c0_i32 = arith.constant 0 : i32
    %c0_i32_0 = arith.constant 0 : i32
    %c0_i32_1 = arith.constant 0 : i32
    return %c0_i32, %c0_i32_0 : i32, i32
  }
  func.func @transform_9(%arg0: i32) -> (i32, i32) {
    %c0_i32 = arith.constant 0 : i32
    %c0_i32_0 = arith.constant 0 : i32
    %c0_i32_1 = arith.constant 0 : i32
    return %c0_i32, %c0_i32_0 : i32, i32
  }
  func.func @transform_10(%arg0: i32) -> (i32, i32) {
    %c0_i32 = arith.constant 0 : i32
    %c0_i32_0 = arith.constant 0 : i32
    %c0_i32_1 = arith.constant 0 : i32
    return %c0_i32, %c0_i32_0 : i32, i32
  }
  func.func @transform_11(%arg0: i32) -> (i32, i32) {
    %c0_i32 = arith.constant 0 : i32
    %c0_i32_0 = arith.constant 0 : i32
    %c0_i32_1 = arith.constant 0 : i32
    return %c0_i32, %c0_i32_0 : i32, i32
  }
  func.func @transform_12(%arg0: i32) -> (i32, i32) {
    %c0_i32 = arith.constant 0 : i32
    %c0_i32_0 = arith.constant 0 : i32
    %c0_i32_1 = arith.constant 0 : i32
    return %c0_i32, %c0_i32_0 : i32, i32
  }
  func.func @transform_13(%arg0: i32) -> (i32, i32, i32) {
    %c0_i32 = arith.constant 0 : i32
    %c0_i32_0 = arith.constant 0 : i32
    %c0_i32_1 = arith.constant 0 : i32
    return %arg0, %c0_i32, %c0_i32_0 : i32, i32, i32
  }
}

</mosaic_0001>

<bundles_post_ra>
// kernel: _lambda_.1
= control target key start
LH: loop header
LB: loop body
LE: loop exit
PB: predicated region body
PF: predicated region fallthrough
CT: control target
= control target key end

     0   :  { %s13164_s0 = inlined_call_operand.vmem [shape: f32[2,18,18,3], index: 0, kind: input, shape index: {}]   ;;  %s13165_s1 = inlined_call_operand.vmem [shape: f32[9,3,32], index: 1, kind: input, shape index: {}]   ;;  %s13166_s2 = inlined_call_operand.vmem [shape: f32[1,32], index: 2, kind: input, shape index: {}]   ;;  %s13167_s3 = inlined_call_operand.vmem [shape: f32[9,32,64], index: 3, kind: input, shape index: {}]   ;;  %s13168_s4 = inlined_call_operand.vmem [shape: f32[1,64], index: 4, kind: input, shape index: {}]   ;;  %s13169_s5 = inlined_call_operand.vmem [shape: f32[2,32,112], index: 5, kind: input, shape index: {}]   ;;  %s13170_s6 = inlined_call_operand.vmem [shape: f32[2,16,56], index: 6, kind: input, shape index: {}]   ;;  %s13171_s7 = inlined_call_operand.vmem [shape: f32[64,32], index: 7, kind: input, shape index: {}]   ;;  %s13172_s8 = inlined_call_operand.vmem [shape: f32[1,32], index: 8, kind: input, shape index: {}]   ;;  %s13173_s9 = inlined_call_operand.vmem [shape: f32[16,16], index: 9, kind: input, shape index: {}]   ;;  %s13174_s10 = inlined_call_operand.vmem [shape: f32[16,32], index: 10, kind: input, shape index: {}]   ;;  %s13175_s11 = inlined_call_operand.vmem [shape: f32[512,128], index: 11, kind: input, shape index: {}]   ;;  %s13176_s12 = inlined_call_operand.vmem [shape: f32[1,128], index: 12, kind: input, shape index: {}]   ;;  %s13177_s13 = inlined_call_operand.hbm [shape: f32[2,1,128], index: 13, kind: output, shape index: {}]  }
   0x1   :  { %13212 = sst [smem:[#allocation66_spill]] %s13164_s0 }
   0x2   :  { %13213 = sst [smem:[#allocation67_spill]] %s13165_s1 }
   0x3   :  { %13214 = sst [smem:[#allocation68_spill]] %s13166_s2 }
   0x4   :  { %18 = vsyncpa [#allocation4], 0 }
   0x5   :  { %20 = vsyncpa [#allocation4 + $0x1], 0  ;;  %s10597_s25 = smov 0   ;;  %s10599_s26 = smov 0  }
   0x6   :  { %s10601_s27 = smov 0   ;;  %s10603_s28 = smov 0  }
   0x7 LB: > { %s10618_s29 = sadd.s32 4294967295, %s10522_s28   ;;  %s8061_s30 = sadd.s32 4294967294, %s10522_s28   ;;  %s10522_s28 = sphi %s10603_s28, %s13406_s28   ;;  %s10518_s27 = sphi %s10601_s27, %s13405_s27   ;;  %s10514_s26 = sphi %s10599_s26, %s13404_s26   ;;  %s10510_s25 = sphi %s10597_s25, %s13403_s25  }
   0x8   : > { %s10622_s14 = sadd.s32 1, %s10522_s28   ;;  %s311_s15 = sadd.s32 1, %s10518_s27 }
   0x9   : > { %s308_s16 = ssub.s32 %s10522_s28, %s10622_s14  ;;  %p321_p0 = scmp.ne.s32.totalorder %s10518_s27, %s10514_s26 }
   0xa   : > { %p309_p1 = scmp.eq.s32.totalorder %s308_s16, 0  ;;  %p322_p2 = scmp.eq.s32.totalorder %s10618_s29, 1 }
   0xb   : > { %p327_p3 = scmp.ne.s32.totalorder %s10514_s26, %s10510_s25  ;;  %p328_p4 = scmp.eq.s32.totalorder %s8061_s30, 1 }
   0xc   : > { %s10633_s17 = scalar_select %p309_p1, %s10518_s27, %s311_s15  }
   0xd   : > { %p10635_p5 = por %p322_p2, %p321_p0  ;;  %p10639_p6 = por %p328_p4, %p327_p3 }
   0xe   : > { %p8064_p7 = scmp.ge.s32.totalorder %s10522_s28, 1  ;;  %p390_p8 = scmp.lt.s32.totalorder %s10522_s28, 3 }
  0x10   : > { %p391_p9 = pnand %p8064_p7, %p390_p8 }
  0x12   : > { %394 = sbr.rel (%p391_p9) target bundleno = 2178 (0x882), region = 72 }
  0x17   : > { %s13217_s1 = sld [smem:[#allocation67_spill]]  ;;  %vm554_vm0 = vcmask 1042432   ;;  %p433_p10 = scmp.lt.s32.totalorder %s10618_s29, 1  ;;  %vm505_vm1 = vcmask 23552   ;;  %vm2563_vm2 = vcmask 916480   ;;  %vm438_vm3 = vcmask 261120  }
  0x18   : > { %s13218_s0 = sld [smem:[#allocation66_spill]]  ;;  %vm440_vm4 = vcmask 254976   ;;  %vm6390_vm5 = vcmask 457728   ;;  %vm6573_vm6 = vcmask 523264   ;;  %vm6659_vm7 = vcmask 130048   ;;  %s8781_s23 = sshll.u32 %s10618_s29, 4 }
  0x19   : > { %s434_s20 = scalar_select %p433_p10, %s10618_s29, 1  ;;  %vm10525_vm8 = vmmov 0  }
  0x1a   : > { %s13278_s2 = sld [smem:[#allocation68_spill]]  ;;  %s10526_s29 = smov [#allocation3]  }
  0x1b   : > { %s10402_s21 = smul.u32 432, %s434_s20  ;;  %s13129_s20 = scalar_lea.hbm %s13177_s13, %s8781_s23 }
  0x1c   : > { %s10466_s22 = sshll.u32 %s10526_s29, 4  ;;  %s10467_s22 = int_to_ptr.vmem [resolvable:$false] %s10466_s22 }
  0x1d   : > { %v8070_v0 = vld [vmem:[%s13217_s1 + $0x4] sm:$0x7]  ;;  %v486_v1 = vld [vmem:[%s13217_s1] sm:$0x7]  ;;  %v8105_v2 = vld [vmem:[%s13217_s1 + $0x8] sm:$0x7] }
  0x1e   : > { %9382 = vmatprep.subr.msk.mxu0 %vm554_vm0, %v8070_v0  ;;  %9408 = vmatprep.subr.msk.mxu1 %vm554_vm0, %v486_v1  ;;  %v8139_v3 = vld [vmem:[%s13217_s1 + $0xc] sm:$0x7]  ;;  %s10668_s24 = scalar_lea.vmem %s13218_s0, %s10402_s21  ;;  %v10687_v10 = vld [vmem:[%s13217_s1 + $0x10] sm:$0x7]  ;;  %v10692_v11 = vld [vmem:[%s13217_s1 + $0x14] sm:$0x7] }
  0x1f   : > { %9383 = vmatpush3.msk.msra.mxu0 %vm554_vm0, %v8070_v0  ;;  %9409 = vmatpush3.msk.msra.mxu1 %vm554_vm0, %v486_v1  ;;  %v487_v4 = vld [vmem:[%s10668_s24 + $0x1] sm:$0xff]  ;;  %v488_v6 = vld [vmem:[%s10668_s24 + $0x9] sm:$0xff]  ;;  %v10677_v8 = vld [vmem:[%s10668_s24 + $0x19] sm:$0xff] }
  0x20   : > { %9434 = vmatprep.subr.msk.mxu0 %vm554_vm0, %v8105_v2  ;;  %9460 = vmatprep.subr.msk.mxu1 %vm554_vm0, %v8139_v3  ;;  %v470_v5 = vld [vmem:[%s10668_s24] sm:$0xff]  ;;  %v471_v7 = vld [vmem:[%s10668_s24 + $0x8] sm:$0xff]  ;;  %v10680_v9 = vld [vmem:[%s10668_s24 + $0x18] sm:$0xff] }
  0x21   : > { %9384 = vmatprep.mubr.msk.f32.mxu0 %vm505_vm1, %v487_v4  ;;  %9410 = vmatprep.mubr.msk.f32.mxu1 %vm505_vm1, %v470_v5  ;;  %v10699_v12 = vld [vmem:[%s10668_s24 + $0x21] sm:$0xff]  ;;  %v10704_v14 = vld [vmem:[%s10668_s24 + $0x31] sm:$0xff]  ;;  %v10722_v16 = vld [vmem:[%s10668_s24 + $0x39] sm:$0xff] }
  0x22   : > { %9385 = vmatmul.mubr.msk.f32.vlgmr.msra.gmra.mxu0 %vm505_vm1, %v488_v6  ;;  %9411 = vmatmul.mubr.msk.f32.vlgmr.msra.gmra.mxu1 %vm505_vm1, %v471_v7  ;;  %v473_v13 = vld [vmem:[%s10668_s24 + $0x20] sm:$0xff]  ;;  %v10707_v15 = vld [vmem:[%s10668_s24 + $0x30] sm:$0xff]  ;;  %v10725_v17 = vld [vmem:[%s10668_s24 + $0x38] sm:$0xff] }
  0x23   : > { %9387 = vmatprep.mubr.msk.f32.mxu0 %vm505_vm1, %v10677_v8  ;;  %9413 = vmatprep.mubr.msk.f32.mxu1 %vm505_vm1, %v10680_v9  ;;  %v10728_v18 = vld [vmem:[%s10668_s24 + $0x49] sm:$0xff]  ;;  %v10742_v20 = vld [vmem:[%s10668_s24 + $0x51] sm:$0xff]  ;;  %v10748_v22 = vld [vmem:[%s10668_s24 + $0x61] sm:$0xff] }
  0x24   : > { %9435 = vmatpush3.msk.msra.mxu0 %vm554_vm0, %v8105_v2  ;;  %9461 = vmatpush3.msk.msra.mxu1 %vm554_vm0, %v8139_v3  ;;  %v10731_v19 = vld [vmem:[%s10668_s24 + $0x48] sm:$0xff]  ;;  %v10745_v21 = vld [vmem:[%s10668_s24 + $0x50] sm:$0xff]  ;;  %v10751_v23 = vld [vmem:[%s10668_s24 + $0x60] sm:$0xff] }
  0x25   : > { %9486 = vmatprep.subr.msk.mxu0 %vm554_vm0, %v10687_v10  ;;  %9512 = vmatprep.subr.msk.mxu1 %vm554_vm0, %v10692_v11  ;;  %v10762_v24 = vld [vmem:[%s10668_s24 + $0x69] sm:$0xff]  ;;  %v10768_v26 = vld [vmem:[%s10668_s24 + $0x79] sm:$0xff]  ;;  %v10782_v28 = vld [vmem:[%s10668_s24 + $0x81] sm:$0xff] }
  0x26   : > { %9388 = vmatmul.mubr.msk.f32.gmra.mxu0 %vm505_vm1, %v10699_v12  ;;  %9414 = vmatmul.mubr.msk.f32.gmra.mxu1 %vm505_vm1, %v473_v13  ;;  %v10765_v25 = vld [vmem:[%s10668_s24 + $0x68] sm:$0xff]  ;;  %v10771_v27 = vld [vmem:[%s10668_s24 + $0x78] sm:$0xff]  ;;  %v10785_v29 = vld [vmem:[%s10668_s24 + $0x80] sm:$0xff] }
  0x27   : > { %9390 = vmatprep.mubr.msk.f32.mxu0 %vm505_vm1, %v10704_v14  ;;  %9416 = vmatprep.mubr.msk.f32.mxu1 %vm505_vm1, %v10707_v15  ;;  %v10788_v30 = vld [vmem:[%s10668_s24 + $0x91] sm:$0xff]  ;;  %v10802_v32 = vld [vmem:[%s10668_s24 + $0x99] sm:$0xff]  ;;  %v10808_v34 = vld [vmem:[%s10668_s24 + $0xa9] sm:$0xff] }
  0x28   : > { %v10791_v31 = vld [vmem:[%s10668_s24 + $0x90] sm:$0xff]  ;;  %v10805_v33 = vld [vmem:[%s10668_s24 + $0x98] sm:$0xff]  ;;  %v10811_v35 = vld [vmem:[%s10668_s24 + $0xa8] sm:$0xff] }
  0x29   : > { %v10822_v36 = vld [vmem:[%s10668_s24 + $0xb1] sm:$0xff]  ;;  %v899_v38 = vld [vmem:[%s10668_s24 + $0x2] sm:$0xff]  ;;  %v901_v40 = vld [vmem:[%s10668_s24 + $0x1a] sm:$0xff] }
  0x2a   : > { %9391 = vmatmul.mubr.msk.f32.gmra.mxu0 %vm505_vm1, %v10722_v16  ;;  %9417 = vmatmul.mubr.msk.f32.gmra.mxu1 %vm505_vm1, %v10725_v17  ;;  %v10825_v37 = vld [vmem:[%s10668_s24 + $0xb0] sm:$0xff]  ;;  %v8241_v41 = vld [vmem:[%s13217_s1 + $0x18] sm:$0x7]  ;;  %v8275_v42 = vld [vmem:[%s13217_s1 + $0x1c] sm:$0x7] }
  0x2b   : > { %9393 = vmatprep.mubr.msk.f32.mxu0 %vm505_vm1, %v10728_v18  ;;  %9419 = vmatprep.mubr.msk.f32.mxu1 %vm505_vm1, %v10731_v19  ;;  %v900_v39 = vld [vmem:[%s10668_s24 + $0xa] sm:$0xff]  ;;  %v902_v43 = vld [vmem:[%s10668_s24 + $0x22] sm:$0xff]  ;;  %v10852_v44 = vld [vmem:[%s10668_s24 + $0x32] sm:$0xff] }
  0x2c   : > { %v10864_v45 = vld [vmem:[%s10668_s24 + $0x3a] sm:$0xff]  ;;  %v10869_v46 = vld [vmem:[%s10668_s24 + $0x4a] sm:$0xff]  ;;  %v10878_v47 = vld [vmem:[%s10668_s24 + $0x52] sm:$0xff] }
  0x2d   : > { %v10883_v48 = vld [vmem:[%s10668_s24 + $0x62] sm:$0xff]  ;;  %v10892_v49 = vld [vmem:[%s10668_s24 + $0x6a] sm:$0xff]  ;;  %v10897_v50 = vld [vmem:[%s10668_s24 + $0x7a] sm:$0xff] }
  0x2e   : > { %9394 = vmatmul.mubr.msk.f32.gmra.mxu0 %vm505_vm1, %v10742_v20  ;;  %9420 = vmatmul.mubr.msk.f32.gmra.mxu1 %vm505_vm1, %v10745_v21  ;;  %v10906_v51 = vld [vmem:[%s10668_s24 + $0x82] sm:$0xff]  ;;  %v10911_v52 = vld [vmem:[%s10668_s24 + $0x92] sm:$0xff]  ;;  %v10920_v53 = vld [vmem:[%s10668_s24 + $0x9a] sm:$0xff] }
  0x2f   : > { %9396 = vmatprep.mubr.msk.f32.mxu0 %vm505_vm1, %v10748_v22  ;;  %9422 = vmatprep.mubr.msk.f32.mxu1 %vm505_vm1, %v10751_v23  ;;  %v10925_v54 = vld [vmem:[%s10668_s24 + $0xaa] sm:$0xff]  ;;  %v10928_v55 = vld [vmem:[%s10668_s24 + $0xc0] sm:$0xff]  ;;  %v10937_v56 = vld [vmem:[%s10668_s24 + $0xb2] sm:$0xff] }
  0x30   : > { %v10942_v57 = vld [vmem:[%s10668_s24 + $0xc8] sm:$0xff]  ;;  %v8309_v58 = vld [vmem:[%s13217_s1 + $0x20] sm:$0x7]  ;;  %v8239_v63 = vld [vmem:[%s10668_s24 + $0xd8] sm:$0xff] }
  0x31   : > { %v11005_v59 = vld [vmem:[%s10668_s24 + $0xc1] sm:$0xff]  ;;  %v11015_v61 = vld [vmem:[%s10668_s24 + $0xc9] sm:$0xff]  ;;  %v11077_v0 = vld [vmem:[%s10668_s24 + $0xd9] sm:$0xff] }
  0x32   : > { %9397 = vmatmul.mubr.msk.f32.gmra.mxu0 %vm505_vm1, %v10762_v24  ;;  %9423 = vmatmul.mubr.msk.f32.gmra.mxu1 %vm505_vm1, %v10765_v25  ;;  %v8205_v60 = vld [vmem:[%s10668_s24 + $0xc2] sm:$0xff]  ;;  %v8206_v62 = vld [vmem:[%s10668_s24 + $0xca] sm:$0xff]  ;;  %v11119_v3 = vld [vmem:[%s10668_s24 + $0xda] sm:$0xff] }
  0x33   : > { %9399 = vmatprep.mubr.msk.f32.mxu0 %vm505_vm1, %v10768_v26  ;;  %9425 = vmatprep.mubr.msk.f32.mxu1 %vm505_vm1, %v10771_v27  ;;  %v8240_v1 = vld [vmem:[%s10668_s24 + $0xe0] sm:$0xff] }
  0x34   : > { %v11088_v2 = vld [vmem:[%s10668_s24 + $0xe1] sm:$0xff] }
  0x35   : > { %v11125_v4 = vld [vmem:[%s10668_s24 + $0xe2] sm:$0xff] }
  0x36   : > { %9400 = vmatmul.mubr.msk.f32.gmra.mxu0 %vm505_vm1, %v10782_v28  ;;  %9426 = vmatmul.mubr.msk.f32.gmra.mxu1 %vm505_vm1, %v10785_v29 }
  0x37   : > { %9402 = vmatprep.mubr.msk.f32.mxu0 %vm505_vm1, %v10788_v30  ;;  %9428 = vmatprep.mubr.msk.f32.mxu1 %vm505_vm1, %v10791_v31 }
  0x3a   : > { %9403 = vmatmul.mubr.msk.f32.gmra.mxu0 %vm505_vm1, %v10802_v32  ;;  %9429 = vmatmul.mubr.msk.f32.gmra.mxu1 %vm505_vm1, %v10805_v33 }
  0x3b   : > { %9405 = vmatprep.mubr.msk.f32.mxu0 %vm505_vm1, %v10808_v34  ;;  %9431 = vmatprep.mubr.msk.f32.mxu1 %vm505_vm1, %v10811_v35 }
  0x3e   : > { %9406 = vmatmul.mubr.msk.f32.gmra.mxu0 %vm505_vm1, %v10822_v36  ;;  %9432 = vmatmul.mubr.msk.f32.gmra.mxu1 %vm505_vm1, %v10825_v37 }
  0x3f   : > { %9436 = vmatprep.mubr.msk.f32.mxu0 %vm505_vm1, %v899_v38  ;;  %9462 = vmatprep.mubr.msk.f32.mxu1 %vm505_vm1, %v10680_v9 }
  0x42   : > { %9437 = vmatmul.mubr.msk.f32.vlgmr.msra.gmra.mxu0 %vm505_vm1, %v900_v39  ;;  %9463 = vmatmul.mubr.msk.f32.vlgmr.msra.gmra.mxu1 %vm505_vm1, %v473_v13 }
  0x43   : > { %9439 = vmatprep.mubr.msk.f32.mxu0 %vm505_vm1, %v901_v40  ;;  %9465 = vmatprep.mubr.msk.f32.mxu1 %vm505_vm1, %v10707_v15 }
  0x44   : > { %9487 = vmatpush3.msk.msra.mxu0 %vm554_vm0, %v10687_v10  ;;  %9513 = vmatpush3.msk.msra.mxu1 %vm554_vm0, %v10692_v11 }
  0x45   : > { %9538 = vmatprep.subr.msk.mxu0 %vm554_vm0, %v8241_v41  ;;  %9564 = vmatprep.subr.msk.mxu1 %vm554_vm0, %v8275_v42 }
  0x46   : > { %9440 = vmatmul.mubr.msk.f32.gmra.mxu0 %vm505_vm1, %v902_v43  ;;  %9466 = vmatmul.mubr.msk.f32.gmra.mxu1 %vm505_vm1, %v10725_v17 }
  0x47   : > { %9442 = vmatprep.mubr.msk.f32.mxu0 %vm505_vm1, %v10852_v44  ;;  %9468 = vmatprep.mubr.msk.f32.mxu1 %vm505_vm1, %v10731_v19 }
  0x4a   : > { %9443 = vmatmul.mubr.msk.f32.gmra.mxu0 %vm505_vm1, %v10864_v45  ;;  %9469 = vmatmul.mubr.msk.f32.gmra.mxu1 %vm505_vm1, %v10745_v21 }
  0x4b   : > { %9445 = vmatprep.mubr.msk.f32.mxu0 %vm505_vm1, %v10869_v46  ;;  %9471 = vmatprep.mubr.msk.f32.mxu1 %vm505_vm1, %v10751_v23 }
  0x4e   : > { %9446 = vmatmul.mubr.msk.f32.gmra.mxu0 %vm505_vm1, %v10878_v47  ;;  %9472 = vmatmul.mubr.msk.f32.gmra.mxu1 %vm505_vm1, %v10765_v25 }
  0x4f   : > { %9448 = vmatprep.mubr.msk.f32.mxu0 %vm505_vm1, %v10883_v48  ;;  %9474 = vmatprep.mubr.msk.f32.mxu1 %vm505_vm1, %v10771_v27 }
  0x52   : > { %9449 = vmatmul.mubr.msk.f32.gmra.mxu0 %vm505_vm1, %v10892_v49  ;;  %9475 = vmatmul.mubr.msk.f32.gmra.mxu1 %vm505_vm1, %v10785_v29 }
  0x53   : > { %9451 = vmatprep.mubr.msk.f32.mxu0 %vm505_vm1, %v10897_v50  ;;  %9477 = vmatprep.mubr.msk.f32.mxu1 %vm505_vm1, %v10791_v31 }
  0x56   : > { %9452 = vmatmul.mubr.msk.f32.gmra.mxu0 %vm505_vm1, %v10906_v51  ;;  %9478 = vmatmul.mubr.msk.f32.gmra.mxu1 %vm505_vm1, %v10805_v33 }
  0x57   : > { %9454 = vmatprep.mubr.msk.f32.mxu0 %vm505_vm1, %v10911_v52  ;;  %9480 = vmatprep.mubr.msk.f32.mxu1 %vm505_vm1, %v10811_v35 }
  0x5a   : > { %9455 = vmatmul.mubr.msk.f32.gmra.mxu0 %vm505_vm1, %v10920_v53  ;;  %9481 = vmatmul.mubr.msk.f32.gmra.mxu1 %vm505_vm1, %v10825_v37 }
  0x5b   : > { %9457 = vmatprep.mubr.msk.f32.mxu0 %vm505_vm1, %v10925_v54  ;;  %9483 = vmatprep.mubr.msk.f32.mxu1 %vm505_vm1, %v10928_v55 }
  0x5e   : > { %9458 = vmatmul.mubr.msk.f32.gmra.mxu0 %vm505_vm1, %v10937_v56  ;;  %9484 = vmatmul.mubr.msk.f32.gmra.mxu1 %vm505_vm1, %v10942_v57 }
  0x5f   : > { %9488 = vmatprep.mubr.msk.f32.mxu0 %vm505_vm1, %v10677_v8  ;;  %9514 = vmatprep.mubr.msk.f32.mxu1 %vm505_vm1, %v901_v40 }
  0x62   : > { %9489 = vmatmul.mubr.msk.f32.vlgmr.msra.gmra.mxu0 %vm505_vm1, %v10699_v12  ;;  %9515 = vmatmul.mubr.msk.f32.vlgmr.msra.gmra.mxu1 %vm505_vm1, %v902_v43 }
  0x63   : > { %9491 = vmatprep.mubr.msk.f32.mxu0 %vm505_vm1, %v10704_v14  ;;  %9517 = vmatprep.mubr.msk.f32.mxu1 %vm505_vm1, %v10852_v44 }
  0x64   : > { %9539 = vmatpush3.msk.msra.mxu0 %vm554_vm0, %v8241_v41  ;;  %9565 = vmatpush3.msk.msra.mxu1 %vm554_vm0, %v8275_v42 }
  0x65   : > { %9590 = vmatprep.subr.msk.mxu0 %vm554_vm0, %v8309_v58 }
  0x66   : > { %9492 = vmatmul.mubr.msk.f32.gmra.mxu0 %vm505_vm1, %v10722_v16  ;;  %9518 = vmatmul.mubr.msk.f32.gmra.mxu1 %vm505_vm1, %v10864_v45 }
  0x67   : > { %9494 = vmatprep.mubr.msk.f32.mxu0 %vm505_vm1, %v10728_v18  ;;  %9520 = vmatprep.mubr.msk.f32.mxu1 %vm505_vm1, %v10869_v46 }
  0x6a   : > { %9495 = vmatmul.mubr.msk.f32.gmra.mxu0 %vm505_vm1, %v10742_v20  ;;  %9521 = vmatmul.mubr.msk.f32.gmra.mxu1 %vm505_vm1, %v10878_v47 }
  0x6b   : > { %9497 = vmatprep.mubr.msk.f32.mxu0 %vm505_vm1, %v10748_v22  ;;  %9523 = vmatprep.mubr.msk.f32.mxu1 %vm505_vm1, %v10883_v48 }
  0x6e   : > { %9498 = vmatmul.mubr.msk.f32.gmra.mxu0 %vm505_vm1, %v10762_v24  ;;  %9524 = vmatmul.mubr.msk.f32.gmra.mxu1 %vm505_vm1, %v10892_v49 }
  0x6f   : > { %9500 = vmatprep.mubr.msk.f32.mxu0 %vm505_vm1, %v10768_v26  ;;  %9526 = vmatprep.mubr.msk.f32.mxu1 %vm505_vm1, %v10897_v50 }
  0x72   : > { %9501 = vmatmul.mubr.msk.f32.gmra.mxu0 %vm505_vm1, %v10782_v28  ;;  %9527 = vmatmul.mubr.msk.f32.gmra.mxu1 %vm505_vm1, %v10906_v51 }
  0x73   : > { %9503 = vmatprep.mubr.msk.f32.mxu0 %vm505_vm1, %v10788_v30  ;;  %9529 = vmatprep.mubr.msk.f32.mxu1 %vm505_vm1, %v10911_v52 }
  0x76   : > { %9504 = vmatmul.mubr.msk.f32.gmra.mxu0 %vm505_vm1, %v10802_v32  ;;  %9530 = vmatmul.mubr.msk.f32.gmra.mxu1 %vm505_vm1, %v10920_v53 }
  0x77   : > { %9506 = vmatprep.mubr.msk.f32.mxu0 %vm505_vm1, %v10808_v34  ;;  %9532 = vmatprep.mubr.msk.f32.mxu1 %vm505_vm1, %v10925_v54 }
  0x7a   : > { %9507 = vmatmul.mubr.msk.f32.gmra.mxu0 %vm505_vm1, %v10822_v36  ;;  %9533 = vmatmul.mubr.msk.f32.gmra.mxu1 %vm505_vm1, %v10937_v56 }
  0x7b   : > { %9509 = vmatprep.mubr.msk.f32.mxu0 %vm505_vm1, %v11005_v59  ;;  %9535 = vmatprep.mubr.msk.f32.mxu1 %vm505_vm1, %v8205_v60 }
  0x7e   : > { %9510 = vmatmul.mubr.msk.f32.gmra.mxu0 %vm505_vm1, %v11015_v61  ;;  %9536 = vmatmul.mubr.msk.f32.gmra.mxu1 %vm505_vm1, %v8206_v62 }
  0x7f   : > { %9540 = vmatprep.mubr.msk.f32.mxu0 %vm505_vm1, %v10707_v15  ;;  %9566 = vmatprep.mubr.msk.f32.mxu1 %vm505_vm1, %v10704_v14 }
  0x82   : > { %9541 = vmatmul.mubr.msk.f32.vlgmr.msra.gmra.mxu0 %vm505_vm1, %v10725_v17  ;;  %9567 = vmatmul.mubr.msk.f32.vlgmr.msra.gmra.mxu1 %vm505_vm1, %v10722_v16 }
  0x83   : > { %9543 = vmatprep.mubr.msk.f32.mxu0 %vm505_vm1, %v10731_v19  ;;  %9569 = vmatprep.mubr.msk.f32.mxu1 %vm505_vm1, %v10728_v18 }
  0x84   : > { %9591 = vmatpush3.msk.msra.mxu0 %vm554_vm0, %v8309_v58 }
  0x86   : > { %9544 = vmatmul.mubr.msk.f32.gmra.mxu0 %vm505_vm1, %v10745_v21  ;;  %9570 = vmatmul.mubr.msk.f32.gmra.mxu1 %vm505_vm1, %v10742_v20 }
  0x87   : > { %9546 = vmatprep.mubr.msk.f32.mxu0 %vm505_vm1, %v10751_v23  ;;  %9572 = vmatprep.mubr.msk.f32.mxu1 %vm505_vm1, %v10748_v22 }
  0x8a   : > { %9547 = vmatmul.mubr.msk.f32.gmra.mxu0 %vm505_vm1, %v10765_v25  ;;  %9573 = vmatmul.mubr.msk.f32.gmra.mxu1 %vm505_vm1, %v10762_v24 }
  0x8b   : > { %9549 = vmatprep.mubr.msk.f32.mxu0 %vm505_vm1, %v10771_v27  ;;  %9575 = vmatprep.mubr.msk.f32.mxu1 %vm505_vm1, %v10768_v26 }
  0x8e   : > { %9550 = vmatmul.mubr.msk.f32.gmra.mxu0 %vm505_vm1, %v10785_v29  ;;  %9576 = vmatmul.mubr.msk.f32.gmra.mxu1 %vm505_vm1, %v10782_v28 }
  0x8f   : > { %9552 = vmatprep.mubr.msk.f32.mxu0 %vm505_vm1, %v10791_v31  ;;  %9578 = vmatprep.mubr.msk.f32.mxu1 %vm505_vm1, %v10788_v30 }
  0x92   : > { %9553 = vmatmul.mubr.msk.f32.gmra.mxu0 %vm505_vm1, %v10805_v33  ;;  %9579 = vmatmul.mubr.msk.f32.gmra.mxu1 %vm505_vm1, %v10802_v32 }
  0x93   : > { %9555 = vmatprep.mubr.msk.f32.mxu0 %vm505_vm1, %v10811_v35  ;;  %9581 = vmatprep.mubr.msk.f32.mxu1 %vm505_vm1, %v10808_v34 }
  0x96   : > { %9556 = vmatmul.mubr.msk.f32.gmra.mxu0 %vm505_vm1, %v10825_v37  ;;  %9582 = vmatmul.mubr.msk.f32.gmra.mxu1 %vm505_vm1, %v10822_v36 }
  0x97   : > { %9558 = vmatprep.mubr.msk.f32.mxu0 %vm505_vm1, %v10928_v55  ;;  %9584 = vmatprep.mubr.msk.f32.mxu1 %vm505_vm1, %v11005_v59 }
  0x9a   : > { %9559 = vmatmul.mubr.msk.f32.gmra.mxu0 %vm505_vm1, %v10942_v57  ;;  %9585 = vmatmul.mubr.msk.f32.gmra.mxu1 %vm505_vm1, %v11015_v61 }
  0x9b   : > { %9561 = vmatprep.mubr.msk.f32.mxu0 %vm505_vm1, %v8239_v63  ;;  %9587 = vmatprep.mubr.msk.f32.mxu1 %vm505_vm1, %v11077_v0 }
  0x9e   : > { %9562 = vmatmul.mubr.msk.f32.gmra.mxu0 %vm505_vm1, %v8240_v1  ;;  %9588 = vmatmul.mubr.msk.f32.gmra.mxu1 %vm505_vm1, %v11088_v2  ;;  %v8368_v1 = vld [vmem:[%s13217_s1 + $0x4] sm:$0x7] }
  0x9f   : > { %9592 = vmatprep.mubr.msk.f32.mxu0 %vm505_vm1, %v10852_v44  ;;  %9684 = vmatprep.subr.msk.mxu0 %vm554_vm0, %v8368_v1 }
  0xa2   : > { %9593 = vmatmul.mubr.msk.f32.vlgmr.msra.gmra.mxu0 %vm505_vm1, %v10864_v45 }
  0xa3   : > { %9595 = vmatprep.mubr.msk.f32.mxu0 %vm505_vm1, %v10869_v46  ;;  %9685 = vmatpush3.msk.msra.mxu0 %vm554_vm0, %v8368_v1 }
  0xa6   : > { %9596 = vmatmul.mubr.msk.f32.gmra.mxu0 %vm505_vm1, %v10878_v47 }
  0xa7   : > { %9598 = vmatprep.mubr.msk.f32.mxu0 %vm505_vm1, %v10883_v48 }
  0xaa   : > { %9599 = vmatmul.mubr.msk.f32.gmra.mxu0 %vm505_vm1, %v10892_v49 }
  0xab   : > { %9601 = vmatprep.mubr.msk.f32.mxu0 %vm505_vm1, %v10897_v50 }
  0xae   : > { %9602 = vmatmul.mubr.msk.f32.gmra.mxu0 %vm505_vm1, %v10906_v51 }
  0xaf   : > { %9604 = vmatprep.mubr.msk.f32.mxu0 %vm505_vm1, %v10911_v52 }
  0xb2   : > { %9605 = vmatmul.mubr.msk.f32.gmra.mxu0 %vm505_vm1, %v10920_v53 }
  0xb3   : > { %9607 = vmatprep.mubr.msk.f32.mxu0 %vm505_vm1, %v10925_v54 }
  0xb6   : > { %9608 = vmatmul.mubr.msk.f32.gmra.mxu0 %vm505_vm1, %v10937_v56 }
  0xb7   : > { %9610 = vmatprep.mubr.msk.f32.mxu0 %vm505_vm1, %v8205_v60 }
  0xba   : > { %9611 = vmatmul.mubr.msk.f32.gmra.mxu0 %vm505_vm1, %v8206_v62 }
  0xbb   : > { %9613 = vmatprep.mubr.msk.f32.mxu0 %vm505_vm1, %v11119_v3 }
  0xbe   : > { %9614 = vmatmul.mubr.msk.f32.gmra.mxu0 %vm505_vm1, %v11125_v4 }
  0xbf   : > { %9686 = vmatprep.mubr.msk.f32.mxu0 %vm505_vm1, %v11005_v59 }
  0xc2   : > { %9687 = vmatmul.mubr.msk.f32.vlgmr.msra.gmra.mxu0 %vm505_vm1, %v11015_v61 }
  0xc3   : > { %9689 = vmatprep.mubr.msk.f32.mxu0 %vm505_vm1, %v11077_v0 }
  0xc6   : > { %9690 = vmatmul.mubr.msk.f32.gmra.mxu0 %vm505_vm1, %v11088_v2 }
  0xe2   : > { %v9386_v5 = vpop.f32.mrf.mxu0  ;;  %v9412_v6 = vpop.f32.mrf.mxu1 }
  0xe3   : > { %v826_v7 = vadd.f32 %v9412_v6, %v9386_v5 }
  0xe4   : > { %v11131_v8 = vpop.f32.mrf.mxu0  ;;  %v11133_v9 = vpop.f32.mrf.mxu1 }
  0xe5   : > { %13219 = vst [vmem:[#allocation6_spill] sm:$0xff] %v11131_v8  ;;  %13220 = vst [vmem:[#allocation7_spill] sm:$0xff] %v11133_v9  ;;  %v11323_v9 = vld [vmem:[%s10668_s24 + $0x159] sm:$0xff] }
  0xe6   : > { %v9389_v10 = vpop.f32.mrf.mxu0  ;;  %v9415_v11 = vpop.f32.mrf.mxu1  ;;  %13249 = vst [vmem:[#allocation36_spill] sm:$0xff] %v11323_v9 }
  0xe7   : > { %v836_v12 = vadd.f32 %v9415_v11, %v9389_v10 }
  0xe8   : > { %v11135_v13 = vpop.f32.mrf.mxu0  ;;  %v11137_v14 = vpop.f32.mrf.mxu1 }
  0xe9   : > { %13221 = vst [vmem:[#allocation8_spill] sm:$0xff] %v11135_v13  ;;  %13222 = vst [vmem:[#allocation9_spill] sm:$0xff] %v11137_v14  ;;  %v11337_v14 = vld [vmem:[%s10668_s24 + $0x171] sm:$0xff] }
  0xea   : > { %v9392_v15 = vpop.f32.mrf.mxu0  ;;  %v9418_v16 = vpop.f32.mrf.mxu1  ;;  %13252 = vst [vmem:[#allocation39_spill] sm:$0xff] %v11337_v14 }
  0xeb   : > { %v846_v17 = vadd.f32 %v9418_v16, %v9392_v15 }
  0xec   : > { %v11139_v18 = vpop.f32.mrf.mxu0  ;;  %v11141_v19 = vpop.f32.mrf.mxu1 }
  0xed   : > { %13223 = vst [vmem:[#allocation10_spill] sm:$0xff] %v11139_v18  ;;  %13224 = vst [vmem:[#allocation11_spill] sm:$0xff] %v11141_v19  ;;  %v11449_v18 = vld [vmem:[%s10668_s24 + $0x172] sm:$0xff] }
  0xee   : > { %v9395_v20 = vpop.f32.mrf.mxu0  ;;  %v9421_v21 = vpop.f32.mrf.mxu1 }
  0xef   : > { %v856_v22 = vadd.f32 %v9421_v21, %v9395_v20 }
  0xf0   : > { %v11143_v23 = vpop.f32.mrf.mxu0  ;;  %v11145_v24 = vpop.f32.mrf.mxu1 }
  0xf2   : > { %v9398_v25 = vpop.f32.mrf.mxu0  ;;  %v9424_v26 = vpop.f32.mrf.mxu1 }
  0xf3   : > { %v866_v27 = vadd.f32 %v9424_v26, %v9398_v25 }
  0xf4   : > { %v11147_v28 = vpop.f32.mrf.mxu0  ;;  %v11149_v29 = vpop.f32.mrf.mxu1 }
  0xf6   : > { %v9401_v30 = vpop.f32.mrf.mxu0  ;;  %v9427_v31 = vpop.f32.mrf.mxu1 }
  0xf7   : > { %v876_v32 = vadd.f32 %v9427_v31, %v9401_v30 }
  0xf8   : > { %v11151_v33 = vpop.f32.mrf.mxu0  ;;  %v11153_v34 = vpop.f32.mrf.mxu1 }
  0xfa   : > { %v9404_v35 = vpop.f32.mrf.mxu0  ;;  %v9430_v36 = vpop.f32.mrf.mxu1 }
  0xfb   : > { %v886_v37 = vadd.f32 %v9430_v36, %v9404_v35 }
  0xfc   : > { %v11155_v38 = vpop.f32.mrf.mxu0  ;;  %v11157_v39 = vpop.f32.mrf.mxu1 }
  0xfe   : > { %v9407_v40 = vpop.f32.mrf.mxu0  ;;  %v9433_v41 = vpop.f32.mrf.mxu1 }
  0xff   : > { %v896_v42 = vadd.f32 %v9433_v41, %v9407_v40 }
 0x100   : > { %v11159_v43 = vpop.f32.mrf.mxu0  ;;  %v11161_v44 = vpop.f32.mrf.mxu1 }
 0x102   : > { %v9438_v45 = vpop.f32.mrf.mxu0  ;;  %v9464_v46 = vpop.f32.mrf.mxu1 }
 0x103   : > { %v1114_v47 = vadd.f32 %v9438_v45, %v826_v7 }
 0x104   : > { %v11163_v48 = vpop.f32.mrf.mxu0  ;;  %v11165_v49 = vpop.f32.mrf.mxu1 }
 0x105   : > { %13225 = vst [vmem:[#allocation12_spill] sm:$0xff] %v11163_v48  ;;  %13226 = vst [vmem:[#allocation13_spill] sm:$0xff] %v11165_v49  ;;  %v1345_v50 = vadd.f32 %v9464_v46, %v1114_v47  ;;  %v11296_v49 = vld [vmem:[%s10668_s24 + $0x139] sm:$0xff]  ;;  %v11314_v48 = vld [vmem:[%s10668_s24 + $0x151] sm:$0xff] }
 0x106   : > { %v9441_v51 = vpop.f32.mrf.mxu0  ;;  %v9467_v52 = vpop.f32.mrf.mxu1  ;;  %13245 = vst [vmem:[#allocation32_spill] sm:$0xff] %v11296_v49  ;;  %13247 = vst [vmem:[#allocation34_spill] sm:$0xff] %v11314_v48 }
 0x107   : > { %v1116_v53 = vadd.f32 %v9441_v51, %v836_v12  ;;  %v461_v51 = vld [vmem:[%s13169_s5] sm:$0xff] }
 0x108   : > { %v11167_v54 = vpop.f32.mrf.mxu0  ;;  %v11169_v55 = vpop.f32.mrf.mxu1  ;;  %9644 = vmatprep.mubr.msk.f32.mxu1 %vm2563_vm2, %v461_v51 }
 0x109   : > { %13227 = vst [vmem:[#allocation14_spill] sm:$0xff] %v11167_v54  ;;  %13228 = vst [vmem:[#allocation15_spill] sm:$0xff] %v11169_v55  ;;  %v1347_v56 = vadd.f32 %v9467_v52, %v1116_v53  ;;  %v11332_v54 = vld [vmem:[%s10668_s24 + $0x169] sm:$0xff] }
 0x10a   : > { %v9444_v57 = vpop.f32.mrf.mxu0  ;;  %v9470_v58 = vpop.f32.mrf.mxu1  ;;  %13251 = vst [vmem:[#allocation38_spill] sm:$0xff] %v11332_v54 }
 0x10b   : > { %v1118_v59 = vadd.f32 %v9444_v57, %v846_v17 }
 0x10c   : > { %v11171_v60 = vpop.f32.mrf.mxu0  ;;  %v11173_v62 = vpop.f32.mrf.mxu1 }
 0x10d   : > { %13229 = vst [vmem:[#allocation16_spill] sm:$0xff] %v11171_v60  ;;  %13230 = vst [vmem:[#allocation17_spill] sm:$0xff] %v11173_v62  ;;  %v1349_v63 = vadd.f32 %v9470_v58, %v1118_v59 }
 0x10e   : > { %v9447_v5 = vpop.f32.mrf.mxu0  ;;  %v9473_v6 = vpop.f32.mrf.mxu1 }
 0x10f   : > { %v1120_v7 = vadd.f32 %v9447_v5, %v856_v22 }
 0x110   : > { %v11180_v10 = vpop.f32.mrf.mxu0  ;;  %v11182_v11 = vpop.f32.mrf.mxu1 }
 0x111   : > { %13231 = vst [vmem:[#allocation18_spill] sm:$0xff] %v11180_v10  ;;  %13232 = vst [vmem:[#allocation19_spill] sm:$0xff] %v11182_v11  ;;  %v1351_v12 = vadd.f32 %v9473_v6, %v1120_v7 }
 0x112   : > { %v9450_v15 = vpop.f32.mrf.mxu0  ;;  %v9476_v16 = vpop.f32.mrf.mxu1 }
 0x113   : > { %v1122_v17 = vadd.f32 %v9450_v15, %v866_v27 }
 0x114   : > { %v11188_v20 = vpop.f32.mrf.mxu0  ;;  %v11190_v21 = vpop.f32.mrf.mxu1 }
 0x115   : > { %13233 = vst [vmem:[#allocation20_spill] sm:$0xff] %v11190_v21  ;;  %v1353_v22 = vadd.f32 %v9476_v16, %v1122_v17  ;;  %v881_v21 = vadd.f32 %v11157_v39, %v11155_v38 }
 0x116   : > { %v9453_v25 = vpop.f32.mrf.mxu0  ;;  %v9479_v26 = vpop.f32.mrf.mxu1 }
 0x117   : > { %v1124_v30 = vadd.f32 %v9453_v25, %v876_v32 }
 0x118   : > { %v11194_v31 = vpop.f32.mrf.mxu0  ;;  %v11196_v61 = vpop.f32.mrf.mxu1 }
 0x119   : > { %v1355_v35 = vadd.f32 %v9479_v26, %v1124_v30 }
 0x11a   : > { %v9456_v0 = vpop.f32.mrf.mxu0  ;;  %v11198_v36 = vpop.f32.mrf.mxu1 }
 0x11b   : > { %v11200_v27 = vadd.f32 %v9456_v0, %v886_v37  ;;  %v11240_v0 = vld [vmem:[%s10668_s24 + $0xf1] sm:$0xff] }
 0x11c   : > { %v11202_v40 = vpop.f32.mrf.mxu0  ;;  %v11204_v41 = vpop.f32.mrf.mxu1  ;;  %9692 = vmatprep.mubr.msk.f32.mxu0 %vm505_vm1, %v11240_v0 }
 0x11e   : > { %v9459_v45 = vpop.f32.mrf.mxu0  ;;  %v11206_v2 = vpop.f32.mrf.mxu1 }
 0x11f   : > { %v11208_v46 = vadd.f32 %v9459_v45, %v896_v42 }
 0x120   : > { %v11210_v32 = vpop.f32.mrf.mxu0  ;;  %v11212_v47 = vpop.f32.mrf.mxu1 }
 0x122   : > { %v9490_v37 = vpop.f32.mrf.mxu0  ;;  %v9516_v52 = vpop.f32.mrf.mxu1 }
 0x123   : > { %v1575_v53 = vadd.f32 %v9490_v37, %v1345_v50 }
 0x124   : > { %v11218_v57 = vpop.f32.mrf.mxu0  ;;  %v11220_v58 = vpop.f32.mrf.mxu1 }
 0x125   : > { %13234 = vst [vmem:[#allocation21_spill] sm:$0xff] %v11218_v57  ;;  %13235 = vst [vmem:[#allocation22_spill] sm:$0xff] %v11220_v58  ;;  %v11222_v42 = vadd.f32 %v9516_v52, %v1575_v53 }
 0x126   : > { %v9493_v59 = vpop.f32.mrf.mxu0  ;;  %v9519_v1 = vpop.f32.mrf.mxu1 }
 0x127   : > { %v1577_v5 = vadd.f32 %v9493_v59, %v1347_v56  ;;  %v8419_v56 = vld [vmem:[%s13217_s1 + $0x8] sm:$0x7] }
 0x128   : > { %v11224_v6 = vpop.f32.mrf.mxu0  ;;  %v11226_v7 = vpop.f32.mrf.mxu1  ;;  %9736 = vmatprep.subr.msk.mxu0 %vm554_vm0, %v8419_v56  ;;  %v11260_v59 = vld [vmem:[%s10668_s24 + $0x109] sm:$0xff] }
 0x129   : > { %13236 = vst [vmem:[#allocation23_spill] sm:$0xff] %v11224_v6  ;;  %13237 = vst [vmem:[#allocation24_spill] sm:$0xff] %v11226_v7  ;;  %v11228_v15 = vadd.f32 %v9519_v1, %v1577_v5  ;;  %9737 = vmatpush3.msk.msra.mxu0 %vm554_vm0, %v8419_v56  ;;  %v11278_v56 = vld [vmem:[%s10668_s24 + $0x121] sm:$0xff]  ;;  %v11285_v7 = vld [vmem:[%s10668_s24 + $0x129] sm:$0xff] }
 0x12a   : > { %v9496_v16 = vpop.f32.mrf.mxu0  ;;  %v9522_v17 = vpop.f32.mrf.mxu1 }
 0x12b   : > { %v1579_v50 = vadd.f32 %v9496_v16, %v1349_v63  ;;  %v11248_v63 = vld [vmem:[%s10668_s24 + $0xf9] sm:$0xff] }
 0x12c   : > { %v11230_v25 = vpop.f32.mrf.mxu0  ;;  %v11232_v26 = vpop.f32.mrf.mxu1  ;;  %9693 = vmatmul.mubr.msk.f32.gmra.mxu0 %vm505_vm1, %v11248_v63 }
 0x12d   : > { %13238 = vst [vmem:[#allocation25_spill] sm:$0xff] %v11230_v25  ;;  %13239 = vst [vmem:[#allocation26_spill] sm:$0xff] %v11232_v26  ;;  %v11234_v30 = vadd.f32 %v9522_v17, %v1579_v50  ;;  %9695 = vmatprep.mubr.msk.f32.mxu0 %vm505_vm1, %v11260_v59 }
 0x12e   : > { %v9499_v45 = vpop.f32.mrf.mxu0  ;;  %v11242_v51 = vpop.f32.mrf.mxu1 }
 0x12f   : > { %v11250_v37 = vadd.f32 %v9499_v45, %v1351_v12  ;;  %v11267_v12 = vld [vmem:[%s10668_s24 + $0x111] sm:$0xff] }
 0x130   : > { %v11253_v52 = vpop.f32.mrf.mxu0  ;;  %v11255_v53 = vpop.f32.mrf.mxu1  ;;  %9696 = vmatmul.mubr.msk.f32.gmra.mxu0 %vm505_vm1, %v11267_v12 }
 0x131   : > { %13240 = vst [vmem:[#allocation27_spill] sm:$0xff] %v11253_v52  ;;  %13241 = vst [vmem:[#allocation28_spill] sm:$0xff] %v11255_v53  ;;  %9698 = vmatprep.mubr.msk.f32.mxu0 %vm505_vm1, %v11278_v56 }
 0x132   : > { %v9502_v1 = vpop.f32.mrf.mxu0  ;;  %v11262_v5 = vpop.f32.mrf.mxu1 }
 0x133   : > { %v11269_v16 = vadd.f32 %v9502_v1, %v1353_v22 }
 0x134   : > { %v11271_v17 = vpop.f32.mrf.mxu0  ;;  %v11273_v50 = vpop.f32.mrf.mxu1  ;;  %9699 = vmatmul.mubr.msk.f32.gmra.mxu0 %vm505_vm1, %v11285_v7 }
 0x135   : > { %13242 = vst [vmem:[#allocation29_spill] sm:$0xff] %v11271_v17  ;;  %13243 = vst [vmem:[#allocation30_spill] sm:$0xff] %v11273_v50  ;;  %9701 = vmatprep.mubr.msk.f32.mxu0 %vm505_vm1, %v11296_v49 }
 0x136   : > { %v9505_v45 = vpop.f32.mrf.mxu0  ;;  %v11280_v58 = vpop.f32.mrf.mxu1 }
 0x137   : > { %v11287_v22 = vadd.f32 %v9505_v45, %v1355_v35  ;;  %v11305_v35 = vld [vmem:[%s10668_s24 + $0x141] sm:$0xff] }
 0x138   : > { %v11289_v1 = vpop.f32.mrf.mxu0  ;;  %v11291_v57 = vpop.f32.mrf.mxu1  ;;  %13246 = vst [vmem:[#allocation33_spill] sm:$0xff] %v11305_v35  ;;  %9702 = vmatmul.mubr.msk.f32.gmra.mxu0 %vm505_vm1, %v11305_v35  ;;  %v8404_v35 = vld [vmem:[%s10668_s24 + $0xca] sm:$0xff] }
 0x139   : > { %13244 = vst [vmem:[#allocation31_spill] sm:$0xff] %v11291_v57  ;;  %9704 = vmatprep.mubr.msk.f32.mxu0 %vm505_vm1, %v11314_v48  ;;  %v8403_v48 = vld [vmem:[%s10668_s24 + $0xc2] sm:$0xff] }
 0x13a   : > { %v11298_v26 = vpop.f32.mrf.mxu0  ;;  %v11300_v6 = vpop.f32.mrf.mxu1 }
 0x13c   : > { %v11307_v45 = vpop.f32.mrf.mxu0  ;;  %v11309_v55 = vpop.f32.mrf.mxu1  ;;  %9705 = vmatmul.mubr.msk.f32.gmra.mxu0 %vm505_vm1, %v11323_v9 }
 0x13d   : > { %9707 = vmatprep.mubr.msk.f32.mxu0 %vm505_vm1, %v11332_v54 }
 0x13e   : > { %v11316_v53 = vpop.f32.mrf.mxu0  ;;  %v11318_v25 = vpop.f32.mrf.mxu1 }
 0x13f   : > { %13248 = vst [vmem:[#allocation35_spill] sm:$0xff] %v11318_v25 }
 0x140   : > { %v11325_v8 = vpop.f32.mrf.mxu0  ;;  %v11327_v62 = vpop.f32.mrf.mxu1  ;;  %9708 = vmatmul.mubr.msk.f32.gmra.mxu0 %vm505_vm1, %v11337_v14 }
 0x141   : > { %13250 = vst [vmem:[#allocation37_spill] sm:$0xff] %v11327_v62  ;;  %9738 = vmatprep.mubr.msk.f32.mxu0 %vm505_vm1, %v8403_v48  ;;  %v8487_v48 = vld [vmem:[%s13217_s1 + $0x10] sm:$0x7] }
 0x142   : > { %v9542_v50 = vpop.f32.mrf.mxu0  ;;  %v9568_v52 = vpop.f32.mrf.mxu1  ;;  %9788 = vmatprep.subr.msk.mxu0 %vm554_vm0, %v8487_v48 }
 0x143   : > { %v2036_v13 = vadd.f32 %v9542_v50, %v11222_v42 }
 0x144   : > { %v11340_v11 = vpop.f32.mrf.mxu0  ;;  %v11342_v60 = vpop.f32.mrf.mxu1  ;;  %9739 = vmatmul.mubr.msk.f32.vlgmr.msra.gmra.mxu0 %vm505_vm1, %v8404_v35  ;;  %v11375_v35 = vld [vmem:[%s10668_s24 + $0xfa] sm:$0xff] }
 0x145   : > { %13253 = vst [vmem:[#allocation40_spill] sm:$0xff] %v11340_v11  ;;  %13254 = vst [vmem:[#allocation41_spill] sm:$0xff] %v11342_v60  ;;  %9741 = vmatprep.mubr.msk.f32.mxu0 %vm505_vm1, %v11119_v3  ;;  %v11369_v3 = vld [vmem:[%s10668_s24 + $0xf2] sm:$0xff]  ;;  %9789 = vmatpush3.msk.msra.mxu0 %vm554_vm0, %v8487_v48 }
 0x146   : > { %v9545_v9 = vpop.f32.mrf.mxu0  ;;  %v9571_v57 = vpop.f32.mrf.mxu1  ;;  %13258 = vst [vmem:[#allocation45_spill] sm:$0xff] %v11369_v3  ;;  %13259 = vst [vmem:[#allocation46_spill] sm:$0xff] %v11375_v35  ;;  %v11389_v48 = vld [vmem:[%s10668_s24 + $0x112] sm:$0xff] }
 0x147   : > { %v2038_v54 = vadd.f32 %v9545_v9, %v11228_v15  ;;  %13262 = vst [vmem:[#allocation49_spill] sm:$0xff] %v11389_v48 }
 0x148   : > { %v11350_v62 = vpop.f32.mrf.mxu0  ;;  %v11361_v9 = vpop.f32.mrf.mxu1  ;;  %9742 = vmatmul.mubr.msk.f32.gmra.mxu0 %vm505_vm1, %v11125_v4  ;;  %v11382_v4 = vld [vmem:[%s10668_s24 + $0x10a] sm:$0xff] }
 0x149   : > { %13255 = vst [vmem:[#allocation42_spill] sm:$0xff] %v11350_v62  ;;  %13256 = vst [vmem:[#allocation43_spill] sm:$0xff] %v11361_v9  ;;  %9744 = vmatprep.mubr.msk.f32.mxu0 %vm505_vm1, %v11369_v3  ;;  %v11398_v62 = vld [vmem:[%s10668_s24 + $0x122] sm:$0xff] }
 0x14a   : > { %v9548_v42 = vpop.f32.mrf.mxu0  ;;  %13261 = vst [vmem:[#allocation48_spill] sm:$0xff] %v11382_v4  ;;  %13265 = vst [vmem:[#allocation52_spill] sm:$0xff] %v11398_v62 }
 0x14b   : > { %v11356_v50 = vadd.f32 %v9548_v42, %v11234_v30  ;;  %v9574_v42 = vpop.f32.mrf.mxu1 }
 0x14c   : > { %v11363_v15 = vpop.f32.mrf.mxu0  ;;  %9745 = vmatmul.mubr.msk.f32.gmra.mxu0 %vm505_vm1, %v11375_v35  ;;  %v11405_v35 = vld [vmem:[%s10668_s24 + $0x12a] sm:$0xff] }
 0x14d   : > { %13257 = vst [vmem:[#allocation44_spill] sm:$0xff] %v11363_v15  ;;  %9747 = vmatprep.mubr.msk.f32.mxu0 %vm505_vm1, %v11382_v4  ;;  %v11391_v9 = vpop.f32.mrf.mxu1  ;;  %13266 = vst [vmem:[#allocation53_spill] sm:$0xff] %v11405_v35 }
 0x14e   : > { %v9551_v30 = vpop.f32.mrf.mxu0  ;;  %13263 = vst [vmem:[#allocation50_spill] sm:$0xff] %v11391_v9  ;;  %v11412_v9 = vld [vmem:[%s10668_s24 + $0x13a] sm:$0xff] }
 0x14f   : > { %v9577_v15 = vpop.f32.mrf.mxu1  ;;  %13268 = vst [vmem:[#allocation55_spill] sm:$0xff] %v11412_v9 }
 0x150   : > { %v11377_v60 = vpop.f32.mrf.mxu0  ;;  %9748 = vmatmul.mubr.msk.f32.gmra.mxu0 %vm505_vm1, %v11389_v48 }
 0x151   : > { %13260 = vst [vmem:[#allocation47_spill] sm:$0xff] %v11377_v60  ;;  %9750 = vmatprep.mubr.msk.f32.mxu0 %vm505_vm1, %v11398_v62  ;;  %v11419_v62 = vld [vmem:[%s10668_s24 + $0x142] sm:$0xff]  ;;  %v11421_v14 = vpop.f32.mrf.mxu1 }
 0x152   : > { %v11386_v3 = vpop.f32.mrf.mxu0  ;;  %13269 = vst [vmem:[#allocation56_spill] sm:$0xff] %v11419_v62  ;;  %13270 = vst [vmem:[#allocation57_spill] sm:$0xff] %v11421_v14  ;;  %v11444_v14 = vld [vmem:[%s10668_s24 + $0x16a] sm:$0xff] }
 0x153   : > { %v11437_v17 = vpop.f32.mrf.mxu1  ;;  %13276 = vst [vmem:[#allocation63_spill] sm:$0xff] %v11444_v14 }
 0x154   : > { %v11393_v11 = vpop.f32.mrf.mxu0  ;;  %9751 = vmatmul.mubr.msk.f32.gmra.mxu0 %vm505_vm1, %v11405_v35 }
 0x155   : > { %13264 = vst [vmem:[#allocation51_spill] sm:$0xff] %v11393_v11  ;;  %9753 = vmatprep.mubr.msk.f32.mxu0 %vm505_vm1, %v11412_v9  ;;  %v11435_v9 = vld [vmem:[%s10668_s24 + $0x15a] sm:$0xff] }
 0x156   : > { %v11402_v4 = vpop.f32.mrf.mxu0  ;;  %13274 = vst [vmem:[#allocation61_spill] sm:$0xff] %v11435_v9 }
 0x158   : > { %v11407_v60 = vpop.f32.mrf.mxu0  ;;  %9754 = vmatmul.mubr.msk.f32.gmra.mxu0 %vm505_vm1, %v11419_v62  ;;  %v2266_v62 = vadd.f32 %v9568_v52, %v2036_v13  ;;  %v8471_v13 = vld [vmem:[%s10668_s24 + $0xd9] sm:$0xff]  ;;  %v2268_v52 = vadd.f32 %v9571_v57, %v2038_v54  ;;  %v2270_v54 = vadd.f32 %v9574_v42, %v11356_v50 }
 0x159   : > { %13267 = vst [vmem:[#allocation54_spill] sm:$0xff] %v11407_v60  ;;  %v11428_v60 = vld [vmem:[%s10668_s24 + $0x152] sm:$0xff] }
 0x15a   : > { %v11416_v48 = vpop.f32.mrf.mxu0  ;;  %13272 = vst [vmem:[#allocation59_spill] sm:$0xff] %v11428_v60  ;;  %9756 = vmatprep.mubr.msk.f32.mxu0 %vm505_vm1, %v11428_v60  ;;  %v8555_v50 = vld [vmem:[%s13217_s1 + $0x18] sm:$0x7] }
 0x15b   : > { %9840 = vmatprep.subr.msk.mxu0 %vm554_vm0, %v8555_v50 }
 0x15c   : > { %v11423_v11 = vpop.f32.mrf.mxu0  ;;  %9757 = vmatmul.mubr.msk.f32.gmra.mxu0 %vm505_vm1, %v11435_v9 }
 0x15d   : > { %13271 = vst [vmem:[#allocation58_spill] sm:$0xff] %v11423_v11  ;;  %9759 = vmatprep.mubr.msk.f32.mxu0 %vm505_vm1, %v11444_v14  ;;  %v11451_v11 = vpop.f32.mrf.mxu1  ;;  %v1811_v14 = vadd.f32 %v11242_v51, %v11250_v37  ;;  %v871_v51 = vadd.f32 %v11153_v34, %v11151_v33  ;;  %v1125_v37 = vadd.f32 %v11202_v40, %v881_v21 }
 0x15e   : > { %v11432_v35 = vpop.f32.mrf.mxu0  ;;  %13277 = vst [vmem:[#allocation64_spill] sm:$0xff] %v11451_v11 }
 0x15f   : > { %13273 = vst [vmem:[#allocation60_spill] sm:$0xff] %v11432_v35  ;;  %v2042_v10 = vadd.f32 %v9551_v30, %v1811_v14  ;;  %v1813_v14 = vadd.f32 %v11262_v5, %v11269_v16 }
 0x160   : > { %v11439_v19 = vpop.f32.mrf.mxu0  ;;  %9760 = vmatmul.mubr.msk.f32.gmra.mxu0 %vm505_vm1, %v11449_v18 }
 0x161   : > { %13275 = vst [vmem:[#allocation62_spill] sm:$0xff] %v11439_v19  ;;  %v11456_v19 = vld [vmem:[%s13278_s2] ss:$0 sm:$0xff]  ;;  %9790 = vmatprep.mubr.msk.f32.mxu0 %vm505_vm1, %v8471_v13  ;;  %v2272_v33 = vadd.f32 %v9577_v15, %v2042_v10  ;;  %v2044_v40 = vadd.f32 %v11386_v3, %v1813_v14  ;;  %v861_v3 = vadd.f32 %v11149_v29, %v11147_v28  ;;  %v13285_v14 = vld [vmem:[#allocation10_spill] sm:$0xff] }
 0x162   : > { %v9594_v60 = vpop.f32.mrf.mxu0  ;;  %v851_v13 = vadd.f32 %v11145_v24, %v11143_v23  ;;  %v13280_v23 = vld [vmem:[#allocation32_spill] sm:$0xff]  ;;  %v13281_v24 = vld [vmem:[#allocation18_spill] sm:$0xff] }
 0x163   : > { %v2496_v35 = vadd.f32 %v9594_v60, %v2266_v62  ;;  %v8472_v62 = vld [vmem:[%s10668_s24 + $0xe1] sm:$0xff]  ;;  %v1121_v28 = vadd.f32 %v11188_v20, %v861_v3 }
 0x164   : > { %v11458_v25 = vpop.f32.mrf.mxu0  ;;  %9791 = vmatmul.mubr.msk.f32.vlgmr.msra.gmra.mxu0 %vm505_vm1, %v8472_v62 }
 0x165   : > { %13279 = vst [vmem:[#allocation65_spill] sm:$0xff] %v11458_v25  ;;  %v2518_v9 = vadd.f32 %v11456_v19, %v2496_v35  ;;  %v9583_v25 = vpop.f32.mrf.mxu1  ;;  %9793 = vmatprep.mubr.msk.f32.mxu0 %vm505_vm1, %v11240_v0  ;;  %v1357_v0 = vadd.f32 %v11198_v36, %v11200_v27  ;;  %9841 = vmatpush3.msk.msra.mxu0 %vm554_vm0, %v8555_v50  ;;  %v13288_v50 = vld [vmem:[#allocation31_spill] sm:$0xff] }
 0x166   : > { %v9597_v60 = vpop.f32.mrf.mxu0  ;;  %v1815_v27 = vadd.f32 %v11280_v58, %v11287_v22 }
 0x167   : > { %v2498_v11 = vadd.f32 %v9597_v60, %v2268_v52  ;;  %v2534_v38 = vmax.f32 %v2518_v9, 0.0  ;;  %v11489_v34 = vpop.f32.mrf.mxu1 }
 0x168   : > { %v11470_v49 = vpop.f32.mrf.mxu0  ;;  %9794 = vmatmul.mubr.msk.f32.gmra.mxu0 %vm505_vm1, %v11248_v63  ;;  %v1587_v63 = vadd.f32 %v11298_v26, %v1357_v0  ;;  %v2046_v58 = vadd.f32 %v11402_v4, %v1815_v27  ;;  %v13289_v0 = vld [vmem:[#allocation37_spill] sm:$0xff] }
 0x169   : > { %v2520_v57 = vadd.f32 %v11456_v19, %v2498_v11  ;;  %v891_v11 = vadd.f32 %v11161_v44, %v11159_v43  ;;  %9796 = vmatprep.mubr.msk.f32.mxu0 %vm505_vm1, %v11260_v59  ;;  %v1123_v43 = vadd.f32 %v11194_v31, %v871_v51  ;;  %v1356_v44 = vadd.f32 %v11204_v41, %v1125_v37  ;;  %v9586_v42 = vpop.f32.mrf.mxu1  ;;  %v13284_v37 = vld [vmem:[#allocation58_spill] sm:$0xff] }
 0x16a   : > { %v9600_v35 = vpop.f32.mrf.mxu0  ;;  %v1359_v59 = vadd.f32 %v11206_v2, %v11208_v46 }
 0x16b   : > { %v2536_v39 = vmax.f32 %v2520_v57, 0.0  ;;  %v2500_v30 = vadd.f32 %v9600_v35, %v2270_v54  ;;  %v1127_v10 = vadd.f32 %v11210_v32, %v891_v11  ;;  %v1586_v31 = vadd.f32 %v11307_v45, %v1356_v44  ;;  %v2246_v60 = vpop.f32.mrf.mxu1  ;;  %v13283_v57 = vld [vmem:[#allocation35_spill] sm:$0xff] }
 0x16c   : > { %v11491_v21 = vpop.f32.mrf.mxu0  ;;  %9797 = vmatmul.mubr.msk.f32.gmra.mxu0 %vm505_vm1, %v11267_v12  ;;  %v2274_v32 = vadd.f32 %v11437_v17, %v2044_v40  ;;  %v1354_v29 = vadd.f32 %v11196_v61, %v1123_v43  ;;  %v1817_v12 = vadd.f32 %v11300_v6, %v1587_v63  ;;  %v1589_v17 = vadd.f32 %v11316_v53, %v1359_v59  ;;  %v13290_v43 = vld [vmem:[#allocation33_spill] sm:$0xff]  ;;  %v13294_v59 = vld [vmem:[#allocation19_spill] sm:$0xff] }
 0x16d   : > { %v11497_v5 = vmax.f32 %v2534_v38, %v2536_v39  ;;  %v2522_v16 = vadd.f32 %v11456_v19, %v2500_v30  ;;  %9799 = vmatprep.mubr.msk.f32.mxu0 %vm505_vm1, %v11278_v56  ;;  %v1358_v2 = vadd.f32 %v11212_v47, %v1127_v10  ;;  %v1816_v56 = vadd.f32 %v11309_v55, %v1586_v31  ;;  %v9589_v40 = vpop.f32.mrf.mxu1  ;;  %v13291_v10 = vld [vmem:[#allocation60_spill] sm:$0xff] }
 0x16e   : > { %v9603_v36 = vpop.f32.mrf.mxu0  ;;  %v1584_v52 = vadd.f32 %v11289_v1, %v1354_v29  ;;  %v2276_v47 = vadd.f32 %v9583_v25, %v2046_v58  ;;  %v2048_v6 = vadd.f32 %v11416_v48, %v1817_v12  ;;  %v1119_v55 = vadd.f32 %v13281_v24, %v851_v13  ;;  %v13282_v1 = vld [vmem:[#allocation20_spill] sm:$0xff]  ;;  %v13286_v48 = vld [vmem:[#allocation11_spill] sm:$0xff]  ;;  %v13296_v29 = vld [vmem:[#allocation62_spill] sm:$0xff] }
 0x16f   : > { %v2538_v9 = vmax.f32 %v2522_v16, 0.0  ;;  %v2502_v15 = vadd.f32 %v9603_v36, %v2272_v33  ;;  %v1588_v20 = vadd.f32 %v11325_v8, %v1358_v2  ;;  %v1352_v8 = vadd.f32 %v13282_v1, %v1121_v28  ;;  %v13297_v12 = vld [vmem:[#allocation8_spill] sm:$0xff]  ;;  %v13303_v1 = vld [vmem:[#allocation14_spill] sm:$0xff] }
 0x170   : > { %v11514_v41 = vpop.f32.mrf.mxu0  ;;  %9800 = vmatmul.mubr.msk.f32.gmra.mxu0 %vm505_vm1, %v11285_v7  ;;  %v1819_v51 = vadd.f32 %v13283_v57, %v1589_v17  ;;  %v2047_v35 = vadd.f32 %v13284_v37, %v1816_v56  ;;  %v841_v38 = vadd.f32 %v13286_v48, %v13285_v14  ;;  %v1814_v11 = vadd.f32 %v13288_v50, %v1584_v52  ;;  %v13298_v17 = vld [vmem:[#allocation9_spill] sm:$0xff]  ;;  %v13300_v52 = vld [vmem:[#allocation30_spill] sm:$0xff] }
 0x171   : > { %v11520_v26 = vmax.f32 %v2536_v39, %v2538_v9  ;;  %v2524_v22 = vadd.f32 %v11456_v19, %v2502_v15  ;;  %9802 = vmatprep.mubr.msk.f32.mxu0 %vm505_vm1, %v13280_v23  ;;  %v13287_v39 = vld [vmem:[#allocation29_spill] sm:$0xff]  ;;  %v1818_v33 = vadd.f32 %v13289_v0, %v1588_v20  ;;  %v2278_v44 = vadd.f32 %v9586_v42, %v2048_v6  ;;  %v13293_v15 = vld [vmem:[#allocation16_spill] sm:$0xff]  ;;  %v2256_v20 = vpop.f32.mrf.mxu1 }
 0x172   : > { %v9606_v46 = vpop.f32.mrf.mxu0  ;;  %v1582_v30 = vadd.f32 %v13287_v39, %v1352_v8  ;;  %v2050_v36 = vadd.f32 %v13291_v10, %v1819_v51  ;;  %v1117_v3 = vadd.f32 %v13293_v15, %v841_v38  ;;  %v1350_v31 = vadd.f32 %v13294_v59, %v1119_v55  ;;  %v13301_v6 = vld [vmem:[#allocation36_spill] sm:$0xff]  ;;  %v13302_v55 = vld [vmem:[#allocation38_spill] sm:$0xff]  ;;  %v13305_v51 = vld [vmem:[#allocation51_spill] sm:$0xff] }
 0x173   : > { %v2540_v45 = vmax.f32 %v2524_v22, 0.0  ;;  %v2504_v4 = vadd.f32 %v9606_v46, %v2274_v32  ;;  %v13295_v32 = vld [vmem:[#allocation54_spill] sm:$0xff]  ;;  %v2277_v28 = vadd.f32 %v2246_v60, %v2047_v35  ;;  %v2049_v2 = vadd.f32 %v13296_v29, %v1818_v33  ;;  %v13307_v39 = vld [vmem:[#allocation7_spill] sm:$0xff]  ;;  %v13308_v50 = vld [vmem:[#allocation25_spill] sm:$0xff] }
 0x174   : > { %v11535_v61 = vpop.f32.mrf.mxu0  ;;  %9803 = vmatmul.mubr.msk.f32.gmra.mxu0 %vm505_vm1, %v13290_v43  ;;  %v2045_v58 = vadd.f32 %v13295_v32, %v1814_v11  ;;  %v1812_v56 = vadd.f32 %v13300_v52, %v1582_v30  ;;  %v13306_v38 = vld [vmem:[#allocation6_spill] sm:$0xff]  ;;  %v13309_v0 = vld [vmem:[#allocation28_spill] sm:$0xff] }
 0x175   : > { %v11540_v53 = vmax.f32 %v2538_v9, %v2540_v45  ;;  %v2526_v62 = vadd.f32 %v11456_v19, %v2504_v4  ;;  %v13292_v9 = vld [vmem:[#allocation34_spill] sm:$0xff]  ;;  %v13299_v4 = vld [vmem:[#allocation27_spill] sm:$0xff]  ;;  %v2279_v14 = vadd.f32 %v2256_v20, %v2049_v2  ;;  %v821_v30 = vadd.f32 %v13307_v39, %v13306_v38  ;;  %v13313_v32 = vld [vmem:[#allocation64_spill] sm:$0xff] }
 0x176   : > { %v9609_v54 = vpop.f32.mrf.mxu0  ;;  %9805 = vmatprep.mubr.msk.f32.mxu0 %vm505_vm1, %v13292_v9  ;;  %v1580_v13 = vadd.f32 %v13299_v4, %v1350_v31  ;;  %v2043_v37 = vadd.f32 %v13305_v51, %v1812_v56  ;;  %v2275_v35 = vadd.f32 %v11489_v34, %v2045_v58  ;;  %v11588_v10 = vld [vmem:[%s10668_s24 + $0x181] sm:$0xff] }
 0x177   : > { %v2542_v7 = vmax.f32 %v2526_v62, 0.0  ;;  %v2506_v25 = vadd.f32 %v9609_v54, %v2276_v47  ;;  %v2280_v62 = vadd.f32 %v9589_v40, %v2050_v36  ;;  %v13304_v54 = vld [vmem:[#allocation17_spill] sm:$0xff]  ;;  %v13322_v39 = vld [vmem:[#allocation42_spill] sm:$0xff] }
 0x178   : > { %v2466_v16 = vpop.f32.mrf.mxu0  ;;  %9806 = vmatmul.mubr.msk.f32.gmra.mxu0 %vm505_vm1, %v13301_v6  ;;  %v1348_v57 = vadd.f32 %v13304_v54, %v1117_v3  ;;  %v1810_v33 = vadd.f32 %v13309_v0, %v1580_v13  ;;  %v13311_v3 = vld [vmem:[#allocation12_spill] sm:$0xff]  ;;  %v2273_v58 = vadd.f32 %v13313_v32, %v2043_v37  ;;  %v13320_v51 = vld [vmem:[#allocation21_spill] sm:$0xff] }
 0x179   : > { %v11557_v27 = vmax.f32 %v2540_v45, %v2542_v7  ;;  %v2528_v63 = vadd.f32 %v11456_v19, %v2506_v25  ;;  %v831_v45 = vadd.f32 %v13298_v17, %v13297_v12  ;;  %9808 = vmatprep.mubr.msk.f32.mxu0 %vm505_vm1, %v13302_v55  ;;  %v2505_v40 = vadd.f32 %v2466_v16, %v2275_v35  ;;  %v13312_v16 = vld [vmem:[#allocation15_spill] sm:$0xff]  ;;  %v13316_v17 = vld [vmem:[#allocation26_spill] sm:$0xff] }
 0x17a   : > { %v9612_v22 = vpop.f32.mrf.mxu0  ;;  %v1578_v11 = vadd.f32 %v13308_v50, %v1348_v57  ;;  %v1113_v59 = vadd.f32 %v13311_v3, %v821_v30  ;;  %v2503_v4 = vadd.f32 %v11535_v61, %v2273_v58  ;;  %v11608_v13 = vld [vmem:[%s10668_s24 + $0xf0] sm:$0xff]  ;;  %v13319_v61 = vld [vmem:[#allocation57_spill] sm:$0xff]  ;;  %v11629_v35 = vld [vmem:[%s10668_s24 + $0x108] sm:$0xff] }
 0x17b   : > { %v2544_v42 = vmax.f32 %v2528_v63, 0.0  ;;  %v2508_v46 = vadd.f32 %v9612_v22, %v2278_v44  ;;  %v1115_v8 = vadd.f32 %v13303_v1, %v831_v45  ;;  %v13310_v44 = vld [vmem:[#allocation39_spill] sm:$0xff]  ;;  %v2527_v52 = vadd.f32 %v11456_v19, %v2505_v40  ;;  %v11624_v57 = vld [vmem:[%s10668_s24 + $0xf8] sm:$0xff]  ;;  %v13323_v50 = vld [vmem:[#allocation50_spill] sm:$0xff] }
 0x17c   : > { %v2476_v47 = vpop.f32.mrf.mxu0  ;;  %9809 = vmatmul.mubr.msk.f32.gmra.mxu0 %vm505_vm1, %v13310_v44  ;;  %v11600_v22 = vld [vmem:[%s10668_s24 + $0x189] sm:$0xff]  ;;  %v1808_v45 = vadd.f32 %v13316_v17, %v1578_v11  ;;  %v11659_v3 = vld [vmem:[%s10668_s24 + $0x120] sm:$0xff] }
 0x17d   : > { %v11572_v23 = vmax.f32 %v2542_v7, %v2544_v42  ;;  %v2530_v60 = vadd.f32 %v11456_v19, %v2508_v46  ;;  %v2507_v24 = vadd.f32 %v2476_v47, %v2277_v28  ;;  %9811 = vmatprep.mubr.msk.f32.mxu0 %vm505_vm1, %v11588_v10  ;;  %v1346_v31 = vadd.f32 %v13312_v16, %v1115_v8  ;;  %v13314_v28 = vld [vmem:[#allocation47_spill] sm:$0xff]  ;;  %v13324_v40 = vld [vmem:[#allocation22_spill] sm:$0xff] }
 0x17e   : > { %v9615_v25 = vpop.f32.mrf.mxu0  ;;  %v2041_v29 = vadd.f32 %v13314_v28, %v1810_v33  ;;  %v13315_v46 = vld [vmem:[#allocation23_spill] sm:$0xff]  ;;  %v2543_v38 = vmax.f32 %v2527_v52, 0.0  ;;  %v8623_v33 = vld [vmem:[%s13217_s1 + $0x20] sm:$0x7]  ;;  %v11676_v28 = vld [vmem:[%s10668_s24 + $0x138] sm:$0xff] }
 0x17f   : > { %v2546_v48 = vmax.f32 %v2530_v60, 0.0  ;;  %v2510_v7 = vadd.f32 %v9615_v25, %v2280_v62  ;;  %v2529_v36 = vadd.f32 %v11456_v19, %v2507_v24  ;;  %v1576_v12 = vadd.f32 %v13315_v46, %v1346_v31  ;;  %v13317_v62 = vld [vmem:[#allocation13_spill] sm:$0xff]  ;;  %v13318_v24 = vld [vmem:[#allocation44_spill] sm:$0xff]  ;;  %9892 = vmatprep.subr.msk.mxu0 %vm554_vm0, %v8623_v33  ;;  %v13326_v31 = vld [vmem:[#allocation43_spill] sm:$0xff] }
 0x180   : > { %v2486_v43 = vpop.f32.mrf.mxu0  ;;  %9812 = vmatmul.mubr.msk.f32.gmra.mxu0 %vm505_vm1, %v11600_v22  ;;  %v1344_v60 = vadd.f32 %v13317_v62, %v1113_v59  ;;  %v2039_v1 = vadd.f32 %v13318_v24, %v1808_v45  ;;  %v2271_v8 = vadd.f32 %v13319_v61, %v2041_v29  ;;  %v13321_v25 = vld [vmem:[#allocation24_spill] sm:$0xff]  ;;  %v13327_v46 = vld [vmem:[#allocation41_spill] sm:$0xff]  ;;  %v11713_v24 = vld [vmem:[%s10668_s24 + $0x168] sm:$0xff] }
 0x181   : > { %v11590_v34 = vmax.f32 %v2544_v42, %v2546_v48  ;;  %v2532_v63 = vadd.f32 %v11456_v19, %v2510_v7  ;;  %v2509_v15 = vadd.f32 %v2486_v43, %v2279_v14  ;;  %v2545_v56 = vmax.f32 %v2529_v36, 0.0  ;;  %9842 = vmatprep.mubr.msk.f32.mxu0 %vm505_vm1, %v11608_v13  ;;  %v13325_v59 = vld [vmem:[#allocation40_spill] sm:$0xff]  ;;  %v11691_v45 = vld [vmem:[%s10668_s24 + $0x140] sm:$0xff] }
 0x182   : > { %v1574_v37 = vadd.f32 %v13320_v51, %v1344_v60  ;;  %v1806_v14 = vadd.f32 %v13321_v25, %v1576_v12  ;;  %v2525_v7 = vadd.f32 %v11456_v19, %v2503_v4  ;;  %v2269_v11 = vadd.f32 %v13323_v50, %v2039_v1  ;;  %v13328_v4 = vld [vmem:[#allocation65_spill] sm:$0xff]  ;;  %v11724_v51 = vld [vmem:[%s10668_s24 + $0x170] sm:$0xff] }
 0x183   : > { %v2548_v2 = vmax.f32 %v2532_v63, 0.0  ;;  %v2531_v42 = vadd.f32 %v11456_v19, %v2509_v15  ;;  %v11642_v0 = vmax.f32 %v2543_v38, %v2545_v56  ;;  %v11709_v60 = vld [vmem:[%s10668_s24 + $0x158] sm:$0xff]  ;;  %v11761_v50 = vld [vmem:[%s13169_s5 + $0x20] sm:$0xff] }
 0x184   : > { %9843 = vmatmul.mubr.msk.f32.vlgmr.msra.gmra.mxu0 %vm505_vm1, %v11624_v57  ;;  %v2037_v30 = vadd.f32 %v13322_v39, %v1806_v14  ;;  %v1804_v43 = vadd.f32 %v13324_v40, %v1574_v37  ;;  %v2499_v36 = vadd.f32 %v11491_v21, %v2269_v11  ;;  %v2541_v15 = vmax.f32 %v2525_v7, 0.0  ;;  %v11671_v21 = vld [vmem:[%s10668_s24 + $0x128] sm:$0xff]  ;;  %v11728_v37 = vld [vmem:[%s10668_s24 + $0x180] sm:$0xff]  ;;  %v8553_v7 = vld [vmem:[%s10668_s24 + $0x198] sm:$0xff] }
 0x185   : > { %v11613_v20 = vmax.f32 %v2546_v48, %v2548_v2  ;;  %v2547_v47 = vmax.f32 %v2531_v42, 0.0  ;;  %v2501_v48 = vadd.f32 %v11514_v41, %v2271_v8  ;;  %9845 = vmatprep.mubr.msk.f32.mxu0 %vm505_vm1, %v11629_v35  ;;  %v11646_v41 = vld [vmem:[%s10668_s24 + $0x110] sm:$0xff]  ;;  %9893 = vmatpush3.msk.msra.mxu0 %vm554_vm0, %v8623_v33  ;;  %v11736_v14 = vld [vmem:[%s10668_s24 + $0x188] sm:$0xff]  ;;  %v8554_v39 = vld [vmem:[%s10668_s24 + $0x1a0] sm:$0xff] }
 0x186   : > { %v2035_v16 = vadd.f32 %v13325_v59, %v1804_v43  ;;  %v2267_v32 = vadd.f32 %v13326_v31, %v2037_v30  ;;  %v11667_v58 = vmax.f32 %v2541_v15, %v2543_v38  ;;  %v2521_v2 = vadd.f32 %v11456_v19, %v2499_v36  ;;  %v463_v38 = vld [vmem:[%s13169_s5 + $0x10] sm:$0xff]  ;;  %v464_v30 = vld [vmem:[%s13169_s5 + $0x18] sm:$0xff]  ;;  %v8067_v36 = vld [vmem:[%s13169_s5 + $0x28] sm:$0xff] }
 0x187   : > { %v11620_v54 = vmax.f32 %v2545_v56, %v2547_v47  ;;  %9616 = vmatprep.subr.mxu1 %v11613_v20  ;;  %v2523_v63 = vadd.f32 %v11456_v19, %v2501_v48  ;;  %v462_v48 = vld [vmem:[%s13169_s5 + $0x8] sm:$0xff]  ;;  %v13329_v11 = vld [vmem:[#allocation45_spill] sm:$0xff]  ;;  %v13333_v33 = vld [vmem:[#allocation52_spill] sm:$0xff] }
 0x188   : > { %9617 = vmatpush3.msra.mxu1 %v11613_v20  ;;  %9846 = vmatmul.mubr.msk.f32.gmra.mxu0 %vm505_vm1, %v11646_v41  ;;  %v2497_v29 = vadd.f32 %v11470_v49, %v2267_v32  ;;  %v2265_v12 = vadd.f32 %v13327_v46, %v2035_v16  ;;  %v11695_v49 = vld [vmem:[%s10668_s24 + $0x150] sm:$0xff]  ;;  %v2537_v47 = vmax.f32 %v2521_v2, 0.0  ;;  %v13338_v43 = vld [vmem:[#allocation61_spill] sm:$0xff] }
 0x189   : > { %9618 = vmatprep.subr.mxu1 %v11620_v54  ;;  %9848 = vmatprep.mubr.msk.f32.mxu0 %vm505_vm1, %v11659_v3  ;;  %v2539_v42 = vmax.f32 %v2523_v63, 0.0  ;;  %v13336_v40 = vld [vmem:[#allocation56_spill] sm:$0xff]  ;;  %v11837_v16 = vld [vmem:[%s10668_s24 + $0x18a] sm:$0xff]  ;;  %v8621_v31 = vld [vmem:[%s10668_s24 + $0x19a] sm:$0xff] }
 0x18a   : > { %9619 = vmatpush3.msra.mxu1 %v11620_v54  ;;  %v2495_v52 = vadd.f32 %v13328_v4, %v2265_v12  ;;  %v2519_v56 = vadd.f32 %v11456_v19, %v2497_v29  ;;  %v8068_v63 = vld [vmem:[%s13169_s5 + $0x30] sm:$0xff]  ;;  %v8069_v59 = vld [vmem:[%s13169_s5 + $0x38] sm:$0xff]  ;;  %v8336_v32 = vld [vmem:[%s10668_s24 + $0xc0] sm:$0xff]  ;;  %v11889_v4 = vpop.f32.mrf.mxu0 }
 0x18b   : > { %9620 = vmatprep.subr.mxu1 %v11590_v34  ;;  %v11687_v17 = vmax.f32 %v2539_v42, %v2541_v15  ;;  %v11705_v62 = vmax.f32 %v2537_v47, %v2539_v42  ;;  %v11820_v15 = vld [vmem:[%s10668_s24 + $0x182] sm:$0xff]  ;;  %v8521_v2 = vld [vmem:[%s13217_s1 + $0x14] sm:$0x7]  ;;  %v10444_v42 = vld [vmem:[%s10668_s24 + $0xd8] sm:$0xff] }
 0x18c   : > { %9621 = vmatpush3.msra.mxu1 %v11590_v34  ;;  %9849 = vmatmul.mubr.msk.f32.gmra.mxu0 %vm505_vm1, %v11671_v21  ;;  %v2517_v1 = vadd.f32 %v11456_v19, %v2495_v52  ;;  %v2535_v61 = vmax.f32 %v2519_v56, 0.0  ;;  %v8337_v29 = vld [vmem:[%s10668_s24 + $0xc8] sm:$0xff]  ;;  %v10445_v46 = vld [vmem:[%s10668_s24 + $0xe0] sm:$0xff]  ;;  %v8437_v12 = vld [vmem:[%s10668_s24 + $0xd8] sm:$0xff]  ;;  %v11895_v56 = vpop.f32.mrf.mxu0 }
 0x18d   : > { %9622 = vmatprep.subr.mxu1 %v11642_v0  ;;  %9851 = vmatprep.mubr.msk.f32.mxu0 %vm505_vm1, %v11676_v28  ;;  %v8589_v52 = vld [vmem:[%s13217_s1 + $0x1c] sm:$0x7] }
 0x18e   : > { %9623 = vmatpush3.msra.mxu1 %v11642_v0  ;;  %v2551_v8 = vmax.f32 %v2535_v61, %v2537_v47  ;;  %v2533_v19 = vmax.f32 %v2517_v1, 0.0  ;;  %v11901_v47 = vpop.f32.mrf.mxu0 }
 0x18f   : > { %9624 = vmatprep.subr.mxu1 %v11572_v23 }
 0x190   : > { %9625 = vmatpush3.msra.mxu1 %v11572_v23  ;;  %9852 = vmatmul.mubr.msk.f32.gmra.mxu0 %vm505_vm1, %v11691_v45  ;;  %v2549_v25 = vmax.f32 %v2533_v19, %v2535_v61 }
 0x191   : > { %9626 = vmatprep.subr.mxu1 %v11667_v58  ;;  %9854 = vmatprep.mubr.msk.f32.mxu0 %vm505_vm1, %v11695_v49 }
 0x192   : > { %9627 = vmatpush3.msra.mxu1 %v11667_v58 }
 0x193   : > { %9628 = vmatprep.subr.mxu1 %v11557_v27 }
 0x194   : > { %9629 = vmatpush3.msra.mxu1 %v11557_v27  ;;  %9855 = vmatmul.mubr.msk.f32.gmra.mxu0 %vm505_vm1, %v11709_v60 }
 0x195   : > { %9630 = vmatprep.subr.mxu1 %v11687_v17  ;;  %9857 = vmatprep.mubr.msk.f32.mxu0 %vm505_vm1, %v11713_v24 }
 0x196   : > { %9631 = vmatpush3.msra.mxu1 %v11687_v17 }
 0x197   : > { %9632 = vmatprep.subr.mxu1 %v11540_v53 }
 0x198   : > { %9633 = vmatpush3.msra.mxu1 %v11540_v53  ;;  %9858 = vmatmul.mubr.msk.f32.gmra.mxu0 %vm505_vm1, %v11724_v51 }
 0x199   : > { %9634 = vmatprep.subr.mxu1 %v11705_v62  ;;  %9860 = vmatprep.mubr.msk.f32.mxu0 %vm505_vm1, %v11728_v37 }
 0x19a   : > { %9635 = vmatpush3.msra.mxu1 %v11705_v62 }
 0x19b   : > { %9636 = vmatprep.subr.mxu1 %v11520_v26 }
 0x19c   : > { %9637 = vmatpush3.msra.mxu1 %v11520_v26  ;;  %9861 = vmatmul.mubr.msk.f32.gmra.mxu0 %vm505_vm1, %v11736_v14 }
 0x19d   : > { %9638 = vmatprep.subr.mxu1 %v2551_v8  ;;  %9863 = vmatprep.mubr.msk.f32.mxu0 %vm505_vm1, %v8553_v7 }
 0x19e   : > { %9639 = vmatpush3.msra.mxu1 %v2551_v8 }
 0x19f   : > { %9640 = vmatprep.subr.mxu1 %v11497_v5 }
 0x1a0   : > { %9641 = vmatpush3.msra.mxu1 %v11497_v5  ;;  %9864 = vmatmul.mubr.msk.f32.gmra.mxu0 %vm505_vm1, %v8554_v39  ;;  %v10446_v39 = vld [vmem:[%s10668_s24 + $0xf1] sm:$0xff] }
 0x1a1   : > { %9642 = vmatprep.subr.mxu1 %v2549_v25  ;;  %9894 = vmatprep.mubr.msk.f32.mxu0 %vm505_vm1, %v13329_v11 }
 0x1a2   : > { %9643 = vmatpush3.msra.mxu1 %v2549_v25 }
 0x1a3   : > { %9645 = vmatmul.mubr.msk.f32.vlgmr.msra.gmra.mxu1 %vm2563_vm2, %v462_v48  ;;  %9650 = vmatprep.subr.mxu1 %v11613_v20 }
 0x1a4   : > { %9651 = vmatpush3.msra.mxu1 %v11613_v20  ;;  %9647 = vmatprep.mubr.msk.f32.mxu1 %vm2563_vm2, %v463_v38  ;;  %v13330_v20 = vld [vmem:[#allocation46_spill] sm:$0xff] }
 0x1a5   : > { %9652 = vmatprep.subr.mxu1 %v11620_v54  ;;  %9895 = vmatmul.mubr.msk.f32.vlgmr.msra.gmra.mxu0 %vm505_vm1, %v13330_v20 }
 0x1a6   : > { %9653 = vmatpush3.msra.mxu1 %v11620_v54  ;;  %v13331_v54 = vld [vmem:[#allocation48_spill] sm:$0xff] }
 0x1a7   : > { %9654 = vmatprep.subr.mxu1 %v11590_v34  ;;  %9648 = vmatmul.mubr.msk.f32.gmra.mxu1 %vm2563_vm2, %v464_v30  ;;  %v10447_v30 = vld [vmem:[%s10668_s24 + $0xf9] sm:$0xff] }
 0x1a8   : > { %9655 = vmatpush3.msra.mxu1 %v11590_v34  ;;  %9678 = vmatprep.mubr.msk.f32.mxu1 %vm2563_vm2, %v11761_v50  ;;  %v13332_v34 = vld [vmem:[#allocation49_spill] sm:$0xff] }
 0x1a9   : > { %9656 = vmatprep.subr.mxu1 %v11642_v0  ;;  %9897 = vmatprep.mubr.msk.f32.mxu0 %vm505_vm1, %v13331_v54 }
 0x1aa   : > { %9657 = vmatpush3.msra.mxu1 %v11642_v0  ;;  %9898 = vmatmul.mubr.msk.f32.gmra.mxu0 %vm505_vm1, %v13332_v34  ;;  %v13334_v0 = vld [vmem:[#allocation53_spill] sm:$0xff] }
 0x1ab   : > { %9658 = vmatprep.subr.mxu1 %v11572_v23  ;;  %9900 = vmatprep.mubr.msk.f32.mxu0 %vm505_vm1, %v13333_v33 }
 0x1ac   : > { %9659 = vmatpush3.msra.mxu1 %v11572_v23  ;;  %v13335_v23 = vld [vmem:[#allocation55_spill] sm:$0xff] }
 0x1ad   : > { %9660 = vmatprep.subr.mxu1 %v11667_v58 }
 0x1ae   : > { %9661 = vmatpush3.msra.mxu1 %v11667_v58  ;;  %9901 = vmatmul.mubr.msk.f32.gmra.mxu0 %vm505_vm1, %v13334_v0  ;;  %v8622_v58 = vld [vmem:[%s10668_s24 + $0x1a2] sm:$0xff] }
 0x1af   : > { %9662 = vmatprep.subr.mxu1 %v11557_v27  ;;  %9903 = vmatprep.mubr.msk.f32.mxu0 %vm505_vm1, %v13335_v23 }
 0x1b0   : > { %9663 = vmatpush3.msra.mxu1 %v11557_v27  ;;  %v13337_v27 = vld [vmem:[#allocation59_spill] sm:$0xff] }
 0x1b1   : > { %9664 = vmatprep.subr.mxu1 %v11687_v17 }
 0x1b2   : > { %9665 = vmatpush3.msra.mxu1 %v11687_v17  ;;  %9904 = vmatmul.mubr.msk.f32.gmra.mxu0 %vm505_vm1, %v13336_v40  ;;  %v8438_v17 = vld [vmem:[%s10668_s24 + $0xe0] sm:$0xff] }
 0x1b3   : > { %9666 = vmatprep.subr.mxu1 %v11540_v53  ;;  %9906 = vmatprep.mubr.msk.f32.mxu0 %vm505_vm1, %v13337_v27 }
 0x1b4   : > { %9667 = vmatpush3.msra.mxu1 %v11540_v53  ;;  %v13339_v53 = vld [vmem:[#allocation63_spill] sm:$0xff] }
 0x1b5   : > { %9668 = vmatprep.subr.mxu1 %v11705_v62 }
 0x1b6   : > { %9669 = vmatpush3.msra.mxu1 %v11705_v62  ;;  %9907 = vmatmul.mubr.msk.f32.gmra.mxu0 %vm505_vm1, %v13338_v43  ;;  %v13210_v62 = vmov 0.0  }
 0x1b7   : > { %9670 = vmatprep.subr.mxu1 %v11520_v26  ;;  %9909 = vmatprep.mubr.msk.f32.mxu0 %vm505_vm1, %v13339_v53  ;;  %444 = vst.msk [vmem:[#allocation2 + $0x20] sm:$0xff] %vm438_vm3, %v13210_v62  ;;  %439 = vst.msk [vmem:[#allocation2] sm:$0xff] %vm438_vm3, %v13210_v62 }
 0x1b8   : > { %9671 = vmatpush3.msra.mxu1 %v11520_v26  ;;  %v2784_v26 = vld [vmem:[%s13217_s1] sm:$0x7]  ;;  %445 = vst.msk [vmem:[#allocation2 + $0x28] sm:$0x3] %vm440_vm4, %v13210_v62  ;;  %441 = vst.msk [vmem:[#allocation2 + $0x8] sm:$0x3] %vm440_vm4, %v13210_v62 }
 0x1b9   : > { %9672 = vmatprep.subr.mxu1 %v2551_v8  ;;  %442 = vst.msk [vmem:[#allocation2 + $0x10] sm:$0xff] %vm438_vm3, %v13210_v62  ;;  %446 = vst.msk [vmem:[#allocation2 + $0x30] sm:$0xff] %vm438_vm3, %v13210_v62 }
 0x1ba   : > { %9673 = vmatpush3.msra.mxu1 %v2551_v8  ;;  %9910 = vmatmul.mubr.msk.f32.gmra.mxu0 %vm505_vm1, %v11449_v18  ;;  %443 = vst.msk [vmem:[#allocation2 + $0x18] sm:$0x3] %vm440_vm4, %v13210_v62  ;;  %447 = vst.msk [vmem:[#allocation2 + $0x38] sm:$0x3] %vm440_vm4, %v13210_v62 }
 0x1bb   : > { %9674 = vmatprep.subr.mxu1 %v11497_v5  ;;  %9912 = vmatprep.mubr.msk.f32.mxu0 %vm505_vm1, %v11820_v15  ;;  %448 = vst.msk [vmem:[#allocation2 + $0x40] sm:$0xff] %vm438_vm3, %v13210_v62  ;;  %450 = vst.msk [vmem:[#allocation2 + $0x50] sm:$0xff] %vm438_vm3, %v13210_v62 }
 0x1bc   : > { %9675 = vmatpush3.msra.mxu1 %v11497_v5  ;;  %v8453_v5 = vld [vmem:[%s13217_s1 + $0xc] sm:$0x7]  ;;  %449 = vst.msk [vmem:[#allocation2 + $0x48] sm:$0x3] %vm440_vm4, %v13210_v62  ;;  %451 = vst.msk [vmem:[#allocation2 + $0x58] sm:$0x3] %vm440_vm4, %v13210_v62 }
 0x1bd   : > { %9676 = vmatprep.subr.mxu1 %v2549_v25  ;;  %452 = vst.msk [vmem:[#allocation2 + $0x60] sm:$0xff] %vm438_vm3, %v13210_v62  ;;  %454 = vst.msk [vmem:[#allocation2 + $0x70] sm:$0xff] %vm438_vm3, %v13210_v62 }
 0x1be   : > { %9677 = vmatpush3.msra.mxu1 %v2549_v25  ;;  %9913 = vmatmul.mubr.msk.f32.gmra.mxu0 %vm505_vm1, %v11837_v16  ;;  %453 = vst.msk [vmem:[#allocation2 + $0x68] sm:$0x3] %vm440_vm4, %v13210_v62  ;;  %455 = vst.msk [vmem:[#allocation2 + $0x78] sm:$0x3] %vm440_vm4, %v13210_v62 }
 0x1bf   : > { %9679 = vmatmul.mubr.msk.f32.vlgmr.msra.gmra.mxu1 %vm2563_vm2, %v8067_v36  ;;  %9710 = vmatprep.subr.msk.mxu1 %vm554_vm0, %v2784_v26  ;;  %456 = vst.msk [vmem:[#allocation2 + $0x80] sm:$0xff] %vm438_vm3, %v13210_v62  ;;  %458 = vst.msk [vmem:[#allocation2 + $0x90] sm:$0xff] %vm438_vm3, %v13210_v62 }
 0x1c0   : > { %9681 = vmatprep.mubr.msk.f32.mxu1 %vm2563_vm2, %v8068_v63  ;;  %9711 = vmatpush3.msk.msra.mxu1 %vm554_vm0, %v2784_v26  ;;  %457 = vst.msk [vmem:[#allocation2 + $0x88] sm:$0x3] %vm440_vm4, %v13210_v62  ;;  %459 = vst.msk [vmem:[#allocation2 + $0x98] sm:$0x3] %vm440_vm4, %v13210_v62 }
 0x1c1   : > { %9762 = vmatprep.subr.msk.mxu1 %vm554_vm0, %v8453_v5  ;;  %9915 = vmatprep.mubr.msk.f32.mxu0 %vm505_vm1, %v8621_v31 }
 0x1c2   : > { %9916 = vmatmul.mubr.msk.f32.gmra.mxu0 %vm505_vm1, %v8622_v58 }
 0x1c3   : > { %9682 = vmatmul.mubr.msk.f32.gmra.mxu1 %vm2563_vm2, %v8069_v59  ;;  %9980 = vmatprep.mubr.msk.f32.mxu0 %vm2563_vm2, %v11761_v50  ;;  %v10448_v50 = vld [vmem:[%s10668_s24 + $0x109] sm:$0xff] }
 0x1c4   : > { %9712 = vmatprep.mubr.msk.f32.mxu1 %vm505_vm1, %v8336_v32 }
 0x1c7   : > { %9713 = vmatmul.mubr.msk.f32.vlgmr.msra.gmra.mxu1 %vm505_vm1, %v8337_v29 }
 0x1c8   : > { %9715 = vmatprep.mubr.msk.f32.mxu1 %vm505_vm1, %v10444_v42  ;;  %9763 = vmatpush3.msk.msra.mxu1 %vm554_vm0, %v8453_v5 }
 0x1c9   : > { %9814 = vmatprep.subr.msk.mxu1 %vm554_vm0, %v8521_v2 }
 0x1cb   : > { %9716 = vmatmul.mubr.msk.f32.gmra.mxu1 %vm505_vm1, %v10445_v46 }
 0x1cc   : > { %9718 = vmatprep.mubr.msk.f32.mxu1 %vm505_vm1, %v11608_v13 }
 0x1cf   : > { %9719 = vmatmul.mubr.msk.f32.gmra.mxu1 %vm505_vm1, %v11624_v57 }
 0x1d0   : > { %9721 = vmatprep.mubr.msk.f32.mxu1 %vm505_vm1, %v11629_v35 }
 0x1d3   : > { %9722 = vmatmul.mubr.msk.f32.gmra.mxu1 %vm505_vm1, %v11646_v41 }
 0x1d4   : > { %9724 = vmatprep.mubr.msk.f32.mxu1 %vm505_vm1, %v11659_v3 }
 0x1d7   : > { %9725 = vmatmul.mubr.msk.f32.gmra.mxu1 %vm505_vm1, %v11671_v21 }
 0x1d8   : > { %9727 = vmatprep.mubr.msk.f32.mxu1 %vm505_vm1, %v11676_v28 }
 0x1db   : > { %9728 = vmatmul.mubr.msk.f32.gmra.mxu1 %vm505_vm1, %v11691_v45 }
 0x1dc   : > { %9730 = vmatprep.mubr.msk.f32.mxu1 %vm505_vm1, %v11695_v49 }
 0x1df   : > { %9731 = vmatmul.mubr.msk.f32.gmra.mxu1 %vm505_vm1, %v11709_v60 }
 0x1e0   : > { %9733 = vmatprep.mubr.msk.f32.mxu1 %vm505_vm1, %v11713_v24 }
 0x1e3   : > { %9734 = vmatmul.mubr.msk.f32.gmra.mxu1 %vm505_vm1, %v11724_v51 }
 0x1e4   : > { %9764 = vmatprep.mubr.msk.f32.mxu1 %vm505_vm1, %v8437_v12 }
 0x1e7   : > { %9765 = vmatmul.mubr.msk.f32.vlgmr.msra.gmra.mxu1 %vm505_vm1, %v8438_v17 }
 0x1e8   : > { %9767 = vmatprep.mubr.msk.f32.mxu1 %vm505_vm1, %v11608_v13  ;;  %9815 = vmatpush3.msk.msra.mxu1 %vm554_vm0, %v8521_v2  ;;  %v11947_v13 = vpop.f32.mrf.mxu0 }
 0x1e9   : > { %9866 = vmatprep.subr.msk.mxu1 %vm554_vm0, %v8589_v52 }
 0x1eb   : > { %9768 = vmatmul.mubr.msk.f32.gmra.mxu1 %vm505_vm1, %v11624_v57 }
 0x1ec   : > { %9770 = vmatprep.mubr.msk.f32.mxu1 %vm505_vm1, %v11629_v35  ;;  %v11953_v1 = vpop.f32.mrf.mxu0 }
 0x1ee   : > { %v11955_v61 = vpop.f32.mrf.mxu0 }
 0x1ef   : > { %9771 = vmatmul.mubr.msk.f32.gmra.mxu1 %vm505_vm1, %v11646_v41 }
 0x1f0   : > { %9773 = vmatprep.mubr.msk.f32.mxu1 %vm505_vm1, %v11659_v3  ;;  %v11961_v57 = vpop.f32.mrf.mxu0 }
 0x1f2   : > { %v11963_v35 = vpop.f32.mrf.mxu0 }
 0x1f3   : > { %9774 = vmatmul.mubr.msk.f32.gmra.mxu1 %vm505_vm1, %v11671_v21 }
 0x1f4   : > { %9776 = vmatprep.mubr.msk.f32.mxu1 %vm505_vm1, %v11676_v28  ;;  %v11969_v41 = vpop.f32.mrf.mxu0 }
 0x1f6   : > { %v11971_v3 = vpop.f32.mrf.mxu0 }
 0x1f7   : > { %9777 = vmatmul.mubr.msk.f32.gmra.mxu1 %vm505_vm1, %v11691_v45 }
 0x1f8   : > { %9779 = vmatprep.mubr.msk.f32.mxu1 %vm505_vm1, %v11695_v49  ;;  %v11977_v21 = vpop.f32.mrf.mxu0  ;;  %v8505_v49 = vld [vmem:[%s10668_s24 + $0xda] sm:$0xff] }
 0x1fa   : > { %v11979_v28 = vpop.f32.mrf.mxu0 }
 0x1fb   : > { %9780 = vmatmul.mubr.msk.f32.gmra.mxu1 %vm505_vm1, %v11709_v60  ;;  %v8506_v60 = vld [vmem:[%s10668_s24 + $0xe2] sm:$0xff] }
 0x1fc   : > { %9782 = vmatprep.mubr.msk.f32.mxu1 %vm505_vm1, %v11713_v24  ;;  %v11985_v45 = vpop.f32.mrf.mxu0 }
 0x1fe   : > { %v11988_v8 = vpop.f32.mrf.mxu0 }
 0x1ff   : > { %9783 = vmatmul.mubr.msk.f32.gmra.mxu1 %vm505_vm1, %v11724_v51 }
 0x200   : > { %9785 = vmatprep.mubr.msk.f32.mxu1 %vm505_vm1, %v11728_v37  ;;  %v11994_v24 = vpop.f32.mrf.mxu0 }
 0x202   : > { %v11997_v19 = vpop.f32.mrf.mxu0 }
 0x203   : > { %9786 = vmatmul.mubr.msk.f32.gmra.mxu1 %vm505_vm1, %v11736_v14 }
 0x204   : > { %9816 = vmatprep.mubr.msk.f32.mxu1 %vm505_vm1, %v8505_v49  ;;  %v12004_v51 = vpop.f32.mrf.mxu0 }
 0x206   : > { %v12010_v37 = vpop.f32.mrf.mxu0 }
 0x207   : > { %9817 = vmatmul.mubr.msk.f32.vlgmr.msra.gmra.mxu1 %vm505_vm1, %v8506_v60 }
 0x208   : > { %9819 = vmatprep.mubr.msk.f32.mxu1 %vm505_vm1, %v13329_v11  ;;  %9867 = vmatpush3.msk.msra.mxu1 %vm554_vm0, %v8589_v52  ;;  %v12016_v25 = vpop.f32.mrf.mxu0  ;;  %v10449_v11 = vld [vmem:[%s10668_s24 + $0x111] sm:$0xff] }
 0x20a   : > { %v12022_v14 = vpop.f32.mrf.mxu0 }
 0x20b   : > { %9820 = vmatmul.mubr.msk.f32.gmra.mxu1 %vm505_vm1, %v13330_v20 }
 0x20c   : > { %9822 = vmatprep.mubr.msk.f32.mxu1 %vm505_vm1, %v13331_v54  ;;  %v12028_v48 = vpop.f32.mrf.mxu0  ;;  %v10450_v54 = vld [vmem:[%s10668_s24 + $0x121] sm:$0xff] }
 0x20e   : > { %v12034_v7 = vpop.f32.mrf.mxu0 }
 0x20f   : > { %9823 = vmatmul.mubr.msk.f32.gmra.mxu1 %vm505_vm1, %v13332_v34  ;;  %v10451_v34 = vld [vmem:[%s10668_s24 + $0x129] sm:$0xff] }
 0x210   : > { %9825 = vmatprep.mubr.msk.f32.mxu1 %vm505_vm1, %v13333_v33  ;;  %v12040_v38 = vpop.f32.mrf.mxu0 }
 0x213   : > { %9826 = vmatmul.mubr.msk.f32.gmra.mxu1 %vm505_vm1, %v13334_v0  ;;  %v10452_v0 = vld [vmem:[%s10668_s24 + $0x139] sm:$0xff] }
 0x214   : > { %9828 = vmatprep.mubr.msk.f32.mxu1 %vm505_vm1, %v13335_v23  ;;  %v10453_v23 = vld [vmem:[%s10668_s24 + $0x141] sm:$0xff] }
 0x217   : > { %9829 = vmatmul.mubr.msk.f32.gmra.mxu1 %vm505_vm1, %v13336_v40 }
 0x218   : > { %9831 = vmatprep.mubr.msk.f32.mxu1 %vm505_vm1, %v13337_v27 }
 0x21b   : > { %9832 = vmatmul.mubr.msk.f32.gmra.mxu1 %vm505_vm1, %v13338_v43 }
 0x21c   : > { %9834 = vmatprep.mubr.msk.f32.mxu1 %vm505_vm1, %v13339_v53  ;;  %v8587_v53 = vld [vmem:[%s10668_s24 + $0x199] sm:$0xff] }
 0x21f   : > { %9835 = vmatmul.mubr.msk.f32.gmra.mxu1 %vm505_vm1, %v11449_v18  ;;  %v12046_v18 = vpop.f32.mrf.mxu0 }
 0x220   : > { %9837 = vmatprep.mubr.msk.f32.mxu1 %vm505_vm1, %v11820_v15 }
 0x221   : > { %v12052_v20 = vpop.f32.mrf.mxu0 }
 0x223   : > { %9838 = vmatmul.mubr.msk.f32.gmra.mxu1 %vm505_vm1, %v11837_v16  ;;  %v12058_v33 = vpop.f32.mrf.mxu0 }
 0x224   : > { %9868 = vmatprep.mubr.msk.f32.mxu1 %vm505_vm1, %v10446_v39 }
 0x225   : > { %v12064_v40 = vpop.f32.mrf.mxu0 }
 0x227   : > { %9869 = vmatmul.mubr.msk.f32.vlgmr.msra.gmra.mxu1 %vm505_vm1, %v10447_v30  ;;  %v12070_v27 = vpop.f32.mrf.mxu0 }
 0x228   : > { %9871 = vmatprep.mubr.msk.f32.mxu1 %vm505_vm1, %v10448_v50  ;;  %13340 = vst [vmem:[#allocation32_spill] sm:$0xff] %v12070_v27 }
 0x229   : > { %v12076_v43 = vpop.f32.mrf.mxu0 }
 0x22a   : > { %13341 = vst [vmem:[#allocation18_spill] sm:$0xff] %v12076_v43 }
 0x22b   : > { %9872 = vmatmul.mubr.msk.f32.gmra.mxu1 %vm505_vm1, %v10449_v11 }
 0x22c   : > { %9874 = vmatprep.mubr.msk.f32.mxu1 %vm505_vm1, %v10450_v54 }
 0x22f   : > { %9875 = vmatmul.mubr.msk.f32.gmra.mxu1 %vm505_vm1, %v10451_v34 }
 0x230   : > { %9877 = vmatprep.mubr.msk.f32.mxu1 %vm505_vm1, %v10452_v0 }
 0x233   : > { %9878 = vmatmul.mubr.msk.f32.gmra.mxu1 %vm505_vm1, %v10453_v23 }
 0x234   : > { %9880 = vmatprep.mubr.msk.f32.mxu1 %vm505_vm1, %v13292_v9  ;;  %v12083_v9 = vpop.f32.mrf.mxu0 }
 0x235   : > { %13342 = vst [vmem:[#allocation20_spill] sm:$0xff] %v12083_v9 }
 0x237   : > { %9881 = vmatmul.mubr.msk.f32.gmra.mxu1 %vm505_vm1, %v13301_v6  ;;  %v8588_v6 = vld [vmem:[%s10668_s24 + $0x1a1] sm:$0xff]  ;;  %s431_s24 = sand.u32 1, %s10514_s26  }
 0x238   : > { %9883 = vmatprep.mubr.msk.f32.mxu1 %vm505_vm1, %v13302_v55  ;;  %v12088_v55 = vpop.f32.mrf.mxu0  ;;  %s432_s30 = scalar_lea.vmem [#allocation3], %s431_s24  ;;  %s7994_s21 = scalar_lea.sflag [#allocation4], %s431_s24 }
 0x239   : > { %13343 = vst [vmem:[#allocation35_spill] sm:$0xff] %v12088_v55  ;;  %s8006_s15 = sshll.u32 %s432_s30, 4  ;;  %s8007_s15 = int_to_ptr.vmem [resolvable:$true] %s8006_s15 }
 0x23a   : > { %s10462_s1 = scalar_lea.vmem %s8007_s15, 16  ;;  %p10469_p0 = scmp.lt.s32.totalorder %s8007_s15, %s10467_s22 }
 0x23b   : > { %9884 = vmatmul.mubr.msk.f32.gmra.mxu1 %vm505_vm1, %v13310_v44  ;;  %v10454_v44 = vld [vmem:[%s13169_s5] sm:$0xff]  ;;  %p10463_p11 = scmp.ne.s32.totalorder %s8007_s15, %s10462_s1 }
 0x23c   : > { %9886 = vmatprep.mubr.msk.f32.mxu1 %vm505_vm1, %v11588_v10  ;;  %v12094_v10 = vpop.f32.mrf.mxu0 }
 0x23d   : > { %13344 = vst [vmem:[#allocation58_spill] sm:$0xff] %v12094_v10  ;;  %p10464_p12 = pnand %p10463_p11, %p10635_p5 }
 0x23e   : > { %v12096_v36 = vpop.f32.mrf.mxu0 }
 0x23f   : > { %9887 = vmatmul.mubr.msk.f32.gmra.mxu1 %vm505_vm1, %v11600_v22  ;;  %p10465_p13 = pneg %p10464_p12 }
 0x240   : > { %9889 = vmatprep.mubr.msk.f32.mxu1 %vm505_vm1, %v8587_v53  ;;  %v12098_v22 = vpop.f32.mrf.mxu0 }
 0x242   : > { %v12100_v26 = vpop.f32.mrf.mxu0 }
 0x243   : > { %9890 = vmatmul.mubr.msk.f32.gmra.mxu1 %vm505_vm1, %v8588_v6 }
 0x244   : > { %9946 = vmatprep.mubr.msk.f32.mxu1 %vm2563_vm2, %v10454_v44  ;;  %v12102_v63 = vpop.f32.mrf.mxu0 }
 0x246   : > { %v12104_v15 = vpop.f32.mrf.mxu0 }
 0x248   : > { %v12106_v5 = vpop.f32.mrf.mxu0 }
 0x24a   : > { %v12108_v59 = vpop.f32.mrf.mxu0 }
 0x24b   : > { %13345 = vst [vmem:[#allocation10_spill] sm:$0xff] %v12108_v59 }
 0x24c   : > { %v12110_v16 = vpop.f32.mrf.mxu0 }
 0x24d   : > { %13346 = vst [vmem:[#allocation11_spill] sm:$0xff] %v12110_v16 }
 0x24e   : > { %v12112_v31 = vpop.f32.mrf.mxu0 }
 0x24f   : > { %13347 = vst [vmem:[#allocation29_spill] sm:$0xff] %v12112_v31 }
 0x250   : > { %v12114_v32 = vpop.f32.mrf.mxu0 }
 0x251   : > { %13348 = vst [vmem:[#allocation31_spill] sm:$0xff] %v12114_v32 }
 0x252   : > { %v12116_v29 = vpop.f32.mrf.mxu0 }
 0x253   : > { %13349 = vst [vmem:[#allocation37_spill] sm:$0xff] %v12116_v29 }
 0x254   : > { %v12118_v42 = vpop.f32.mrf.mxu0 }
 0x255   : > { %13350 = vst [vmem:[#allocation33_spill] sm:$0xff] %v12118_v42 }
 0x256   : > { %v12120_v12 = vpop.f32.mrf.mxu0 }
 0x257   : > { %13351 = vst [vmem:[#allocation60_spill] sm:$0xff] %v12120_v12 }
 0x258   : > { %v12122_v49 = vpop.f32.mrf.mxu0 }
 0x259   : > { %13352 = vst [vmem:[#allocation34_spill] sm:$0xff] %v12122_v49 }
 0x25a   : > { %v12125_v11 = vpop.f32.mrf.mxu0 }
 0x25b   : > { %13353 = vst [vmem:[#allocation16_spill] sm:$0xff] %v12125_v11 }
 0x25c   : > { %v12129_v53 = vpop.f32.mrf.mxu0 }
 0x25d   : > { %13354 = vst [vmem:[#allocation19_spill] sm:$0xff] %v12129_v53 }
 0x263   : > { %v9646_v58 = vpop.f32.mrf.mxu1 }
 0x265   : > { %v2642_v2 = vpop.f32.mrf.mxu1 }
 0x267   : > { %v9649_v46 = vpop.f32.mrf.mxu1 }
 0x269   : > { %v2652_v17 = vpop.f32.mrf.mxu1 }
 0x27f   : > { %v9680_v52 = vpop.f32.mrf.mxu1 }
 0x280   : > { %v2759_v60 = vmax.f32 %v9646_v58, %v9680_v52  ;;  %v12132_v58 = vpop.f32.mrf.mxu0 }
 0x281   : > { %v2739_v39 = vpop.f32.mrf.mxu1 }
 0x282   : > { %2764 = vst.msk [vmem:[#allocation2 + $0x21] sm:$0xff] %vm438_vm3, %v2759_v60  ;;  %v2758_v30 = vmax.f32 %v2642_v2, %v2739_v39  ;;  %v12134_v60 = vpop.f32.mrf.mxu0 }
 0x283   : > { %v9683_v50 = vpop.f32.mrf.mxu1  ;;  %13355 = vst [vmem:[#allocation54_spill] sm:$0xff] %v12134_v60 }
 0x284   : > { %2763 = vst.msk [vmem:[#allocation2 + $0x11] sm:$0xff] %vm438_vm3, %v2758_v30  ;;  %v2761_v54 = vmax.f32 %v9649_v46, %v9683_v50  ;;  %v12138_v30 = vpop.f32.mrf.mxu0 }
 0x285   : > { %v2749_v34 = vpop.f32.mrf.mxu1  ;;  %13356 = vst [vmem:[#allocation62_spill] sm:$0xff] %v12138_v30 }
 0x286   : > { %2766 = vst.msk [vmem:[#allocation2 + $0x41] sm:$0xff] %vm438_vm3, %v2761_v54  ;;  %v2760_v0 = vmax.f32 %v2652_v17, %v2749_v34  ;;  %v12142_v54 = vpop.f32.mrf.mxu0 }
 0x287   : > { %v9714_v23 = vpop.f32.mrf.mxu1  ;;  %13357 = vst [vmem:[#allocation8_spill] sm:$0xff] %v12142_v54 }
 0x288   : > { %2765 = vst.msk [vmem:[#allocation2 + $0x31] sm:$0xff] %vm438_vm3, %v2760_v0  ;;  %v12146_v62 = vpop.f32.mrf.mxu0  ;;  %v3121_v42 = vadd.f32 %v9714_v23, %v11889_v4 }
 0x289   : > { %v3115_v6 = vpop.f32.mrf.mxu1 }
 0x28a   : > { %v12152_v49 = vpop.f32.mrf.mxu0  ;;  %v3408_v16 = vadd.f32 %v12004_v51, %v3121_v42 }
 0x28b   : > { %v9717_v44 = vpop.f32.mrf.mxu1 }
 0x28c   : > { %v12159_v32 = vpop.f32.mrf.mxu0  ;;  %v3131_v59 = vadd.f32 %v9717_v44, %v11901_v47 }
 0x28d   : > { %v3125_v2 = vpop.f32.mrf.mxu1  ;;  %13358 = vst [vmem:[#allocation9_spill] sm:$0xff] %v12159_v32 }
 0x28e   : > { %v12165_v10 = vpop.f32.mrf.mxu0  ;;  %v3410_v43 = vadd.f32 %v12016_v25, %v3131_v59 }
 0x28f   : > { %v9720_v52 = vpop.f32.mrf.mxu1  ;;  %13359 = vst [vmem:[#allocation27_spill] sm:$0xff] %v12165_v10 }
 0x290   : > { %v3141_v30 = vadd.f32 %v9720_v52, %v11953_v1  ;;  %v12169_v23 = vpop.f32.mrf.mxu0 }
 0x291   : > { %v12136_v39 = vpop.f32.mrf.mxu1 }
 0x292   : > { %v3412_v60 = vadd.f32 %v12028_v48, %v3141_v30  ;;  %v12173_v47 = vpop.f32.mrf.mxu0 }
 0x293   : > { %v9723_v46 = vpop.f32.mrf.mxu1 }
 0x294   : > { %v3151_v51 = vadd.f32 %v9723_v46, %v11961_v57  ;;  %v12177_v1 = vpop.f32.mrf.mxu0 }
 0x295   : > { %v12140_v50 = vpop.f32.mrf.mxu1 }
 0x296   : > { %v12185_v30 = vpop.f32.mrf.mxu0 }
 0x297   : > { %v9726_v17 = vpop.f32.mrf.mxu1 }
 0x298   : > { %v3161_v25 = vadd.f32 %v9726_v17, %v11969_v41  ;;  %v12192_v17 = vpop.f32.mrf.mxu0 }
 0x299   : > { %v12144_v34 = vpop.f32.mrf.mxu1  ;;  %13360 = vst [vmem:[#allocation30_spill] sm:$0xff] %v12192_v17 }
 0x29a   : > { %v3416_v48 = vadd.f32 %v12052_v20, %v3161_v25  ;;  %v3116_v20 = vadd.f32 %v3115_v6, %v11895_v56  ;;  %v3126_v25 = vadd.f32 %v3125_v2, %v11947_v13  ;;  %v3136_v56 = vadd.f32 %v12136_v39, %v11955_v61 }
 0x29b   : > { %v9729_v0 = vpop.f32.mrf.mxu1 }
 0x29c   : > { %v3171_v57 = vadd.f32 %v9729_v0, %v11977_v21  ;;  %v12201_v21 = vpop.f32.mrf.mxu0 }
 0x29d   : > { %v12148_v53 = vpop.f32.mrf.mxu1  ;;  %13361 = vst [vmem:[#allocation36_spill] sm:$0xff] %v12201_v21 }
 0x29e   : > { %v3418_v41 = vadd.f32 %v12064_v40, %v3171_v57 }
 0x29f   : > { %v12150_v11 = vpop.f32.mrf.mxu1 }
 0x2a1   : > { %v12154_v12 = vpop.f32.mrf.mxu1 }
 0x2a3   : > { %v12157_v29 = vpop.f32.mrf.mxu1 }
 0x2a5   : > { %v12161_v31 = vpop.f32.mrf.mxu1 }
 0x2a7   : > { %v9766_v54 = vpop.f32.mrf.mxu1 }
 0x2a8   : > { %v3638_v55 = vadd.f32 %v9766_v54, %v3408_v16  ;;  %v3414_v16 = vadd.f32 %v12040_v38, %v3151_v51 }
 0x2a9   : > { %v3558_v9 = vpop.f32.mrf.mxu1 }
 0x2aa   : > { %v3867_v6 = vadd.f32 %v12096_v36, %v3638_v55 }
 0x2ab   : > { %v9769_v4 = vpop.f32.mrf.mxu1 }
 0x2ac   : > { %v3640_v27 = vadd.f32 %v9769_v4, %v3410_v43 }
 0x2ad   : > { %v3568_v32 = vpop.f32.mrf.mxu1 }
 0x2af   : > { %v9772_v42 = vpop.f32.mrf.mxu1 }
 0x2b0   : > { %v3642_v44 = vadd.f32 %v9772_v42, %v3412_v60 }
 0x2b1   : > { %v3578_v10 = vpop.f32.mrf.mxu1 }
 0x2b2   : > { %v3871_v36 = vadd.f32 %v12104_v15, %v3642_v44 }
 0x2b3   : > { %v9775_v59 = vpop.f32.mrf.mxu1 }
 0x2b4   : > { %v12179_v52 = vadd.f32 %v9775_v59, %v3414_v16  ;;  %v3407_v16 = vadd.f32 %v12010_v37, %v3116_v20  ;;  %v12209_v59 = vpop.f32.mrf.mxu0 }
 0x2b5   : > { %v12181_v43 = vpop.f32.mrf.mxu1  ;;  %13362 = vst [vmem:[#allocation38_spill] sm:$0xff] %v12209_v59  ;;  %v3411_v59 = vadd.f32 %v12034_v7, %v3136_v56 }
 0x2b7   : > { %v9778_v46 = vpop.f32.mrf.mxu1  ;;  %v3641_v61 = vadd.f32 %v3578_v10, %v3411_v59 }
 0x2b8   : > { %v12187_v60 = vadd.f32 %v9778_v46, %v3416_v48  ;;  %v3637_v48 = vadd.f32 %v3558_v9, %v3407_v16  ;;  %v3409_v46 = vadd.f32 %v12022_v14, %v3126_v25  ;;  %v3869_v9 = vadd.f32 %v12100_v26, %v3640_v27 }
 0x2b9   : > { %v12189_v54 = vpop.f32.mrf.mxu1 }
 0x2ba   : > { %v3866_v37 = vadd.f32 %v12098_v22, %v3637_v48  ;;  %v3639_v13 = vadd.f32 %v3568_v32, %v3409_v46  ;;  %v3870_v32 = vadd.f32 %v12106_v5, %v3641_v61 }
 0x2bb   : > { %v9781_v38 = vpop.f32.mrf.mxu1 }
 0x2bc   : > { %v12194_v4 = vadd.f32 %v9781_v38, %v3418_v41  ;;  %v12217_v38 = vpop.f32.mrf.mxu0  ;;  %v3868_v25 = vadd.f32 %v12102_v63, %v3639_v13 }
 0x2bd   : > { %v12196_v51 = vpop.f32.mrf.mxu1  ;;  %13363 = vst [vmem:[#allocation14_spill] sm:$0xff] %v12217_v38 }
 0x2be   : > { %v9896_v14 = vpop.f32.mrf.mxu0 }
 0x2bf   : > { %v12199_v42 = vpop.f32.mrf.mxu1 }
 0x2c0   : > { %v4704_v22 = vpop.f32.mrf.mxu0 }
 0x2c1   : > { %v12203_v0 = vpop.f32.mrf.mxu1 }
 0x2c2   : > { %v9899_v56 = vpop.f32.mrf.mxu0 }
 0x2c3   : > { %v12207_v40 = vpop.f32.mrf.mxu1 }
 0x2c4   : > { %v4714_v15 = vpop.f32.mrf.mxu0 }
 0x2c5   : > { %v12211_v57 = vpop.f32.mrf.mxu1 }
 0x2c6   : > { %v12237_v5 = vpop.f32.mrf.mxu0 }
 0x2c7   : > { %v9818_v41 = vpop.f32.mrf.mxu1 }
 0x2c8   : > { %v4096_v2 = vadd.f32 %v9818_v41, %v3867_v6  ;;  %v12243_v6 = vpop.f32.mrf.mxu0 }
 0x2c9   : > { %v4016_v20 = vpop.f32.mrf.mxu1 }
 0x2ca   : > { %v4095_v16 = vadd.f32 %v4016_v20, %v3866_v37  ;;  %v12251_v13 = vpop.f32.mrf.mxu0  ;;  %v3156_v20 = vadd.f32 %v12144_v34, %v11971_v3  ;;  %v3186_v3 = vadd.f32 %v12161_v31, %v11997_v19  ;;  %v13368_v19 = vld [vmem:[#allocation18_spill] sm:$0xff] }
 0x2cb   : > { %v9821_v21 = vpop.f32.mrf.mxu1 }
 0x2cc   : > { %v4098_v39 = vadd.f32 %v9821_v21, %v3869_v9  ;;  %v3166_v9 = vadd.f32 %v12148_v53, %v11979_v28  ;;  %v12269_v28 = vpop.f32.mrf.mxu0  ;;  %v3415_v53 = vadd.f32 %v12058_v33, %v3156_v20  ;;  %v13371_v20 = vld [vmem:[#allocation58_spill] sm:$0xff] }
 0x2cd   : > { %v4026_v55 = vpop.f32.mrf.mxu1 }
 0x2ce   : > { %v4097_v38 = vadd.f32 %v4026_v55, %v3868_v25  ;;  %v4326_v55 = vadd.f32 %v12132_v58, %v4096_v2  ;;  %v13366_v2 = vld [vmem:[#allocation32_spill] sm:$0xff] }
 0x2cf   : > { %v9824_v17 = vpop.f32.mrf.mxu1 }
 0x2d0   : > { %v4100_v48 = vadd.f32 %v9824_v17, %v3871_v36  ;;  %v3181_v36 = vadd.f32 %v12150_v11, %v11985_v45 }
 0x2d1   : > { %v4036_v46 = vpop.f32.mrf.mxu1 }
 0x2d2   : > { %v12226_v7 = vadd.f32 %v12146_v62, %v4100_v48  ;;  %v4099_v27 = vadd.f32 %v4036_v46, %v3870_v32  ;;  %v3417_v48 = vadd.f32 %v13366_v2, %v3166_v9  ;;  %v3420_v31 = vadd.f32 %v13368_v19, %v3181_v36  ;;  %v13372_v9 = vld [vmem:[#allocation8_spill] sm:$0xff] }
 0x2d3   : > { %v9827_v26 = vpop.f32.mrf.mxu1 }
 0x2d4   : > { %v12229_v63 = vadd.f32 %v12152_v49, %v4099_v27  ;;  %v3146_v49 = vadd.f32 %v12140_v50, %v11963_v35  ;;  %v3176_v35 = vadd.f32 %v12154_v12, %v11988_v8  ;;  %v3191_v50 = vadd.f32 %v12157_v29, %v11994_v24  ;;  %v13367_v12 = vld [vmem:[#allocation62_spill] sm:$0xff]  ;;  %v13369_v27 = vld [vmem:[#allocation20_spill] sm:$0xff] }
 0x2d5   : > { %v4046_v10 = vpop.f32.mrf.mxu1  ;;  %v3645_v8 = vadd.f32 %v12189_v54, %v3415_v53  ;;  %v4328_v24 = vadd.f32 %v13367_v12, %v4098_v39 }
 0x2d6   : > { %v3413_v61 = vadd.f32 %v12046_v18, %v3146_v49  ;;  %v13365_v18 = vld [vmem:[#allocation54_spill] sm:$0xff]  ;;  %v3419_v49 = vadd.f32 %v13369_v27, %v3176_v35  ;;  %v3650_v35 = vadd.f32 %v12199_v42, %v3420_v31  ;;  %v13379_v27 = vld [vmem:[#allocation60_spill] sm:$0xff] }
 0x2d7   : > { %v12231_v21 = vpop.f32.mrf.mxu1  ;;  %v4325_v32 = vadd.f32 %v13365_v18, %v4095_v16  ;;  %v3421_v16 = vadd.f32 %v13371_v20, %v3186_v3  ;;  %v13374_v18 = vld [vmem:[#allocation11_spill] sm:$0xff] }
 0x2d8   : > { %v3643_v45 = vadd.f32 %v12181_v43, %v3413_v61  ;;  %v3647_v43 = vadd.f32 %v12196_v51, %v3417_v48  ;;  %v4327_v61 = vadd.f32 %v13372_v9, %v4097_v38  ;;  %v13375_v51 = vld [vmem:[#allocation29_spill] sm:$0xff] }
 0x2d9   : > { %v12233_v44 = vpop.f32.mrf.mxu1  ;;  %v3875_v38 = vadd.f32 %v13375_v51, %v12187_v60 }
 0x2da   : > { %v3872_v36 = vadd.f32 %v13374_v18, %v3643_v45 }
 0x2db   : > { %v12235_v59 = vpop.f32.mrf.mxu1  ;;  %v4104_v20 = vadd.f32 %v12231_v21, %v3875_v38 }
 0x2dc   : > { %v4101_v42 = vadd.f32 %v4046_v10, %v3872_v36 }
 0x2dd   : > { %v12239_v17 = vpop.f32.mrf.mxu1 }
 0x2df   : > { %v12241_v62 = vpop.f32.mrf.mxu1 }
 0x2e1   : > { %v12245_v41 = vpop.f32.mrf.mxu1 }
 0x2e3   : > { %v12249_v37 = vpop.f32.mrf.mxu1 }
 0x2e5   : > { %v12257_v25 = vpop.f32.mrf.mxu1 }
 0x2e6   : > { %13364 = vst [vmem:[#allocation17_spill] sm:$0xff] %v12257_v25  ;;  %v13370_v25 = vld [vmem:[#allocation35_spill] sm:$0xff] }
 0x2e7   : > { %v9870_v34 = vpop.f32.mrf.mxu1  ;;  %v3422_v33 = vadd.f32 %v13370_v25, %v3191_v50  ;;  %v12292_v25 = vld [vmem:[%s13278_s2] ss:$0 sm:$0xff]  ;;  %s10468_s2 = scalar_lea.vmem %s10467_s22, 32 }
 0x2e8   : > { %v4555_v58 = vadd.f32 %v9870_v34, %v4326_v55  ;;  %v12281_v34 = vpop.f32.mrf.mxu0  ;;  %p10470_p1 = scmp.lt.s32.totalorder %s10468_s2, %s10462_s1 }
 0x2e9   : > { %v4475_v11 = vpop.f32.mrf.mxu1 }
 0x2ea   : > { %v4784_v29 = vadd.f32 %v9896_v14, %v4555_v58  ;;  %v4554_v46 = vadd.f32 %v4475_v11, %v4325_v32  ;;  %v13373_v14 = vld [vmem:[#allocation10_spill] sm:$0xff]  ;;  %p10471_p2 = por %p10470_p1, %p10469_p0 }
 0x2eb   : > { %v9873_v55 = vpop.f32.mrf.mxu1  ;;  %v3873_v39 = vadd.f32 %v13373_v14, %v12179_v52  ;;  %v13377_v52 = vld [vmem:[#allocation37_spill] sm:$0xff] }
 0x2ec   : > { %v4783_v54 = vadd.f32 %v4704_v22, %v4554_v46  ;;  %v4557_v53 = vadd.f32 %v9873_v55, %v4328_v24  ;;  %v4800_v50 = vadd.f32 %v12292_v25, %v4784_v29  ;;  %v13376_v22 = vld [vmem:[#allocation31_spill] sm:$0xff]  ;;  %v3877_v48 = vadd.f32 %v13377_v52, %v12194_v4  ;;  %v4744_v24 = vpop.f32.mrf.mxu0  ;;  %v13378_v46 = vld [vmem:[#allocation33_spill] sm:$0xff]  ;;  %p10472_p3 = pnand %p10471_p2, %p10465_p13 }
 0x2ed   : > { %v4485_v3 = vpop.f32.mrf.mxu1  ;;  %v3874_v32 = vadd.f32 %v13376_v22, %v3645_v8  ;;  %v4102_v45 = vadd.f32 %v9827_v26, %v3873_v39  ;;  %v3876_v19 = vadd.f32 %v13378_v46, %v3647_v43  ;;  %v3879_v8 = vadd.f32 %v13379_v27, %v3650_v35  ;;  %v13382_v35 = vld [vmem:[#allocation34_spill] sm:$0xff] }
 0x2ee   : > { %v4786_v58 = vadd.f32 %v9899_v56, %v4557_v53  ;;  %v4556_v2 = vadd.f32 %v4485_v3, %v4327_v61  ;;  %v4799_v11 = vadd.f32 %v12292_v25, %v4783_v54  ;;  %v3649_v56 = vadd.f32 %v12203_v0, %v3419_v49  ;;  %v13380_v61 = vld [vmem:[#allocation9_spill] sm:$0xff]  ;;  %v9911_v0 = vpop.f32.mrf.mxu0 }
 0x2ef   : > { %v9876_v12 = vpop.f32.mrf.mxu1  ;;  %v4816_v4 = vmax.f32 %v4800_v50, 0.0  ;;  %v4332_v54 = vadd.f32 %v13380_v61, %v4102_v45  ;;  %v4106_v50 = vadd.f32 %v12235_v59, %v3877_v48  ;;  %v4105_v46 = vadd.f32 %v12239_v17, %v3876_v19 }
 0x2f0   : > { %v4802_v29 = vadd.f32 %v12292_v25, %v4786_v58  ;;  %v4785_v31 = vadd.f32 %v4714_v15, %v4556_v2  ;;  %v4559_v60 = vadd.f32 %v9876_v12, %v12226_v7  ;;  %v13381_v15 = vld [vmem:[#allocation27_spill] sm:$0xff]  ;;  %v4103_v7 = vadd.f32 %v12233_v44, %v3874_v32 }
 0x2f1   : > { %v4495_v26 = vpop.f32.mrf.mxu1  ;;  %v4331_v53 = vadd.f32 %v13381_v15, %v4101_v42  ;;  %v4815_v14 = vmax.f32 %v4799_v11, 0.0  ;;  %v3652_v58 = vadd.f32 %v12207_v40, %v3422_v33  ;;  %v3651_v2 = vadd.f32 %v12211_v57, %v3421_v16 }
 0x2f2   : > { %v4818_v10 = vmax.f32 %v4802_v29, 0.0  ;;  %v4801_v55 = vadd.f32 %v12292_v25, %v4785_v31  ;;  %v4788_v9 = vadd.f32 %v12237_v5, %v4559_v60  ;;  %v4558_v43 = vadd.f32 %v4495_v26, %v12229_v63  ;;  %v13383_v31 = vld [vmem:[#allocation16_spill] sm:$0xff] }
 0x2f3   : > { %v9879_v39 = vpop.f32.mrf.mxu1  ;;  %v3878_v5 = vadd.f32 %v13382_v35, %v3649_v56  ;;  %v4334_v63 = vadd.f32 %v12169_v23, %v4104_v20  ;;  %v4754_v23 = vpop.f32.mrf.mxu0  ;;  %v4336_v12 = vadd.f32 %v12177_v1, %v4106_v50  ;;  %v4108_v40 = vadd.f32 %v12241_v62, %v3879_v8 }
 0x2f4   : > { %v12313_v49 = vmax.f32 %v4816_v4, %v4818_v10  ;;  %v4817_v21 = vmax.f32 %v4801_v55, 0.0  ;;  %v4804_v18 = vadd.f32 %v12292_v25, %v4788_v9  ;;  %v4787_v36 = vadd.f32 %v12243_v6, %v4558_v43 }
 0x2f5   : > { %v4561_v3 = vadd.f32 %v9879_v39, %v4332_v54  ;;  %v4505_v51 = vpop.f32.mrf.mxu1  ;;  %v4333_v6 = vadd.f32 %v12173_v47, %v4103_v7  ;;  %v3881_v60 = vadd.f32 %v13383_v31, %v3652_v58  ;;  %v4107_v1 = vadd.f32 %v12245_v41, %v3878_v5  ;;  %v9914_v19 = vpop.f32.mrf.mxu0  ;;  %v13388_v5 = vld [vmem:[#allocation38_spill] sm:$0xff] }
 0x2f6   : > { %v12320_v38 = vmax.f32 %v4815_v14, %v4817_v21  ;;  %v4820_v44 = vmax.f32 %v4804_v18, 0.0  ;;  %v4803_v22 = vadd.f32 %v12292_v25, %v4787_v36  ;;  %v4560_v32 = vadd.f32 %v4505_v51, %v4331_v53  ;;  %v13386_v53 = vld [vmem:[#allocation36_spill] sm:$0xff]  ;;  %v13387_v14 = vld [vmem:[#allocation17_spill] sm:$0xff] }
 0x2f7   : > { %v4790_v52 = vadd.f32 %v12251_v13, %v4561_v3  ;;  %v9882_v45 = vpop.f32.mrf.mxu1  ;;  %v4335_v26 = vadd.f32 %v12185_v30, %v4105_v46  ;;  %v4337_v7 = vadd.f32 %v13386_v53, %v4107_v1  ;;  %v4764_v30 = vpop.f32.mrf.mxu0  ;;  %v12448_v53 = vld [vmem:[#allocation2 + $0x21] sm:$0xff] }
 0x2f8   : > { %v12327_v42 = vmax.f32 %v4818_v10, %v4820_v44  ;;  %v4819_v59 = vmax.f32 %v4803_v22, 0.0  ;;  %v4789_v48 = vadd.f32 %v12269_v28, %v4560_v32  ;;  %v4563_v11 = vadd.f32 %v9882_v45, %v4334_v63  ;;  %v13384_v28 = vld [vmem:[#allocation19_spill] sm:$0xff]  ;;  %v13385_v10 = vld [vmem:[#allocation30_spill] sm:$0xff] }
 0x2f9   : > { %v4806_v57 = vadd.f32 %v12292_v25, %v4790_v52  ;;  %v4515_v33 = vpop.f32.mrf.mxu1  ;;  %v3880_v27 = vadd.f32 %v13384_v28, %v3651_v2  ;;  %v4338_v55 = vadd.f32 %v13385_v10, %v4108_v40  ;;  %v13389_v32 = vld [vmem:[#allocation14_spill] sm:$0xff]  ;;  %v9917_v52 = vpop.f32.mrf.mxu0 }
 0x2fa   : > { %v12334_v47 = vmax.f32 %v4817_v21, %v4819_v59  ;;  %v4805_v13 = vadd.f32 %v12292_v25, %v4789_v48  ;;  %v4792_v16 = vadd.f32 %v12281_v34, %v4563_v11  ;;  %v4562_v29 = vadd.f32 %v4515_v33, %v4333_v6  ;;  %v8670_v10 = vld [vmem:[%s13167_s3 + $0x48] sm:$0xff] }
 0x2fb   : > { %v4822_v56 = vmax.f32 %v4806_v57, 0.0  ;;  %v9885_v17 = vpop.f32.mrf.mxu1  ;;  %v4110_v34 = vadd.f32 %v12249_v37, %v3881_v60 }
 0x2fc   : > { %v4821_v62 = vmax.f32 %v4805_v13, 0.0  ;;  %v4808_v8 = vadd.f32 %v12292_v25, %v4792_v16  ;;  %v4791_v20 = vadd.f32 %v4744_v24, %v4562_v29  ;;  %v4565_v4 = vadd.f32 %v9885_v17, %v4336_v12  ;;  %v4774_v13 = vpop.f32.mrf.mxu0 }
 0x2fd   : > { %v12345_v9 = vmax.f32 %v4820_v44, %v4822_v56  ;;  %v4525_v43 = vpop.f32.mrf.mxu1  ;;  %v4109_v24 = vadd.f32 %v13387_v14, %v3880_v27  ;;  %v4340_v63 = vadd.f32 %v13388_v5, %v4110_v34  ;;  %v10461_v34 = vld [vmem:[%s13169_s5 + $0x38] sm:$0xff]  ;;  %v8694_v5 = vld [vmem:[%s13167_s3 + $0x88] sm:$0xff] }
 0x2fe   : > { %v12347_v61 = vmax.f32 %v4819_v59, %v4821_v62  ;;  %v4824_v41 = vmax.f32 %v4808_v8, 0.0  ;;  %v4807_v54 = vadd.f32 %v12292_v25, %v4791_v20  ;;  %v4794_v15 = vadd.f32 %v9911_v0, %v4565_v4  ;;  %v8651_v8 = vld [vmem:[%s13167_s3 + $0x30] sm:$0xff] }
 0x2ff   : > { %v4564_v39 = vadd.f32 %v4525_v43, %v4335_v26  ;;  %v9888_v21 = vpop.f32.mrf.mxu1  ;;  %v4339_v58 = vadd.f32 %v13389_v32, %v4109_v24  ;;  %v10458_v20 = vld [vmem:[%s13169_s5 + $0x10] sm:$0xff]  ;;  %v8650_v26 = vld [vmem:[%s13167_s3 + $0x28] sm:$0xff]  ;;  %v8669_v43 = vld [vmem:[%s13167_s3 + $0x40] sm:$0xff] }
 0x300   : > { %v12352_v18 = vmax.f32 %v4822_v56, %v4824_v41  ;;  %v4823_v36 = vmax.f32 %v4807_v54, 0.0  ;;  %v4810_v37 = vadd.f32 %v12292_v25, %v4794_v15  ;;  %v4567_v35 = vadd.f32 %v9888_v21, %v4338_v55  ;;  %v10459_v4 = vld [vmem:[%s13169_s5 + $0x30] sm:$0xff]  ;;  %v10460_v55 = vld [vmem:[%s13169_s5 + $0x18] sm:$0xff]  ;;  %v12466_v21 = vld [vmem:[#allocation2 + $0x42] sm:$0xff] }
 0x301   : > { %v4793_v50 = vadd.f32 %v4754_v23, %v4564_v39  ;;  %v4535_v3 = vpop.f32.mrf.mxu1  ;;  %v12440_v54 = vld [vmem:[#allocation2 + $0x11] sm:$0xff]  ;;  %v12464_v39 = vld [vmem:[#allocation2 + $0x41] sm:$0xff] }
 0x302   : > { %v4837_v51 = vmax.f32 %v4821_v62, %v4823_v36  ;;  %v4826_v44 = vmax.f32 %v4810_v37, 0.0  ;;  %v4796_v0 = vadd.f32 %v9914_v19, %v4567_v35  ;;  %v4566_v22 = vadd.f32 %v4535_v3, %v4337_v7  ;;  %v12442_v15 = vld [vmem:[#allocation2 + $0x12] sm:$0xff]  ;;  %v12450_v7 = vld [vmem:[#allocation2 + $0x22] sm:$0xff] }
 0x303   : > { %v4809_v2 = vadd.f32 %v12292_v25, %v4793_v50  ;;  %v9891_v6 = vpop.f32.mrf.mxu1  ;;  %v12456_v14 = vld [vmem:[#allocation2 + $0x31] sm:$0xff]  ;;  %v5033_v35 = vld [vmem:[%s13167_s3 + $0x8] sm:$0xff]  ;;  %v8693_v50 = vld [vmem:[%s13167_s3 + $0x80] sm:$0xff] }
 0x304   : > { %v4840_v45 = vmax.f32 %v4824_v41, %v4826_v44  ;;  %v4812_v59 = vadd.f32 %v12292_v25, %v4796_v0  ;;  %v4795_v48 = vadd.f32 %v4764_v30, %v4566_v22  ;;  %v4569_v11 = vadd.f32 %v9891_v6, %v4340_v63  ;;  %v5307_v41 = vld [vmem:[#allocation2 + $0x2] sm:$0xff]  ;;  %v12458_v24 = vld [vmem:[#allocation2 + $0x32] sm:$0xff] }
 0x305   : > { %v4825_v12 = vmax.f32 %v4809_v2, 0.0  ;;  %v4545_v46 = vpop.f32.mrf.mxu1  ;;  %v5035_v30 = vld [vmem:[%s13167_s3 + $0x18] sm:$0xff]  ;;  %v8695_v37 = vld [vmem:[%s13167_s3 + $0x90] sm:$0xff]  ;;  %v5032_v63 = vld [vmem:[%s13167_s3] sm:$0xff] }
 0x306   : > { %v4828_v40 = vmax.f32 %v4812_v59, 0.0  ;;  %v4798_v23 = vadd.f32 %v9917_v52, %v4569_v11  ;;  %v4568_v57 = vadd.f32 %v4545_v46, %v4339_v58  ;;  %v4811_v29 = vadd.f32 %v12292_v25, %v4795_v48  ;;  %v8684_v3 = vld [vmem:[%s13167_s3 + $0x78] sm:$0xff] }
 0x307   : > { %v4839_v33 = vmax.f32 %v4823_v36, %v4825_v12  ;;  %v8696_v36 = vld [vmem:[%s13167_s3 + $0x98] sm:$0xff] }
 0x308   : > { %v4842_v16 = vmax.f32 %v4826_v44, %v4828_v40  ;;  %v4814_v31 = vadd.f32 %v12292_v25, %v4798_v23  ;;  %v4797_v60 = vadd.f32 %v4774_v13, %v4568_v57  ;;  %v4827_v1 = vmax.f32 %v4811_v29, 0.0  ;;  %v5024_v57 = vld [vmem:[#allocation2] sm:$0xff] }
 0x309   : > { %v5026_v29 = vld [vmem:[#allocation2 + $0x20] sm:$0xff] }
 0x30a   : > { %v4830_v28 = vmax.f32 %v4814_v31, 0.0  ;;  %v4813_v27 = vadd.f32 %v12292_v25, %v4797_v60  ;;  %v4841_v62 = vmax.f32 %v4825_v12, %v4827_v1  ;;  %v8652_v25 = vld [vmem:[%s13167_s3 + $0x38] sm:$0xff]  ;;  %v8683_v31 = vld [vmem:[%s13167_s3 + $0x70] sm:$0xff] }
 0x30b   : > { %v8719_v60 = vld [vmem:[%s13167_s3 + $0xd0] sm:$0xff] }
 0x30c   : > { %v4844_v56 = vmax.f32 %v4828_v40, %v4830_v28  ;;  %v4829_v17 = vmax.f32 %v4813_v27, 0.0  ;;  %v5027_v28 = vld [vmem:[#allocation2 + $0x30] sm:$0xff]  ;;  %v5028_v27 = vld [vmem:[#allocation2 + $0x40] sm:$0xff] }
 0x30e   : > { %v4843_v19 = vmax.f32 %v4827_v1, %v4829_v17  ;;  %9918 = vmatprep.subr.mxu1 %v4844_v56  ;;  %9952 = vmatprep.subr.mxu0 %v4844_v56  ;;  %v8682_v1 = vld [vmem:[%s13167_s3 + $0x68] sm:$0xff] }
 0x30f   : > { %9919 = vmatpush3.msra.mxu1 %v4844_v56  ;;  %9953 = vmatpush3.msra.mxu0 %v4844_v56  ;;  %v8718_v56 = vld [vmem:[%s13167_s3 + $0xc8] sm:$0xff] }
 0x310   : > { %9920 = vmatprep.subr.mxu1 %v4843_v19  ;;  %9954 = vmatprep.subr.mxu0 %v4843_v19 }
 0x311   : > { %9921 = vmatpush3.msra.mxu1 %v4843_v19  ;;  %9955 = vmatpush3.msra.mxu0 %v4843_v19 }
 0x312   : > { %9922 = vmatprep.subr.mxu1 %v4842_v16  ;;  %9956 = vmatprep.subr.mxu0 %v4842_v16 }
 0x313   : > { %9923 = vmatpush3.msra.mxu1 %v4842_v16  ;;  %9957 = vmatpush3.msra.mxu0 %v4842_v16  ;;  %v5025_v16 = vld [vmem:[#allocation2 + $0x10] sm:$0xff] }
 0x314   : > { %9924 = vmatprep.subr.mxu1 %v4841_v62  ;;  %9958 = vmatprep.subr.mxu0 %v4841_v62 }
 0x315   : > { %9925 = vmatpush3.msra.mxu1 %v4841_v62  ;;  %9959 = vmatpush3.msra.mxu0 %v4841_v62  ;;  %v8681_v62 = vld [vmem:[%s13167_s3 + $0x60] sm:$0xff] }
 0x316   : > { %9926 = vmatprep.subr.mxu1 %v4840_v45  ;;  %9960 = vmatprep.subr.mxu0 %v4840_v45 }
 0x317   : > { %9927 = vmatpush3.msra.mxu1 %v4840_v45  ;;  %9961 = vmatpush3.msra.mxu0 %v4840_v45 }
 0x318   : > { %9928 = vmatprep.subr.mxu1 %v4839_v33  ;;  %9962 = vmatprep.subr.mxu0 %v4839_v33 }
 0x319   : > { %9929 = vmatpush3.msra.mxu1 %v4839_v33  ;;  %9963 = vmatpush3.msra.mxu0 %v4839_v33 }
 0x31a   : > { %9930 = vmatprep.subr.mxu1 %v12352_v18  ;;  %9964 = vmatprep.subr.mxu0 %v12352_v18 }
 0x31b   : > { %9931 = vmatpush3.msra.mxu1 %v12352_v18  ;;  %9965 = vmatpush3.msra.mxu0 %v12352_v18  ;;  %v5034_v18 = vld [vmem:[%s13167_s3 + $0x10] sm:$0xff] }
 0x31c   : > { %9932 = vmatprep.subr.mxu1 %v4837_v51  ;;  %9966 = vmatprep.subr.mxu0 %v4837_v51 }
 0x31d   : > { %9933 = vmatpush3.msra.mxu1 %v4837_v51  ;;  %9967 = vmatpush3.msra.mxu0 %v4837_v51  ;;  %v8720_v51 = vld [vmem:[%s13167_s3 + $0xd8] sm:$0xff] }
 0x31e   : > { %9934 = vmatprep.subr.mxu1 %v12345_v9  ;;  %9968 = vmatprep.subr.mxu0 %v12345_v9 }
 0x31f   : > { %9935 = vmatpush3.msra.mxu1 %v12345_v9  ;;  %9969 = vmatpush3.msra.mxu0 %v12345_v9  ;;  %v8649_v9 = vld [vmem:[%s13167_s3 + $0x20] sm:$0xff] }
 0x320   : > { %9936 = vmatprep.subr.mxu1 %v12347_v61  ;;  %9970 = vmatprep.subr.mxu0 %v12347_v61 }
 0x321   : > { %9937 = vmatpush3.msra.mxu1 %v12347_v61  ;;  %9971 = vmatpush3.msra.mxu0 %v12347_v61  ;;  %v5036_v61 = vld [vmem:[#allocation2 + $0x1] sm:$0xff] }
 0x322   : > { %9938 = vmatprep.subr.mxu1 %v12327_v42  ;;  %9972 = vmatprep.subr.mxu0 %v12327_v42 }
 0x323   : > { %9939 = vmatpush3.msra.mxu1 %v12327_v42  ;;  %9973 = vmatpush3.msra.mxu0 %v12327_v42  ;;  %v8672_v42 = vld [vmem:[%s13167_s3 + $0x58] sm:$0xff] }
 0x324   : > { %9940 = vmatprep.subr.mxu1 %v12334_v47  ;;  %9974 = vmatprep.subr.mxu0 %v12334_v47 }
 0x325   : > { %9941 = vmatpush3.msra.mxu1 %v12334_v47  ;;  %9975 = vmatpush3.msra.mxu0 %v12334_v47  ;;  %v10457_v47 = vld [vmem:[%s13169_s5 + $0x28] sm:$0xff] }
 0x326   : > { %9942 = vmatprep.subr.mxu1 %v12313_v49  ;;  %9976 = vmatprep.subr.mxu0 %v12313_v49 }
 0x327   : > { %9943 = vmatpush3.msra.mxu1 %v12313_v49  ;;  %9977 = vmatpush3.msra.mxu0 %v12313_v49  ;;  %v10456_v49 = vld [vmem:[%s13169_s5 + $0x8] sm:$0xff] }
 0x328   : > { %9944 = vmatprep.subr.mxu1 %v12320_v38  ;;  %9978 = vmatprep.subr.mxu0 %v12320_v38 }
 0x329   : > { %9945 = vmatpush3.msra.mxu1 %v12320_v38  ;;  %9979 = vmatpush3.msra.mxu0 %v12320_v38  ;;  %v8671_v38 = vld [vmem:[%s13167_s3 + $0x50] sm:$0xff] }
 0x32a   : > { %9947 = vmatmul.mubr.msk.f32.vlgmr.msra.gmra.mxu1 %vm2563_vm2, %v10456_v49  ;;  %9981 = vmatmul.mubr.msk.f32.vlgmr.msra.gmra.mxu0 %vm2563_vm2, %v10457_v47  ;;  %v8708_v47 = vld [vmem:[%s13167_s3 + $0xb8] sm:$0xff] }
 0x32b   : > { %9986 = vmatprep.subr.mxu1 %v8652_v25  ;;  %10026 = vmatprep.subr.mxu0 %v8672_v42 }
 0x32c   : > { %9987 = vmatpush3.msra.mxu1 %v8652_v25  ;;  %10027 = vmatpush3.msra.mxu0 %v8672_v42  ;;  %v8717_v25 = vld [vmem:[%s13167_s3 + $0xc0] sm:$0xff] }
 0x32d   : > { %9988 = vmatprep.subr.mxu1 %v8651_v8  ;;  %10028 = vmatprep.subr.mxu0 %v8671_v38 }
 0x32e   : > { %9949 = vmatprep.mubr.msk.f32.mxu1 %vm2563_vm2, %v10458_v20  ;;  %9983 = vmatprep.mubr.msk.f32.mxu0 %vm2563_vm2, %v10459_v4  ;;  %v8743_v20 = vld [vmem:[%s13167_s3 + $0x110] sm:$0xff]  ;;  %v8706_v4 = vld [vmem:[%s13167_s3 + $0xa8] sm:$0xff] }
 0x32f   : > { %9989 = vmatpush3.msra.mxu1 %v8651_v8  ;;  %10029 = vmatpush3.msra.mxu0 %v8671_v38  ;;  %v8744_v8 = vld [vmem:[%s13167_s3 + $0x118] sm:$0xff]  ;;  %v8707_v38 = vld [vmem:[%s13167_s3 + $0xb0] sm:$0xff] }
 0x330   : > { %9950 = vmatmul.mubr.msk.f32.gmra.mxu1 %vm2563_vm2, %v10460_v55  ;;  %9984 = vmatmul.mubr.msk.f32.gmra.mxu0 %vm2563_vm2, %v10461_v34  ;;  %v8705_v55 = vld [vmem:[%s13167_s3 + $0xa0] sm:$0xff] }
 0x331   : > { %9990 = vmatprep.subr.mxu1 %v8650_v26  ;;  %10030 = vmatprep.subr.mxu0 %v8670_v10  ;;  %v8741_v34 = vld [vmem:[%s13167_s3 + $0x100] sm:$0xff] }
 0x332   : > { %9991 = vmatpush3.msra.mxu1 %v8650_v26  ;;  %10031 = vmatpush3.msra.mxu0 %v8670_v10  ;;  %v8742_v26 = vld [vmem:[%s13167_s3 + $0x108] sm:$0xff] }
 0x333   : > { %9992 = vmatprep.subr.mxu1 %v8649_v9  ;;  %10032 = vmatprep.subr.mxu0 %v8669_v43 }
 0x334   : > { %9993 = vmatpush3.msra.mxu1 %v8649_v9  ;;  %9994 = vmatprep.mubr.msk.f32.mxu1 %vm438_vm3, %v5036_v61  ;;  %v5915_v9 = vld [vmem:[#allocation2 + $0x90] sm:$0xff] }
 0x335   : > { %10033 = vmatpush3.msra.mxu0 %v8669_v43  ;;  %10034 = vmatprep.mubr.msk.f32.mxu0 %vm438_vm3, %v5307_v41  ;;  %v8732_v43 = vld [vmem:[%s13167_s3 + $0xf8] sm:$0xff]  ;;  %v8731_v61 = vld [vmem:[%s13167_s3 + $0xf0] sm:$0xff]  ;;  %v8730_v41 = vld [vmem:[%s13167_s3 + $0xe8] sm:$0xff] }
 0x336   : > { %9995 = vmatmul.mubr.msk.f32.vlgmr.msra.gmra.mxu1 %vm438_vm3, %v12440_v54  ;;  %10035 = vmatmul.mubr.msk.f32.vlgmr.msra.gmra.mxu0 %vm438_vm3, %v12442_v15 }
 0x337   : > { %9997 = vmatprep.mubr.msk.f32.mxu1 %vm438_vm3, %v12448_v53  ;;  %10037 = vmatprep.mubr.msk.f32.mxu0 %vm438_vm3, %v12450_v7 }
 0x338   : > { %10006 = vmatprep.subr.mxu1 %v5035_v30  ;;  %10066 = vmatprep.subr.mxu0 %v8696_v36 }
 0x339   : > { %10007 = vmatpush3.msra.mxu1 %v5035_v30  ;;  %10067 = vmatpush3.msra.mxu0 %v8696_v36 }
 0x33a   : > { %9998 = vmatmul.mubr.msk.f32.gmra.mxu1 %vm438_vm3, %v12456_v14  ;;  %10038 = vmatmul.mubr.msk.f32.gmra.mxu0 %vm438_vm3, %v12458_v24 }
 0x33b   : > { %10000 = vmatprep.mubr.msk.f32.mxu1 %vm438_vm3, %v12464_v39  ;;  %10040 = vmatprep.mubr.msk.f32.mxu0 %vm438_vm3, %v12466_v21 }
 0x33c   : > { %10008 = vmatprep.subr.mxu1 %v5034_v18  ;;  %10068 = vmatprep.subr.mxu0 %v8695_v37 }
 0x33d   : > { %10009 = vmatpush3.msra.mxu1 %v5034_v18  ;;  %10069 = vmatpush3.msra.mxu0 %v8695_v37 }
 0x33e   : > { %10010 = vmatprep.subr.mxu1 %v5033_v35  ;;  %10070 = vmatprep.subr.mxu0 %v8694_v5 }
 0x33f   : > { %10011 = vmatpush3.msra.mxu1 %v5033_v35  ;;  %10071 = vmatpush3.msra.mxu0 %v8694_v5 }
 0x340   : > { %10012 = vmatprep.subr.mxu1 %v5032_v63  ;;  %10072 = vmatprep.subr.mxu0 %v8693_v50 }
 0x341   : > { %10013 = vmatpush3.msra.mxu1 %v5032_v63  ;;  %10073 = vmatpush3.msra.mxu0 %v8693_v50 }
 0x342   : > { %10046 = vmatprep.subr.mxu1 %v8684_v3  ;;  %10106 = vmatprep.subr.mxu0 %v8720_v51 }
 0x3ea   : > { %v9948_v44 = vpop.f32.mrf.mxu1  ;;  %v9982_v0 = vpop.f32.mrf.mxu0 }
 0x3eb   : > { %v5016_v22 = vmax.f32 %v9948_v44, %v9982_v0 }
 0x3ec   : > { %v4911_v32 = vpop.f32.mrf.mxu1  ;;  %v4996_v58 = vpop.f32.mrf.mxu0 }
 0x3ed   : > { %5021 = vst.msk [vmem:[#allocation2 + $0x61] sm:$0xff] %vm438_vm3, %v5016_v22  ;;  %v5015_v2 = vmax.f32 %v4911_v32, %v4996_v58 }
 0x3ef   : > { %5020 = vst.msk [vmem:[#allocation2 + $0x51] sm:$0xff] %vm438_vm3, %v5015_v2 }
 0x3f0   : > { %v9951_v6 = vpop.f32.mrf.mxu1  ;;  %v9985_v52 = vpop.f32.mrf.mxu0 }
 0x3f1   : > { %v5018_v45 = vmax.f32 %v9951_v6, %v9985_v52 }
 0x3f2   : > { %v4921_v59 = vpop.f32.mrf.mxu1  ;;  %v5006_v48 = vpop.f32.mrf.mxu0 }
 0x3f3   : > { %5023 = vst.msk [vmem:[#allocation2 + $0x81] sm:$0xff] %vm438_vm3, %v5018_v45  ;;  %v5017_v11 = vmax.f32 %v4921_v59, %v5006_v48 }
 0x3f4   : > { %v12514_v40 = vld [vmem:[#allocation2 + $0x61] sm:$0xff] }
 0x3f5   : > { %5022 = vst.msk [vmem:[#allocation2 + $0x71] sm:$0xff] %vm438_vm3, %v5017_v11  ;;  %v12516_v23 = vld [vmem:[#allocation2 + $0x62] sm:$0xff] }
 0x3f6   : > { %v12506_v12 = vld [vmem:[#allocation2 + $0x51] sm:$0xff]  ;;  %v5030_v19 = vld [vmem:[#allocation2 + $0x60] sm:$0xff] }
 0x3f7   : > { %v12508_v46 = vld [vmem:[#allocation2 + $0x52] sm:$0xff]  ;;  %10001 = vmatmul.mubr.msk.f32.gmra.mxu1 %vm438_vm3, %v12506_v12 }
 0x3f8   : > { %10041 = vmatmul.mubr.msk.f32.gmra.mxu0 %vm438_vm3, %v12508_v46  ;;  %10003 = vmatprep.mubr.msk.f32.mxu1 %vm438_vm3, %v12514_v40  ;;  %v5029_v17 = vld [vmem:[#allocation2 + $0x50] sm:$0xff] }
 0x3f9   : > { %10043 = vmatprep.mubr.msk.f32.mxu0 %vm438_vm3, %v12516_v23 }
 0x3fa   : > { %v12569_v49 = vld [vmem:[#allocation2 + $0x81] sm:$0xff] }
 0x3fb   : > { %v5914_v10 = vld [vmem:[#allocation2 + $0x80] sm:$0xff] }
 0x3fc   : > { %v12522_v33 = vld [vmem:[#allocation2 + $0x71] sm:$0xff] }
 0x3fd   : > { %v12524_v13 = vld [vmem:[#allocation2 + $0x72] sm:$0xff]  ;;  %10004 = vmatmul.mubr.msk.f32.gmra.mxu1 %vm438_vm3, %v12522_v33 }
 0x3fe   : > { %10044 = vmatmul.mubr.msk.f32.gmra.mxu0 %vm438_vm3, %v12524_v13  ;;  %10014 = vmatprep.mubr.msk.f32.mxu1 %vm438_vm3, %v5024_v57  ;;  %v5031_v42 = vld [vmem:[#allocation2 + $0x70] sm:$0xff] }
 0x3ff   : > { %10074 = vmatprep.mubr.msk.f32.mxu0 %vm438_vm3, %v12440_v54  ;;  %v6214_v54 = vld [vmem:[#allocation2 + $0x82] sm:$0xff] }
 0x401   : > { %10015 = vmatmul.mubr.msk.f32.vlgmr.msra.gmra.mxu1 %vm438_vm3, %v5025_v16 }
 0x402   : > { %10075 = vmatmul.mubr.msk.f32.vlgmr.msra.gmra.mxu0 %vm438_vm3, %v12448_v53  ;;  %10017 = vmatprep.mubr.msk.f32.mxu1 %vm438_vm3, %v5026_v29 }
 0x403   : > { %10077 = vmatprep.mubr.msk.f32.mxu0 %vm438_vm3, %v12456_v14  ;;  %10047 = vmatpush3.msra.mxu1 %v8684_v3 }
 0x404   : > { %10107 = vmatpush3.msra.mxu0 %v8720_v51  ;;  %10048 = vmatprep.subr.mxu1 %v8683_v31 }
 0x405   : > { %10108 = vmatprep.subr.mxu0 %v8719_v60  ;;  %10018 = vmatmul.mubr.msk.f32.gmra.mxu1 %vm438_vm3, %v5027_v28 }
 0x406   : > { %10078 = vmatmul.mubr.msk.f32.gmra.mxu0 %vm438_vm3, %v12464_v39  ;;  %10020 = vmatprep.mubr.msk.f32.mxu1 %vm438_vm3, %v5028_v27 }
 0x407   : > { %10080 = vmatprep.mubr.msk.f32.mxu0 %vm438_vm3, %v12506_v12  ;;  %10049 = vmatpush3.msra.mxu1 %v8683_v31 }
 0x408   : > { %10109 = vmatpush3.msra.mxu0 %v8719_v60  ;;  %10050 = vmatprep.subr.mxu1 %v8682_v1 }
 0x409   : > { %10110 = vmatprep.subr.mxu0 %v8718_v56  ;;  %10021 = vmatmul.mubr.msk.f32.gmra.mxu1 %vm438_vm3, %v5029_v17 }
 0x40a   : > { %10081 = vmatmul.mubr.msk.f32.gmra.mxu0 %vm438_vm3, %v12514_v40  ;;  %10023 = vmatprep.mubr.msk.f32.mxu1 %vm438_vm3, %v5030_v19 }
 0x40b   : > { %10083 = vmatprep.mubr.msk.f32.mxu0 %vm438_vm3, %v12522_v33  ;;  %10051 = vmatpush3.msra.mxu1 %v8682_v1 }
 0x40c   : > { %10111 = vmatpush3.msra.mxu0 %v8718_v56  ;;  %10052 = vmatprep.subr.mxu1 %v8681_v62 }
 0x40d   : > { %10112 = vmatprep.subr.mxu0 %v8717_v25  ;;  %10024 = vmatmul.mubr.msk.f32.gmra.mxu1 %vm438_vm3, %v5031_v42 }
 0x40e   : > { %10084 = vmatmul.mubr.msk.f32.gmra.mxu0 %vm438_vm3, %v12569_v49  ;;  %10054 = vmatprep.mubr.msk.f32.mxu1 %vm438_vm3, %v5025_v16 }
 0x40f   : > { %10114 = vmatprep.mubr.msk.f32.mxu0 %vm438_vm3, %v5026_v29  ;;  %10053 = vmatpush3.msra.mxu1 %v8681_v62 }
 0x410   : > { %10113 = vmatpush3.msra.mxu0 %v8717_v25  ;;  %10086 = vmatprep.subr.mxu1 %v8708_v47 }
 0x411   : > { %10146 = vmatprep.subr.mxu0 %v8744_v8  ;;  %10055 = vmatmul.mubr.msk.f32.vlgmr.msra.gmra.mxu1 %vm438_vm3, %v5026_v29 }
 0x412   : > { %10115 = vmatmul.mubr.msk.f32.vlgmr.msra.gmra.mxu0 %vm438_vm3, %v5027_v28  ;;  %10057 = vmatprep.mubr.msk.f32.mxu1 %vm438_vm3, %v5027_v28 }
 0x413   : > { %10117 = vmatprep.mubr.msk.f32.mxu0 %vm438_vm3, %v5028_v27  ;;  %10087 = vmatpush3.msra.mxu1 %v8708_v47 }
 0x414   : > { %10147 = vmatpush3.msra.mxu0 %v8744_v8  ;;  %10088 = vmatprep.subr.mxu1 %v8707_v38 }
 0x415   : > { %10148 = vmatprep.subr.mxu0 %v8743_v20  ;;  %10058 = vmatmul.mubr.msk.f32.gmra.mxu1 %vm438_vm3, %v5028_v27 }
 0x416   : > { %10118 = vmatmul.mubr.msk.f32.gmra.mxu0 %vm438_vm3, %v5029_v17  ;;  %10060 = vmatprep.mubr.msk.f32.mxu1 %vm438_vm3, %v5029_v17 }
 0x417   : > { %10120 = vmatprep.mubr.msk.f32.mxu0 %vm438_vm3, %v5030_v19  ;;  %10089 = vmatpush3.msra.mxu1 %v8707_v38 }
 0x418   : > { %10149 = vmatpush3.msra.mxu0 %v8743_v20  ;;  %10090 = vmatprep.subr.mxu1 %v8706_v4 }
 0x419   : > { %10150 = vmatprep.subr.mxu0 %v8742_v26  ;;  %10061 = vmatmul.mubr.msk.f32.gmra.mxu1 %vm438_vm3, %v5030_v19 }
 0x41a   : > { %10121 = vmatmul.mubr.msk.f32.gmra.mxu0 %vm438_vm3, %v5031_v42  ;;  %10063 = vmatprep.mubr.msk.f32.mxu1 %vm438_vm3, %v5031_v42 }
 0x41b   : > { %10123 = vmatprep.mubr.msk.f32.mxu0 %vm438_vm3, %v5914_v10  ;;  %10091 = vmatpush3.msra.mxu1 %v8706_v4 }
 0x41c   : > { %10151 = vmatpush3.msra.mxu0 %v8742_v26  ;;  %10092 = vmatprep.subr.mxu1 %v8705_v55 }
 0x41d   : > { %10152 = vmatprep.subr.mxu0 %v8741_v34  ;;  %10064 = vmatmul.mubr.msk.f32.gmra.mxu1 %vm438_vm3, %v5914_v10 }
 0x41e   : > { %10124 = vmatmul.mubr.msk.f32.gmra.mxu0 %vm438_vm3, %v5915_v9  ;;  %10094 = vmatprep.mubr.msk.f32.mxu1 %vm438_vm3, %v12442_v15  ;;  %v8729_v15 = vld [vmem:[%s13167_s3 + $0xe0] sm:$0xff] }
 0x41f   : > { %10154 = vmatprep.mubr.msk.f32.mxu0 %vm438_vm3, %v12450_v7  ;;  %10093 = vmatpush3.msra.mxu1 %v8705_v55 }
 0x420   : > { %10153 = vmatpush3.msra.mxu0 %v8741_v34  ;;  %10126 = vmatprep.subr.mxu1 %v8732_v43 }
 0x421   : > { %10095 = vmatmul.mubr.msk.f32.vlgmr.msra.gmra.mxu1 %vm438_vm3, %v12450_v7  ;;  %v6215_v7 = vld [vmem:[#allocation2 + $0x92] sm:$0xff] }
 0x422   : > { %10155 = vmatmul.mubr.msk.f32.vlgmr.msra.gmra.mxu0 %vm438_vm3, %v12458_v24  ;;  %10097 = vmatprep.mubr.msk.f32.mxu1 %vm438_vm3, %v12458_v24  ;;  %v8756_v24 = vld [vmem:[%s13170_s6 + $0x10] sm:$0xff] }
 0x423   : > { %10157 = vmatprep.mubr.msk.f32.mxu0 %vm438_vm3, %v12466_v21  ;;  %10127 = vmatpush3.msra.mxu1 %v8732_v43 }
 0x424   : > { %10128 = vmatprep.subr.mxu1 %v8731_v61 }
 0x425   : > { %10098 = vmatmul.mubr.msk.f32.gmra.mxu1 %vm438_vm3, %v12466_v21  ;;  %v12680_v21 = vpop.f32.mrf.mxu0 }
 0x426   : > { %10158 = vmatmul.mubr.msk.f32.gmra.mxu0 %vm438_vm3, %v12508_v46  ;;  %10100 = vmatprep.mubr.msk.f32.mxu1 %vm438_vm3, %v12508_v46 }
 0x427   : > { %10160 = vmatprep.mubr.msk.f32.mxu0 %vm438_vm3, %v12516_v23  ;;  %10129 = vmatpush3.msra.mxu1 %v8731_v61  ;;  %v12684_v18 = vpop.f32.mrf.mxu0 }
 0x428   : > { %10130 = vmatprep.subr.mxu1 %v8730_v41 }
 0x429   : > { %10101 = vmatmul.mubr.msk.f32.gmra.mxu1 %vm438_vm3, %v12516_v23  ;;  %v12686_v37 = vpop.f32.mrf.mxu0 }
 0x42a   : > { %10161 = vmatmul.mubr.msk.f32.gmra.mxu0 %vm438_vm3, %v12524_v13  ;;  %10103 = vmatprep.mubr.msk.f32.mxu1 %vm438_vm3, %v12524_v13 }
 0x42b   : > { %10163 = vmatprep.mubr.msk.f32.mxu0 %vm438_vm3, %v6214_v54  ;;  %10131 = vmatpush3.msra.mxu1 %v8730_v41  ;;  %v12688_v5 = vpop.f32.mrf.mxu0 }
 0x42c   : > { %10132 = vmatprep.subr.mxu1 %v8729_v15 }
 0x42d   : > { %10104 = vmatmul.mubr.msk.f32.gmra.mxu1 %vm438_vm3, %v6214_v54 }
 0x42e   : > { %10164 = vmatmul.mubr.msk.f32.gmra.mxu0 %vm438_vm3, %v6215_v7  ;;  %10134 = vmatprep.mubr.msk.f32.mxu1 %vm438_vm3, %v12448_v53  ;;  %v6065_v53 = vld [vmem:[#allocation2 + $0x91] sm:$0xff] }
 0x42f   : > { %10133 = vmatpush3.msra.mxu1 %v8729_v15  ;;  %10197 = vmatprep.mubr.msk.f32.mxu0 %vm6390_vm5, %v8756_v24 }
 0x431   : > { %10135 = vmatmul.mubr.msk.f32.vlgmr.msra.gmra.mxu1 %vm438_vm3, %v12456_v14  ;;  %v6388_v14 = vld [vmem:[%s13170_s6] sm:$0xff] }
 0x432   : > { %10137 = vmatprep.mubr.msk.f32.mxu1 %vm438_vm3, %v12464_v39  ;;  %v12678_v39 = vpop.f32.mrf.mxu1 }
 0x434   : > { %v12682_v30 = vpop.f32.mrf.mxu1 }
 0x435   : > { %10138 = vmatmul.mubr.msk.f32.gmra.mxu1 %vm438_vm3, %v12506_v12 }
 0x436   : > { %10140 = vmatprep.mubr.msk.f32.mxu1 %vm438_vm3, %v12514_v40  ;;  %v9999_v36 = vpop.f32.mrf.mxu1 }
 0x438   : > { %v5149_v35 = vpop.f32.mrf.mxu1 }
 0x439   : > { %10141 = vmatmul.mubr.msk.f32.gmra.mxu1 %vm438_vm3, %v12522_v33 }
 0x43a   : > { %10143 = vmatprep.mubr.msk.f32.mxu1 %vm438_vm3, %v12569_v49 }
 0x43d   : > { %10144 = vmatmul.mubr.msk.f32.gmra.mxu1 %vm438_vm3, %v6065_v53 }
 0x43e   : > { %10180 = vmatprep.mubr.msk.f32.mxu1 %vm6390_vm5, %v6388_v14 }
 0x4b7   : > { %v10002_v63 = vpop.f32.mrf.mxu1 }
 0x4b8   : > { %v10042_v50 = vpop.f32.mrf.mxu0 }
 0x4b9   : > { %v5159_v3 = vpop.f32.mrf.mxu1 }
 0x4ba   : > { %v5430_v51 = vpop.f32.mrf.mxu0 }
 0x4bd   : > { %v10005_v44 = vpop.f32.mrf.mxu1 }
 0x4be   : > { %v10045_v0 = vpop.f32.mrf.mxu0 }
 0x4bf   : > { %v5169_v22 = vpop.f32.mrf.mxu1 }
 0x4c0   : > { %v5440_v32 = vpop.f32.mrf.mxu0 }
 0x4c1   : > { %v10016_v58 = vpop.f32.mrf.mxu1 }
 0x4c2   : > { %v12690_v2 = vpop.f32.mrf.mxu0 }
 0x4c3   : > { %v5268_v6 = vpop.f32.mrf.mxu1 }
 0x4c4   : > { %v12692_v52 = vpop.f32.mrf.mxu0 }
 0x4c5   : > { %v10019_v45 = vpop.f32.mrf.mxu1 }
 0x4c6   : > { %v12694_v59 = vpop.f32.mrf.mxu0  ;;  %v5284_v15 = vadd.f32 %v10019_v45, %v9999_v36 }
 0x4c7   : > { %v5278_v48 = vpop.f32.mrf.mxu1 }
 0x4c8   : > { %v12696_v11 = vpop.f32.mrf.mxu0  ;;  %v5279_v53 = vadd.f32 %v5278_v48, %v5149_v35 }
 0x4c9   : > { %v10022_v12 = vpop.f32.mrf.mxu1 }
 0x4ca   : > { %v10082_v46 = vpop.f32.mrf.mxu0  ;;  %v5294_v9 = vadd.f32 %v10022_v12, %v10002_v63  ;;  %v5269_v63 = vadd.f32 %v5268_v6, %v12682_v30  ;;  %v5451_v36 = vadd.f32 %v12688_v5, %v5279_v53 }
 0x4cb   : > { %v5288_v40 = vpop.f32.mrf.mxu1 }
 0x4cc   : > { %v5730_v23 = vpop.f32.mrf.mxu0  ;;  %v5289_v43 = vadd.f32 %v5288_v40, %v5159_v3  ;;  %v5454_v24 = vadd.f32 %v10042_v50, %v5294_v9  ;;  %v5452_v3 = vadd.f32 %v12686_v37, %v5284_v15 }
 0x4cd   : > { %v10025_v57 = vpop.f32.mrf.mxu1 }
 0x4ce   : > { %v10085_v33 = vpop.f32.mrf.mxu0  ;;  %v5304_v54 = vadd.f32 %v10025_v57, %v10005_v44 }
 0x4cf   : > { %v5298_v13 = vpop.f32.mrf.mxu1 }
 0x4d0   : > { %v12698_v16 = vpop.f32.mrf.mxu0  ;;  %v5299_v14 = vadd.f32 %v5298_v13, %v5169_v22 }
 0x4d1   : > { %v10056_v29 = vpop.f32.mrf.mxu1 }
 0x4d2   : > { %v12700_v31 = vpop.f32.mrf.mxu0  ;;  %v5455_v35 = vadd.f32 %v5440_v32, %v5299_v14 }
 0x4d3   : > { %13390 = vst [vmem:[#allocation51_spill] sm:$0xff] %v12700_v31  ;;  %v5560_v60 = vpop.f32.mrf.mxu1 }
 0x4d4   : > { %v12702_v28 = vpop.f32.mrf.mxu0 }
 0x4d5   : > { %13391 = vst [vmem:[#allocation6_spill] sm:$0xff] %v12702_v28  ;;  %v10059_v27 = vpop.f32.mrf.mxu1  ;;  %v5453_v28 = vadd.f32 %v5430_v51, %v5289_v43 }
 0x4d6   : > { %v12704_v1 = vpop.f32.mrf.mxu0  ;;  %v5602_v22 = vadd.f32 %v10059_v27, %v5452_v3 }
 0x4d7   : > { %13392 = vst [vmem:[#allocation7_spill] sm:$0xff] %v12704_v1  ;;  %v5570_v56 = vpop.f32.mrf.mxu1  ;;  %v5456_v1 = vadd.f32 %v10045_v0, %v5304_v54 }
 0x4d8   : > { %v12706_v17 = vpop.f32.mrf.mxu0  ;;  %v5601_v45 = vadd.f32 %v5570_v56, %v5451_v36  ;;  %v5752_v5 = vadd.f32 %v12694_v59, %v5602_v22 }
 0x4d9   : > { %13393 = vst [vmem:[#allocation25_spill] sm:$0xff] %v12706_v17  ;;  %v10062_v19 = vpop.f32.mrf.mxu1 }
 0x4da   : > { %v10122_v62 = vpop.f32.mrf.mxu0  ;;  %v5604_v17 = vadd.f32 %v10062_v19, %v5454_v24  ;;  %v5751_v19 = vadd.f32 %v12696_v11, %v5601_v45 }
 0x4db   : > { %v5580_v25 = vpop.f32.mrf.mxu1 }
 0x4dc   : > { %v12708_v42 = vpop.f32.mrf.mxu0  ;;  %v5603_v12 = vadd.f32 %v5580_v25, %v5453_v28  ;;  %v5754_v57 = vadd.f32 %v10082_v46, %v5604_v17 }
 0x4dd   : > { %v10065_v49 = vpop.f32.mrf.mxu1 }
 0x4de   : > { %v12710_v47 = vpop.f32.mrf.mxu0  ;;  %v5606_v44 = vadd.f32 %v10065_v49, %v5456_v1 }
 0x4df   : > { %v5590_v8 = vpop.f32.mrf.mxu1 }
 0x4e0   : > { %v12714_v20 = vpop.f32.mrf.mxu0  ;;  %v5605_v48 = vadd.f32 %v5590_v8, %v5455_v35  ;;  %v5756_v37 = vadd.f32 %v10085_v33, %v5606_v44 }
 0x4e1   : > { %v12712_v38 = vpop.f32.mrf.mxu1  ;;  %13394 = vst [vmem:[#allocation28_spill] sm:$0xff] %v12714_v20 }
 0x4e2   : > { %v12716_v10 = vpop.f32.mrf.mxu0  ;;  %v5755_v46 = vadd.f32 %v12698_v16, %v5605_v48  ;;  %v13396_v16 = vld [vmem:[#allocation7_spill] sm:$0xff] }
 0x4e3   : > { %v5860_v4 = vpop.f32.mrf.mxu1  ;;  %13395 = vst [vmem:[#allocation39_spill] sm:$0xff] %v12716_v10  ;;  %v5274_v10 = vadd.f32 %v10016_v58, %v12678_v39  ;;  %v5449_v39 = vadd.f32 %v12684_v18, %v5269_v63  ;;  %v5753_v58 = vadd.f32 %v5730_v23, %v5603_v12  ;;  %v8753_v12 = vld [vmem:[%s13168_s4] ss:$0 sm:$0xff] }
 0x4e4   : > { %v12718_v61 = vpop.f32.mrf.mxu0 }
 0x4e5   : > { %v10099_v26 = vpop.f32.mrf.mxu1  ;;  %v5450_v0 = vadd.f32 %v12680_v21, %v5274_v10  ;;  %v5599_v28 = vadd.f32 %v5560_v60, %v5449_v39 }
 0x4e6   : > { %v12720_v31 = vpop.f32.mrf.mxu0  ;;  %v5902_v17 = vadd.f32 %v10099_v26, %v5752_v5 }
 0x4e7   : > { %v5870_v55 = vpop.f32.mrf.mxu1  ;;  %v5600_v13 = vadd.f32 %v10056_v29, %v5450_v0  ;;  %v5749_v33 = vadd.f32 %v12692_v52, %v5599_v28 }
 0x4e8   : > { %v6321_v50 = vpop.f32.mrf.mxu0  ;;  %v5901_v25 = vadd.f32 %v5870_v55, %v5751_v19  ;;  %v6053_v26 = vadd.f32 %v13396_v16, %v5902_v17  ;;  %v13402_v16 = vmov 0.0  }
 0x4e9   : > { %v10102_v34 = vpop.f32.mrf.mxu1  ;;  %v5750_v49 = vadd.f32 %v12690_v2, %v5600_v13 }
 0x4ea   : > { %v5904_v6 = vadd.f32 %v10102_v34, %v5754_v57  ;;  %v10162_v1 = vpop.f32.mrf.mxu0  ;;  %v5899_v34 = vadd.f32 %v5860_v4, %v5749_v33  ;;  %v6565_v33 = vld [vmem:[%s13171_s7 + $0x38] sm:$0xff] }
 0x4eb   : > { %v5880_v41 = vpop.f32.mrf.mxu1  ;;  %v5900_v11 = vadd.f32 %v12712_v38, %v5750_v49  ;;  %v13400_v38 = vld [vmem:[#allocation6_spill] sm:$0xff]  ;;  %v8757_v49 = vld [vmem:[%s13170_s6 + $0x18] sm:$0xff] }
 0x4ec   : > { %v5903_v32 = vadd.f32 %v5880_v41, %v5753_v58  ;;  %v6055_v23 = vadd.f32 %v10122_v62, %v5904_v6  ;;  %v6331_v29 = vpop.f32.mrf.mxu0  ;;  %v13397_v62 = vld [vmem:[#allocation25_spill] sm:$0xff]  ;;  %v13398_v41 = vld [vmem:[#allocation28_spill] sm:$0xff]  ;;  %v6050_v4 = vadd.f32 %v13400_v38, %v5899_v34  ;;  %v13401_v6 = vld [vmem:[#allocation39_spill] sm:$0xff] }
 0x4ed   : > { %v10105_v7 = vpop.f32.mrf.mxu1  ;;  %v6052_v43 = vadd.f32 %v13397_v62, %v5901_v25  ;;  %v6558_v34 = vld [vmem:[%s13171_s7] sm:$0xff]  ;;  %v6824_v38 = vld [vmem:[%s13175_s11 + $0x30] sm:$0xff] }
 0x4ee   : > { %v5906_v56 = vadd.f32 %v10105_v7, %v5756_v37  ;;  %v6054_v59 = vadd.f32 %v12708_v42, %v5903_v32 }
 0x4ef   : > { %v5890_v20 = vpop.f32.mrf.mxu1 }
 0x4f0   : > { %v5905_v18 = vadd.f32 %v5890_v20, %v5755_v46  ;;  %v6057_v10 = vadd.f32 %v12710_v47, %v5906_v56  ;;  %v10165_v20 = vpop.f32.mrf.mxu0  ;;  %v13399_v47 = vld [vmem:[#allocation51_spill] sm:$0xff] }
 0x4f1   : > { %v10136_v40 = vpop.f32.mrf.mxu1  ;;  %v6051_v24 = vadd.f32 %v13399_v47, %v5900_v11  ;;  %v6559_v11 = vld [vmem:[%s13171_s7 + $0x8] sm:$0xff]  ;;  %v6825_v47 = vld [vmem:[%s13175_s11 + $0x38] sm:$0xff] }
 0x4f2   : > { %v6056_v52 = vadd.f32 %v13398_v41, %v5905_v18  ;;  %v6341_v3 = vpop.f32.mrf.mxu0  ;;  %v8760_v41 = vld [vmem:[%s13172_s8] ss:$0 sm:$0xff] }
 0x4f3   : > { %v6161_v51 = vpop.f32.mrf.mxu1  ;;  %v6201_v44 = vadd.f32 %v10136_v40, %v6051_v24  ;;  %v6745_v24 = vld [vmem:[%s13175_s11 + $0x8] sm:$0xff] }
 0x4f4   : > { %v6200_v35 = vadd.f32 %v6161_v51, %v6050_v4  ;;  %v6744_v4 = vld [vmem:[%s13175_s11] sm:$0xff] }
 0x4f5   : > { %v10139_v30 = vpop.f32.mrf.mxu1  ;;  %v6351_v37 = vadd.f32 %v13401_v6, %v6201_v44  ;;  %v6979_v6 = vld [vmem:[%s13175_s11 + $0x68] sm:$0xff] }
 0x4f6   : > { %v6203_v54 = vadd.f32 %v10139_v30, %v6053_v26  ;;  %v6350_v13 = vadd.f32 %v12718_v61, %v6200_v35 }
 0x4f7   : > { %v6171_v27 = vpop.f32.mrf.mxu1 }
 0x4f8   : > { %v6202_v42 = vadd.f32 %v6171_v27, %v6052_v43  ;;  %v6353_v22 = vadd.f32 %v12720_v31, %v6203_v54  ;;  %v6366_v31 = vadd.f32 %v8753_v12, %v6351_v37 }
 0x4f9   : > { %v10142_v21 = vpop.f32.mrf.mxu1 }
 0x4fa   : > { %v6205_v8 = vadd.f32 %v10142_v21, %v6055_v23  ;;  %v6352_v48 = vadd.f32 %v6321_v50, %v6202_v42  ;;  %v6368_v28 = vadd.f32 %v8753_v12, %v6353_v22  ;;  %v6365_v50 = vadd.f32 %v8753_v12, %v6350_v13  ;;  %v6389_v23 = vld [vmem:[%s13170_s6 + $0x8] sm:$0xff]  ;;  %v6978_v13 = vld [vmem:[%s13175_s11 + $0x60] sm:$0xff] }
 0x4fb   : > { %v6181_v60 = vpop.f32.mrf.mxu1  ;;  %v6374_v46 = vmax.f32 %v6366_v31, 0.0  ;;  %v7056_v31 = vld [vmem:[%s13175_s11 + $0x80] sm:$0xff] }
 0x4fc   : > { %v6204_v9 = vadd.f32 %v6181_v60, %v6054_v59  ;;  %v6355_v7 = vadd.f32 %v10162_v1, %v6205_v8  ;;  %v6367_v5 = vadd.f32 %v8753_v12, %v6352_v48  ;;  %v6376_v51 = vmax.f32 %v6368_v28, 0.0  ;;  %v6563_v59 = vld [vmem:[%s13171_s7 + $0x28] sm:$0xff]  ;;  %v6562_v60 = vld [vmem:[%s13171_s7 + $0x20] sm:$0xff]  ;;  %v6561_v8 = vld [vmem:[%s13171_s7 + $0x18] sm:$0xff] }
 0x4fd   : > { %v10145_v55 = vpop.f32.mrf.mxu1  ;;  %v6373_v17 = vmax.f32 %v6365_v50, 0.0  ;;  %v7059_v28 = vld [vmem:[%s13175_s11 + $0x98] sm:$0xff]  ;;  %v7135_v50 = vld [vmem:[%s13175_s11 + $0xa8] sm:$0xff] }
 0x4fe   : > { %v6207_v2 = vadd.f32 %v10145_v55, %v6057_v10  ;;  %v6354_v53 = vadd.f32 %v6331_v29, %v6204_v9  ;;  %v6370_v57 = vadd.f32 %v8753_v12, %v6355_v7  ;;  %v6375_v19 = vmax.f32 %v6367_v5, 0.0  ;;  %v6564_v29 = vld [vmem:[%s13171_s7 + $0x30] sm:$0xff]  ;;  %v6656_v7 = vld [vmem:[%s13173_s9 + $0x8] sm:$0xff] }
 0x4ff   : > { %v6191_v15 = vpop.f32.mrf.mxu1  ;;  %v6381_v18 = vmax.f32 %v6373_v17, %v6374_v46  ;;  %v6560_v10 = vld [vmem:[%s13171_s7 + $0x10] sm:$0xff]  ;;  %v7293_v17 = vld [vmem:[%s13175_s11 + $0xf8] sm:$0xff] }
 0x500   : > { %v6206_v14 = vadd.f32 %v6191_v15, %v6056_v52  ;;  %v6357_v63 = vadd.f32 %v10165_v20, %v6207_v2  ;;  %v6369_v0 = vadd.f32 %v8753_v12, %v6354_v53  ;;  %v6378_v1 = vmax.f32 %v6370_v57, 0.0  ;;  %v6655_v2 = vld [vmem:[%s13173_s9] sm:$0xff]  ;;  %v6747_v53 = vld [vmem:[%s13175_s11 + $0x18] sm:$0xff]  ;;  %v6902_v57 = vld [vmem:[%s13175_s11 + $0x50] sm:$0xff] }
 0x501   : > { %v6383_v21 = vmax.f32 %v6375_v19, %v6376_v51  ;;  %v6382_v25 = vmax.f32 %v6374_v46, %v6375_v19  ;;  %v7134_v19 = vld [vmem:[%s13175_s11 + $0xa0] sm:$0xff]  ;;  %v7214_v46 = vld [vmem:[%s13175_s11 + $0xd0] sm:$0xff] }
 0x502   : > { %v6356_v36 = vadd.f32 %v6341_v3, %v6206_v14  ;;  %v6372_v45 = vadd.f32 %v8753_v12, %v6357_v63  ;;  %v6377_v32 = vmax.f32 %v6369_v0, 0.0  ;;  %v6746_v14 = vld [vmem:[%s13175_s11 + $0x10] sm:$0xff]  ;;  %v6823_v63 = vld [vmem:[%s13175_s11 + $0x28] sm:$0xff]  ;;  %v6822_v3 = vld [vmem:[%s13175_s11 + $0x20] sm:$0xff] }
 0x503   : > { %v6981_v0 = vld [vmem:[%s13175_s11 + $0x78] sm:$0xff] }
 0x504   : > { %v6371_v39 = vadd.f32 %v8753_v12, %v6356_v36  ;;  %v6380_v58 = vmax.f32 %v6372_v45, 0.0  ;;  %v6385_v56 = vmax.f32 %v6377_v32, %v6378_v1  ;;  %v6384_v61 = vmax.f32 %v6376_v51, %v6377_v32  ;;  %v6657_v36 = vld [vmem:[%s13174_s10] sm:$0xff]  ;;  %v6903_v45 = vld [vmem:[%s13175_s11 + $0x58] sm:$0xff] }
 0x505   : > { %v7137_v32 = vld [vmem:[%s13175_s11 + $0xb8] sm:$0xff] }
 0x506   : > { %v6379_v30 = vmax.f32 %v6371_v39, 0.0  ;;  %v6901_v39 = vld [vmem:[%s13175_s11 + $0x48] sm:$0xff] }
 0x508   : > { %v6387_v27 = vmax.f32 %v6379_v30, %v6380_v58  ;;  %v6386_v40 = vmax.f32 %v6378_v1, %v6379_v30  ;;  %v6980_v58 = vld [vmem:[%s13175_s11 + $0x70] sm:$0xff]  ;;  %v6900_v30 = vld [vmem:[%s13175_s11 + $0x40] sm:$0xff] }
 0x509   : > { %v7058_v1 = vld [vmem:[%s13175_s11 + $0x90] sm:$0xff] }
 0x50a   : > { %10166 = vmatprep.subr.mxu1 %v6387_v27  ;;  %10183 = vmatprep.subr.mxu0 %v6387_v27 }
 0x50b   : > { %10167 = vmatpush3.msra.mxu1 %v6387_v27  ;;  %10184 = vmatpush3.msra.mxu0 %v6387_v27  ;;  %v7057_v27 = vld [vmem:[%s13175_s11 + $0x88] sm:$0xff] }
 0x50c   : > { %10168 = vmatprep.subr.mxu1 %v6386_v40  ;;  %10185 = vmatprep.subr.mxu0 %v6386_v40 }
 0x50d   : > { %10169 = vmatpush3.msra.mxu1 %v6386_v40  ;;  %10186 = vmatpush3.msra.mxu0 %v6386_v40  ;;  %v7136_v40 = vld [vmem:[%s13175_s11 + $0xb0] sm:$0xff] }
 0x50e   : > { %10170 = vmatprep.subr.mxu1 %v6385_v56  ;;  %10187 = vmatprep.subr.mxu0 %v6385_v56 }
 0x50f   : > { %10171 = vmatpush3.msra.mxu1 %v6385_v56  ;;  %10188 = vmatpush3.msra.mxu0 %v6385_v56  ;;  %v7215_v56 = vld [vmem:[%s13175_s11 + $0xd8] sm:$0xff] }
 0x510   : > { %10172 = vmatprep.subr.mxu1 %v6384_v61  ;;  %10189 = vmatprep.subr.mxu0 %v6384_v61 }
 0x511   : > { %10173 = vmatpush3.msra.mxu1 %v6384_v61  ;;  %10190 = vmatpush3.msra.mxu0 %v6384_v61 }
 0x512   : > { %10174 = vmatprep.subr.mxu1 %v6383_v21  ;;  %10191 = vmatprep.subr.mxu0 %v6383_v21 }
 0x513   : > { %10175 = vmatpush3.msra.mxu1 %v6383_v21  ;;  %10192 = vmatpush3.msra.mxu0 %v6383_v21  ;;  %v7213_v21 = vld [vmem:[%s13175_s11 + $0xc8] sm:$0xff] }
 0x514   : > { %10176 = vmatprep.subr.mxu1 %v6382_v25  ;;  %10193 = vmatprep.subr.mxu0 %v6382_v25 }
 0x515   : > { %10177 = vmatpush3.msra.mxu1 %v6382_v25  ;;  %10194 = vmatpush3.msra.mxu0 %v6382_v25  ;;  %v7292_v25 = vld [vmem:[%s13175_s11 + $0xf0] sm:$0xff] }
 0x516   : > { %10178 = vmatprep.subr.mxu1 %v6381_v18  ;;  %10195 = vmatprep.subr.mxu0 %v6381_v18 }
 0x517   : > { %10179 = vmatpush3.msra.mxu1 %v6381_v18  ;;  %10196 = vmatpush3.msra.mxu0 %v6381_v18  ;;  %v7212_v18 = vld [vmem:[%s13175_s11 + $0xc0] sm:$0xff] }
 0x518   : > { %10181 = vmatmul.mubr.msk.f32.vlgmr.msra.gmra.mxu1 %vm6390_vm5, %v6389_v23  ;;  %10198 = vmatmul.mubr.msk.f32.vlgmr.msra.gmra.mxu0 %vm6390_vm5, %v8757_v49  ;;  %v7291_v23 = vld [vmem:[%s13175_s11 + $0xe8] sm:$0xff] }
 0x519   : > { %10200 = vmatprep.subr.mxu1 %v6565_v33  ;;  %10223 = vmatprep.mubr.msk.f32.mxu0 %vm6659_vm7, %v6655_v2 }
 0x51a   : > { %10201 = vmatpush3.msra.mxu1 %v6565_v33  ;;  %v7290_v33 = vld [vmem:[%s13175_s11 + $0xe0] sm:$0xff] }
 0x51b   : > { %10202 = vmatprep.subr.mxu1 %v6564_v29 }
 0x51c   : > { %10203 = vmatpush3.msra.mxu1 %v6564_v29  ;;  %v7371_v29 = vld [vmem:[%s13175_s11 + $0x118] sm:$0xff] }
 0x51d   : > { %10204 = vmatprep.subr.mxu1 %v6563_v59 }
 0x51e   : > { %10205 = vmatpush3.msra.mxu1 %v6563_v59  ;;  %v6658_v59 = vld [vmem:[%s13174_s10 + $0x8] sm:$0xff] }
 0x51f   : > { %10206 = vmatprep.subr.mxu1 %v6562_v60 }
 0x520   : > { %10207 = vmatpush3.msra.mxu1 %v6562_v60 }
 0x521   : > { %10208 = vmatprep.subr.mxu1 %v6561_v8 }
 0x522   : > { %10209 = vmatpush3.msra.mxu1 %v6561_v8  ;;  %v7370_v8 = vld [vmem:[%s13175_s11 + $0x110] sm:$0xff] }
 0x523   : > { %10210 = vmatprep.subr.mxu1 %v6560_v10 }
 0x524   : > { %10211 = vmatpush3.msra.mxu1 %v6560_v10  ;;  %v7449_v10 = vld [vmem:[%s13175_s11 + $0x138] sm:$0xff] }
 0x525   : > { %10212 = vmatprep.subr.mxu1 %v6559_v11 }
 0x526   : > { %10213 = vmatpush3.msra.mxu1 %v6559_v11 }
 0x527   : > { %10214 = vmatprep.subr.mxu1 %v6558_v34 }
 0x528   : > { %10215 = vmatpush3.msra.mxu1 %v6558_v34  ;;  %v7369_v34 = vld [vmem:[%s13175_s11 + $0x108] sm:$0xff] }
 0x529   : > { %10237 = vmatprep.subr.mxu1 %v13402_v16 }
 0x5d8   : > { %v10182_v26 = vpop.f32.mrf.mxu1  ;;  %v10199_v9 = vpop.f32.mrf.mxu0 }
 0x5d9   : > { %v6557_v43 = vmax.f32 %v10182_v26, %v10199_v9  ;;  %v7448_v26 = vld [vmem:[%s13175_s11 + $0x130] sm:$0xff]  ;;  %v7368_v9 = vld [vmem:[%s13175_s11 + $0x100] sm:$0xff] }
 0x5da   : > { %v6463_v55 = vpop.f32.mrf.mxu1  ;;  %v6547_v20 = vpop.f32.mrf.mxu0 }
 0x5db   : > { %v6556_v62 = vmax.f32 %v6463_v55, %v6547_v20  ;;  %v7447_v55 = vld [vmem:[%s13175_s11 + $0x128] sm:$0xff] }
 0x5dd   : > { %10216 = vmatprep.mubr.msk.f32.mxu1 %vm6573_vm6, %v6556_v62  ;;  %v7446_v62 = vld [vmem:[%s13175_s11 + $0x120] sm:$0xff] }
 0x5de   : > { %10217 = vmatmul.mubr.msk.f32.vlgmr.msra.gmra.mxu1 %vm6573_vm6, %v6557_v43  ;;  %v7527_v43 = vld [vmem:[%s13175_s11 + $0x158] sm:$0xff] }
 0x5df   : > { %10238 = vmatpush3.msra.mxu1 %v6825_v47  ;;  %10245 = vmatprep.mubr.msk.f32.mxu1 %vm10525_vm8, %v13402_v16  ;;  %v7683_v47 = vld [vmem:[%s13175_s11 + $0x198] sm:$0xff] }
 0x5e0   : > { %10239 = vmatprep.subr.mxu1 %v13402_v16 }
 0x5e1   : > { %10240 = vmatpush3.msra.mxu1 %v6824_v38  ;;  %v7682_v38 = vld [vmem:[%s13175_s11 + $0x190] sm:$0xff] }
 0x5e2   : > { %10241 = vmatprep.subr.mxu1 %v13402_v16 }
 0x5e3   : > { %10242 = vmatpush3.msra.mxu1 %v6823_v63  ;;  %v7681_v63 = vld [vmem:[%s13175_s11 + $0x188] sm:$0xff] }
 0x5e4   : > { %10243 = vmatprep.subr.mxu1 %v13402_v16 }
 0x5e5   : > { %10244 = vmatpush3.msra.mxu1 %v6822_v3  ;;  %v7760_v3 = vld [vmem:[%s13175_s11 + $0x1b0] sm:$0xff] }
 0x5e6   : > { %10259 = vmatprep.subr.mxu1 %v13402_v16 }
 0x69e   : > { %v10218_v52 = vpop.f32.mrf.mxu1 }
 0x69f   : > { %v6652_v54 = vadd.f32 %v10218_v52, %v8760_v41  ;;  %v7605_v52 = vld [vmem:[%s13175_s11 + $0x178] sm:$0xff] }
 0x6a0   : > { %v6646_v15 = vpop.f32.mrf.mxu1 }
 0x6a1   : > { %v6647_v42 = vadd.f32 %v8760_v41, %v6646_v15  ;;  %10219 = vmatprep.subr.mxu0 %v6652_v54  ;;  %v7526_v41 = vld [vmem:[%s13175_s11 + $0x150] sm:$0xff] }
 0x6a2   : > { %10220 = vmatpush3.msra.mxu0 %v6652_v54  ;;  %v7525_v54 = vld [vmem:[%s13175_s11 + $0x148] sm:$0xff]  ;;  %v7604_v15 = vld [vmem:[%s13175_s11 + $0x170] sm:$0xff] }
 0x6a3   : > { %10221 = vmatprep.subr.mxu0 %v6647_v42 }
 0x6a4   : > { %10222 = vmatpush3.msra.mxu0 %v6647_v42  ;;  %v7524_v42 = vld [vmem:[%s13175_s11 + $0x140] sm:$0xff] }
 0x6a5   : > { %10224 = vmatmul.mubr.msk.f32.vlgmr.msra.gmra.mxu0 %vm6659_vm7, %v6656_v7  ;;  %10226 = vmatprep.subr.mxu0 %v13402_v16  ;;  %v7603_v7 = vld [vmem:[%s13175_s11 + $0x168] sm:$0xff] }
 0x6a6   : > { %10227 = vmatpush3.msra.mxu0 %v6747_v53  ;;  %10234 = vmatprep.mubr.msk.f32.mxu0 %vm10525_vm8, %v13402_v16 }
 0x6a7   : > { %10228 = vmatprep.subr.mxu0 %v13402_v16 }
 0x6a8   : > { %10229 = vmatpush3.msra.mxu0 %v6746_v14  ;;  %v7602_v14 = vld [vmem:[%s13175_s11 + $0x160] sm:$0xff] }
 0x6a9   : > { %10230 = vmatprep.subr.mxu0 %v13402_v16 }
 0x6aa   : > { %10231 = vmatpush3.msra.mxu0 %v6745_v24 }
 0x6ab   : > { %10232 = vmatprep.subr.mxu0 %v13402_v16 }
 0x6ac   : > { %10233 = vmatpush3.msra.mxu0 %v6744_v4  ;;  %v7761_v4 = vld [vmem:[%s13175_s11 + $0x1b8] sm:$0xff] }
 0x6ad   : > { %10248 = vmatprep.subr.mxu0 %v13402_v16 }
 0x765   : > { %v12826_v12 = vpop.f32.mrf.mxu0 }
 0x766   : > { %v6738_v11 = vadd.f32 %v12826_v12, %v6658_v59  ;;  %v7680_v12 = vld [vmem:[%s13175_s11 + $0x180] sm:$0xff] }
 0x767   : > { %v6732_v44 = vpop.f32.mrf.mxu0 }
 0x768   : > { %v6733_v35 = vadd.f32 %v6732_v44, %v6657_v36  ;;  %v12985_v20 = vmax.f32 %v6738_v11, 0.0  ;;  %v7759_v36 = vld [vmem:[%s13175_s11 + $0x1a8] sm:$0xff] }
 0x76a   : > { %v12831_v22 = vmax.f32 %v6733_v35, 0.0  ;;  %v7450_v2 = vrot.slane %v12985_v20, 1  ;;  %v7528_v53 = vrot.slane %v12985_v20, 2  ;;  %v7606_v24 = vrot.slane %v12985_v20, 3  ;;  %v7758_v35 = vld [vmem:[%s13175_s11 + $0x1a0] sm:$0xff] }
 0x76b   : > { %v7684_v44 = vrot.slane %v12985_v20, 4 }
 0x76c   : > { %10235 = vmatmul.mubr.msk.f32.vlgmr.msra.gmra.mxu0 %vm438_vm3, %v12831_v22  ;;  %v6826_v48 = vrot.slane %v12831_v22, 1  ;;  %v6904_v37 = vrot.slane %v12831_v22, 2  ;;  %v6982_v5 = vrot.slane %v12831_v22, 3  ;;  %v7060_v51 = vrot.slane %v12831_v22, 4 }
 0x76d   : > { %10249 = vmatpush3.msra.mxu0 %v6903_v45  ;;  %10256 = vmatprep.mubr.msk.f32.mxu0 %vm10525_vm8, %v13402_v16  ;;  %v7138_v61 = vrot.slane %v12831_v22, 5  ;;  %v7216_v49 = vrot.slane %v12831_v22, 6  ;;  %v7294_v60 = vrot.slane %v12831_v22, 7  ;;  %v7839_v22 = vld [vmem:[%s13175_s11 + $0x1d8] sm:$0xff]  ;;  %v7762_v45 = vrot.slane %v12985_v20, 5 }
 0x76e   : > { %10250 = vmatprep.subr.mxu0 %v13402_v16  ;;  %10246 = vmatmul.mubr.msk.f32.vlgmr.msra.gmra.mxu1 %vm438_vm3, %v6826_v48  ;;  %v7838_v48 = vld [vmem:[%s13175_s11 + $0x1d0] sm:$0xff] }
 0x76f   : > { %10251 = vmatpush3.msra.mxu0 %v6902_v57  ;;  %10260 = vmatpush3.msra.mxu1 %v6981_v0  ;;  %v7917_v57 = vld [vmem:[%s13175_s11 + $0x1f8] sm:$0xff]  ;;  %v7837_v0 = vld [vmem:[%s13175_s11 + $0x1c8] sm:$0xff] }
 0x770   : > { %10252 = vmatprep.subr.mxu0 %v13402_v16  ;;  %10261 = vmatprep.subr.mxu1 %v13402_v16 }
 0x771   : > { %10253 = vmatpush3.msra.mxu0 %v6901_v39  ;;  %10262 = vmatpush3.msra.mxu1 %v6980_v58  ;;  %v7916_v39 = vld [vmem:[%s13175_s11 + $0x1f0] sm:$0xff]  ;;  %v7836_v58 = vld [vmem:[%s13175_s11 + $0x1c0] sm:$0xff] }
 0x772   : > { %10254 = vmatprep.subr.mxu0 %v13402_v16  ;;  %10263 = vmatprep.subr.mxu1 %v13402_v16 }
 0x773   : > { %10255 = vmatpush3.msra.mxu0 %v6900_v30  ;;  %10264 = vmatpush3.msra.mxu1 %v6979_v6  ;;  %v7915_v30 = vld [vmem:[%s13175_s11 + $0x1e8] sm:$0xff]  ;;  %v7840_v6 = vrot.slane %v12985_v20, 6 }
 0x774   : > { %10257 = vmatmul.mubr.msk.f32.vlgmr.msra.gmra.mxu0 %vm438_vm3, %v6904_v37  ;;  %10265 = vmatprep.subr.mxu1 %v13402_v16  ;;  %v7914_v37 = vld [vmem:[%s13175_s11 + $0x1e0] sm:$0xff] }
 0x775   : > { %10270 = vmatprep.subr.mxu0 %v13402_v16  ;;  %10266 = vmatpush3.msra.mxu1 %v6978_v13  ;;  %v7918_v13 = vrot.slane %v12985_v20, 7 }
 0x776   : > { %10267 = vmatprep.mubr.msk.f32.mxu1 %vm10525_vm8, %v13402_v16  ;;  %10271 = vmatpush3.msra.mxu0 %v7059_v28 }
 0x777   : > { %10268 = vmatmul.mubr.msk.f32.vlgmr.msra.gmra.mxu1 %vm438_vm3, %v6982_v5  ;;  %10272 = vmatprep.subr.mxu0 %v13402_v16 }
 0x778   : > { %10281 = vmatprep.subr.mxu1 %v13402_v16  ;;  %10273 = vmatpush3.msra.mxu0 %v7058_v1 }
 0x779   : > { %10282 = vmatpush3.msra.mxu1 %v7137_v32  ;;  %10274 = vmatprep.subr.mxu0 %v13402_v16 }
 0x77a   : > { %10283 = vmatprep.subr.mxu1 %v13402_v16  ;;  %10275 = vmatpush3.msra.mxu0 %v7057_v27 }
 0x77b   : > { %10284 = vmatpush3.msra.mxu1 %v7136_v40  ;;  %10276 = vmatprep.subr.mxu0 %v13402_v16 }
 0x77c   : > { %10285 = vmatprep.subr.mxu1 %v13402_v16  ;;  %10277 = vmatpush3.msra.mxu0 %v7056_v31 }
 0x77d   : > { %10278 = vmatprep.mubr.msk.f32.mxu0 %vm10525_vm8, %v13402_v16  ;;  %10286 = vmatpush3.msra.mxu1 %v7135_v50 }
 0x77e   : > { %10279 = vmatmul.mubr.msk.f32.vlgmr.msra.gmra.mxu0 %vm438_vm3, %v7060_v51  ;;  %10287 = vmatprep.subr.mxu1 %v13402_v16 }
 0x77f   : > { %10292 = vmatprep.subr.mxu0 %v13402_v16  ;;  %10288 = vmatpush3.msra.mxu1 %v7134_v19 }
 0x780   : > { %10289 = vmatprep.mubr.msk.f32.mxu1 %vm10525_vm8, %v13402_v16  ;;  %10293 = vmatpush3.msra.mxu0 %v7215_v56 }
 0x781   : > { %10290 = vmatmul.mubr.msk.f32.vlgmr.msra.gmra.mxu1 %vm438_vm3, %v7138_v61  ;;  %10294 = vmatprep.subr.mxu0 %v13402_v16 }
 0x782   : > { %10303 = vmatprep.subr.mxu1 %v13402_v16  ;;  %10295 = vmatpush3.msra.mxu0 %v7214_v46  ;;  %v6743_v46 = vld [vmem:[%s13176_s12] sm:$0x1] }
 0x783   : > { %10304 = vmatpush3.msra.mxu1 %v7293_v17  ;;  %10296 = vmatprep.subr.mxu0 %v13402_v16 }
 0x784   : > { %10305 = vmatprep.subr.mxu1 %v13402_v16  ;;  %10297 = vmatpush3.msra.mxu0 %v7213_v21 }
 0x785   : > { %10306 = vmatpush3.msra.mxu1 %v7292_v25  ;;  %10298 = vmatprep.subr.mxu0 %v13402_v16 }
 0x786   : > { %10307 = vmatprep.subr.mxu1 %v13402_v16  ;;  %10299 = vmatpush3.msra.mxu0 %v7212_v18 }
 0x787   : > { %10300 = vmatprep.mubr.msk.f32.mxu0 %vm10525_vm8, %v13402_v16  ;;  %10308 = vmatpush3.msra.mxu1 %v7291_v23 }
 0x788   : > { %10301 = vmatmul.mubr.msk.f32.vlgmr.msra.gmra.mxu0 %vm438_vm3, %v7216_v49  ;;  %10309 = vmatprep.subr.mxu1 %v13402_v16 }
 0x789   : > { %10314 = vmatprep.subr.mxu0 %v13402_v16  ;;  %10310 = vmatpush3.msra.mxu1 %v7290_v33 }
 0x78a   : > { %10311 = vmatprep.mubr.msk.f32.mxu1 %vm10525_vm8, %v13402_v16  ;;  %10315 = vmatpush3.msra.mxu0 %v7371_v29 }
 0x78b   : > { %10312 = vmatmul.mubr.msk.f32.vlgmr.msra.gmra.mxu1 %vm438_vm3, %v7294_v60  ;;  %10316 = vmatprep.subr.mxu0 %v13402_v16 }
 0x78c   : > { %10325 = vmatprep.subr.mxu1 %v13402_v16  ;;  %10317 = vmatpush3.msra.mxu0 %v7370_v8 }
 0x78d   : > { %10326 = vmatpush3.msra.mxu1 %v7449_v10  ;;  %10318 = vmatprep.subr.mxu0 %v13402_v16 }
 0x78e   : > { %10327 = vmatprep.subr.mxu1 %v13402_v16  ;;  %10319 = vmatpush3.msra.mxu0 %v7369_v34 }
 0x78f   : > { %10328 = vmatpush3.msra.mxu1 %v7448_v26  ;;  %10320 = vmatprep.subr.mxu0 %v13402_v16 }
 0x790   : > { %10329 = vmatprep.subr.mxu1 %v13402_v16  ;;  %10321 = vmatpush3.msra.mxu0 %v7368_v9 }
 0x791   : > { %10322 = vmatprep.mubr.msk.f32.mxu0 %vm10525_vm8, %v13402_v16  ;;  %10330 = vmatpush3.msra.mxu1 %v7447_v55 }
 0x792   : > { %10323 = vmatmul.mubr.msk.f32.vlgmr.msra.gmra.mxu0 %vm438_vm3, %v12985_v20  ;;  %10331 = vmatprep.subr.mxu1 %v13402_v16 }
 0x793   : > { %10336 = vmatprep.subr.mxu0 %v13402_v16  ;;  %10332 = vmatpush3.msra.mxu1 %v7446_v62 }
 0x794   : > { %10333 = vmatprep.mubr.msk.f32.mxu1 %vm10525_vm8, %v13402_v16  ;;  %10337 = vmatpush3.msra.mxu0 %v7527_v43 }
 0x795   : > { %10334 = vmatmul.mubr.msk.f32.vlgmr.msra.gmra.mxu1 %vm438_vm3, %v7450_v2  ;;  %10338 = vmatprep.subr.mxu0 %v13402_v16 }
 0x796   : > { %10347 = vmatprep.subr.mxu1 %v13402_v16  ;;  %10339 = vmatpush3.msra.mxu0 %v7526_v41 }
 0x797   : > { %10348 = vmatpush3.msra.mxu1 %v7605_v52  ;;  %10340 = vmatprep.subr.mxu0 %v13402_v16 }
 0x798   : > { %10349 = vmatprep.subr.mxu1 %v13402_v16  ;;  %10341 = vmatpush3.msra.mxu0 %v7525_v54 }
 0x799   : > { %10350 = vmatpush3.msra.mxu1 %v7604_v15  ;;  %10342 = vmatprep.subr.mxu0 %v13402_v16 }
 0x79a   : > { %10351 = vmatprep.subr.mxu1 %v13402_v16  ;;  %10343 = vmatpush3.msra.mxu0 %v7524_v42 }
 0x79b   : > { %10344 = vmatprep.mubr.msk.f32.mxu0 %vm10525_vm8, %v13402_v16  ;;  %10352 = vmatpush3.msra.mxu1 %v7603_v7 }
 0x79c   : > { %10345 = vmatmul.mubr.msk.f32.vlgmr.msra.gmra.mxu0 %vm438_vm3, %v7528_v53  ;;  %10353 = vmatprep.subr.mxu1 %v13402_v16 }
 0x79d   : > { %10358 = vmatprep.subr.mxu0 %v13402_v16  ;;  %10354 = vmatpush3.msra.mxu1 %v7602_v14 }
 0x79e   : > { %10355 = vmatprep.mubr.msk.f32.mxu1 %vm10525_vm8, %v13402_v16  ;;  %10359 = vmatpush3.msra.mxu0 %v7683_v47 }
 0x79f   : > { %10356 = vmatmul.mubr.msk.f32.vlgmr.msra.gmra.mxu1 %vm438_vm3, %v7606_v24  ;;  %10360 = vmatprep.subr.mxu0 %v13402_v16 }
 0x7a0   : > { %10369 = vmatprep.subr.mxu1 %v13402_v16  ;;  %10361 = vmatpush3.msra.mxu0 %v7682_v38 }
 0x7a1   : > { %10370 = vmatpush3.msra.mxu1 %v7761_v4  ;;  %10362 = vmatprep.subr.mxu0 %v13402_v16 }
 0x7a2   : > { %10371 = vmatprep.subr.mxu1 %v13402_v16  ;;  %10363 = vmatpush3.msra.mxu0 %v7681_v63 }
 0x7a3   : > { %10372 = vmatpush3.msra.mxu1 %v7760_v3  ;;  %10364 = vmatprep.subr.mxu0 %v13402_v16 }
 0x7a4   : > { %10373 = vmatprep.subr.mxu1 %v13402_v16  ;;  %10365 = vmatpush3.msra.mxu0 %v7680_v12 }
 0x7a5   : > { %10366 = vmatprep.mubr.msk.f32.mxu0 %vm10525_vm8, %v13402_v16  ;;  %10374 = vmatpush3.msra.mxu1 %v7759_v36 }
 0x7a6   : > { %10367 = vmatmul.mubr.msk.f32.vlgmr.msra.gmra.mxu0 %vm438_vm3, %v7684_v44  ;;  %10375 = vmatprep.subr.mxu1 %v13402_v16 }
 0x7a7   : > { %10380 = vmatprep.subr.mxu0 %v13402_v16  ;;  %10376 = vmatpush3.msra.mxu1 %v7758_v35 }
 0x7a8   : > { %10377 = vmatprep.mubr.msk.f32.mxu1 %vm10525_vm8, %v13402_v16  ;;  %10381 = vmatpush3.msra.mxu0 %v7839_v22 }
 0x7a9   : > { %10378 = vmatmul.mubr.msk.f32.vlgmr.msra.gmra.mxu1 %vm438_vm3, %v7762_v45  ;;  %10382 = vmatprep.subr.mxu0 %v13402_v16 }
 0x7aa   : > { %10391 = vmatprep.subr.mxu1 %v13402_v16  ;;  %10383 = vmatpush3.msra.mxu0 %v7838_v48 }
 0x7ab   : > { %10392 = vmatpush3.msra.mxu1 %v7917_v57  ;;  %10384 = vmatprep.subr.mxu0 %v13402_v16 }
 0x7ac   : > { %10393 = vmatprep.subr.mxu1 %v13402_v16  ;;  %10385 = vmatpush3.msra.mxu0 %v7837_v0 }
 0x7ad   : > { %10394 = vmatpush3.msra.mxu1 %v7916_v39  ;;  %10386 = vmatprep.subr.mxu0 %v13402_v16 }
 0x7ae   : > { %10395 = vmatprep.subr.mxu1 %v13402_v16  ;;  %10387 = vmatpush3.msra.mxu0 %v7836_v58 }
 0x7af   : > { %10388 = vmatprep.mubr.msk.f32.mxu0 %vm10525_vm8, %v13402_v16  ;;  %10396 = vmatpush3.msra.mxu1 %v7915_v30 }
 0x7b0   : > { %10389 = vmatmul.mubr.msk.f32.vlgmr.msra.gmra.mxu0 %vm438_vm3, %v7840_v6  ;;  %10397 = vmatprep.subr.mxu1 %v13402_v16 }
 0x7b1   : > { %10398 = vmatpush3.msra.mxu1 %v7914_v37  ;;  %10399 = vmatprep.mubr.msk.f32.mxu1 %vm10525_vm8, %v13402_v16 }
 0x7b2   : > { %10400 = vmatmul.mubr.msk.f32.vlgmr.msra.gmra.mxu1 %vm438_vm3, %v7918_v13 }
 0x82c   : > { %v6817_v28 = vpop.f32.mrf.mxu0 }
 0x82d   : > { %v6821_v17 = vadd.f32 %v6817_v28, %v6743_v46 }
 0x82e   : > { %v10236_v5 = vpop.f32.mrf.mxu0  ;;  %v6895_v1 = vpop.f32.mrf.mxu1 }
 0x82f   : > { %v6899_v25 = vadd.f32 %v6895_v1, %v6821_v17 }
 0x830   : > { %v10247_v32 = vpop.f32.mrf.mxu1 }
 0x834   : > { %v6973_v27 = vpop.f32.mrf.mxu0 }
 0x835   : > { %v6977_v23 = vadd.f32 %v6973_v27, %v6899_v25 }
 0x836   : > { %v10258_v40 = vpop.f32.mrf.mxu0 }
 0x837   : > { %v7051_v31 = vpop.f32.mrf.mxu1 }
 0x838   : > { %v7055_v33 = vadd.f32 %v7051_v31, %v6977_v23 }
 0x839   : > { %v10269_v50 = vpop.f32.mrf.mxu1 }
 0x83e   : > { %v7129_v51 = vpop.f32.mrf.mxu0 }
 0x83f   : > { %v7133_v59 = vadd.f32 %v7129_v51, %v7055_v33 }
 0x840   : > { %v10280_v19 = vpop.f32.mrf.mxu0 }
 0x841   : > { %v7207_v56 = vpop.f32.mrf.mxu1 }
 0x842   : > { %v7211_v10 = vadd.f32 %v7207_v56, %v7133_v59 }
 0x843   : > { %v10291_v61 = vpop.f32.mrf.mxu1 }
 0x848   : > { %v7285_v16 = vpop.f32.mrf.mxu0 }
 0x849   : > { %v7289_v34 = vadd.f32 %v7285_v16, %v7211_v10 }
 0x84a   : > { %v10302_v21 = vpop.f32.mrf.mxu0 }
 0x84b   : > { %v7363_v18 = vpop.f32.mrf.mxu1 }
 0x84c   : > { %v7367_v9 = vadd.f32 %v7363_v18, %v7289_v34 }
 0x84d   : > { %v10313_v49 = vpop.f32.mrf.mxu1 }
 0x852   : > { %v7441_v29 = vpop.f32.mrf.mxu0 }
 0x853   : > { %v7445_v20 = vadd.f32 %v7441_v29, %v7367_v9 }
 0x854   : > { %v10324_v60 = vpop.f32.mrf.mxu0 }
 0x855   : > { %v7519_v8 = vpop.f32.mrf.mxu1 }
 0x856   : > { %v7523_v2 = vadd.f32 %v7519_v8, %v7445_v20 }
 0x857   : > { %v10335_v11 = vpop.f32.mrf.mxu1 }
 0x85c   : > { %v7597_v26 = vpop.f32.mrf.mxu0 }
 0x85d   : > { %v7601_v41 = vadd.f32 %v7597_v26, %v7523_v2 }
 0x85e   : > { %v10346_v55 = vpop.f32.mrf.mxu0 }
 0x85f   : > { %v7675_v62 = vpop.f32.mrf.mxu1 }
 0x860   : > { %v7679_v15 = vadd.f32 %v7675_v62, %v7601_v41 }
 0x861   : > { %v10357_v43 = vpop.f32.mrf.mxu1 }
 0x866   : > { %v7753_v52 = vpop.f32.mrf.mxu0 }
 0x867   : > { %v7757_v7 = vadd.f32 %v7753_v52, %v7679_v15 }
 0x868   : > { %v10368_v54 = vpop.f32.mrf.mxu0 }
 0x869   : > { %v7831_v42 = vpop.f32.mrf.mxu1 }
 0x86a   : > { %v7835_v14 = vadd.f32 %v7831_v42, %v7757_v7 }
 0x86b   : > { %v10379_v53 = vpop.f32.mrf.mxu1 }
 0x870   : > { %v7909_v47 = vpop.f32.mrf.mxu0 }
 0x871   : > { %v7913_v24 = vadd.f32 %v7909_v47, %v7835_v14 }
 0x872   : > { %v10390_v38 = vpop.f32.mrf.mxu0  ;;  %v7987_v4 = vpop.f32.mrf.mxu1 }
 0x873   : > { %v7991_v63 = vadd.f32 %v7987_v4, %v7913_v24 }
 0x874   : > { %v10401_v3 = vpop.f32.mrf.mxu1 }
 0x875   : > { %7992 = vst [vmem:[%s432_s30] sm:$0x1] %v7991_v63 }
 0x876   : > { %10475 = shalt.err (!%p10472_p3)
}
 0x877   : > { %s10476_s23 = scalar_lea.hbm %s13129_s20, 16  ;;  %s10480_s16 = scalar_lea.hbm %s13177_s13, 32 }
 0x878   : > { %p10477_p4 = scmp.ne.s32.totalorder %s13129_s20, %s10476_s23  ;;  %p10481_p9 = scmp.lt.s32.totalorder %s13129_s20, %s13177_s13 }
 0x879   : > { %p10482_p10 = scmp.lt.s32.totalorder %s10480_s16, %s10476_s23 }
 0x87a   : > { %p10478_p7 = pnand %p10477_p4, %p10635_p5 }
 0x87b   : > { %p10483_p11 = por %p10482_p10, %p10481_p9 }
 0x87c   : > { %p10479_p8 = pneg %p10478_p7 }
 0x87e   : > { %p10484_p12 = pnand %p10483_p11, %p10479_p8 }
 0x880   : > { %10487 = shalt.err (!%p10484_p12)
}
 0x881   : > { %10403 = dma.vmem_to_hbm [thread:$0]  (%p10635_p5), %s8007_s15, 16, %s13129_s20, %s7994_s21  }
 0x882 PF: > { %p10409_p13 = scmp.ge.s32.totalorder %s10522_s28, 2  ;;  %s8018_s2 = sand.u32 1, %s10510_s25  }
 0x883   : > { %s8019_s1 = scalar_lea.sflag [#allocation4], %s8018_s2 }
 0x884   : > { %p10406_p0 = pnand %p10409_p13, %p10639_p6 }
 0x886   : > { %p10407_p1 = pneg %p10406_p0 }
 0x888   : > { %10505 = dma.done.wait (%p10407_p1), %s8019_s1, 16  }
 0x889   : > { %10507 = vsyncadd (%p10407_p1), %s8019_s1, 4294967280  ;;  %p23_p2 = scmp.ge.s32.totalorder %s10622_s14, 4   ;;  %s13403_s25 = smov %s10514_s26 }
 0x88a   : > { %s13404_s26 = smov %s10518_s27  ;;  %s13405_s27 = smov %s10633_s17 }
 0x88b   : > { %s13406_s28 = smov %s10622_s14  ;;  %25 = sbr.rel (!%p23_p2) target bundleno = 7 (0x7), region = 133 }
 0x890   :  { %8023 = vsyncpa [#allocation4], 1 }
 0x891   :  { %8025 = vsyncpa [#allocation4 + $0x1], 1 }

</bundles_post_ra>
